<compile_context>
chip_gen: v5e
topology: v5e:2x2
jax: 0.10.0
libtpu: 0.0.40
codegen_flags: <defaults>
</compile_context>

<pallas_src>
import functools
import math

import jax
import jax.numpy as jnp
from jax.experimental import pallas as pl
from jax.experimental.pallas import tpu as pltpu


# ----------------------------------------------------------------------------
# small helpers
# ----------------------------------------------------------------------------
def _rep0(ndim):
    """index_map that always returns block (0,...,0) (broadcast weights)."""
    return lambda i: (0,) * ndim


def _layernorm(x, g, b, true_d, eps=1e-5):
    """LayerNorm over the last dim, normalizing over `true_d` channels.

    Works for zero-padded lane dims: padded lanes are zero so sum(x)/true_d
    and sum(x*x)/true_d give the true mean / E[x^2]; g/b are zero-padded so
    padded output lanes stay zero.
    """
    inv_n = 1.0 / float(true_d)
    mu = jnp.sum(x, axis=-1, keepdims=True) * inv_n
    var = jnp.sum(x * x, axis=-1, keepdims=True) * inv_n - mu * mu
    var = jnp.maximum(var, 0.0)
    return (x - mu) * jax.lax.rsqrt(var + eps) * g + b


def _gelu(x):
    # tanh approximation (difference vs exact erf-GELU ~1e-3).
    return 0.5 * x * (1.0 + jnp.tanh(0.7978845608028654 *
                                     (x + 0.044715 * x * x * x)))


def _softmax_rows(s):
    """Row softmax; reciprocal on the EUP (approx) — sum >= 1 so it is safe."""
    m = jnp.max(s, axis=-1, keepdims=True)
    p = jnp.exp(s - m)
    return p * pl.reciprocal(jnp.sum(p, axis=-1, keepdims=True), approx=True)


def _mha(q_all, k_all, v_all, out_w_bf16, heads, dim_head):
    """Multi-head attention + output projection.

    q_all:(N,inner) k_all/v_all:(M,inner) f32; out_w_bf16:(inner,D) bf16.
    Head outputs are concatenated into (N, inner) and projected with ONE
    K=inner matmul (no per-head K=32 projections).
    """
    scale = dim_head ** -0.5
    outs = []
    for hd in range(heads):
        lo = hd * dim_head
        q = q_all[:, lo:lo + dim_head].astype(jnp.bfloat16)
        k = k_all[:, lo:lo + dim_head].astype(jnp.bfloat16)
        v = v_all[:, lo:lo + dim_head].astype(jnp.bfloat16)
        # contraction over last dim of both operands — no materialized k.T
        s = jax.lax.dot_general(q, k, (((1,), (1,)), ((), ())),
                                preferred_element_type=jnp.float32) * scale
        p = _softmax_rows(s).astype(jnp.bfloat16)
        outs.append(jnp.dot(p, v, preferred_element_type=jnp.float32))
    cat = jnp.concatenate(outs, axis=-1).astype(jnp.bfloat16)   # (N, inner)
    return jnp.dot(cat, out_w_bf16, preferred_element_type=jnp.float32)


# ----------------------------------------------------------------------------
# Pallas kernel: fused SRTConvBlock
#   conv3x3(s1) + ReLU + conv3x3(s2, computed at full res) + ReLU
#   [+ per-patch linear for the last block]
#   Halo padding and the intermediate feature map live in VMEM scratch.
# ----------------------------------------------------------------------------
def _conv_block_kernel(x_ref, w1_ref, w2_ref, *rest, H, W, proj):
    if proj:
        pw_ref, pb_ref, o_ref, xpad_ref, hpad_ref = rest
    else:
        o_ref, xpad_ref, hpad_ref = rest

    cin = x_ref.shape[-1]
    chid = w1_ref.shape[-1]
    outc = o_ref.shape[-1]

    # --- in-kernel halo pad of the input -------------------------------------
    xpad_ref[...] = jnp.zeros((H + 2, W + 2, cin), jnp.float32)
    xpad_ref[1:H + 1, 1:W + 1, :] = x_ref[0]

    # --- conv1 (stride 1) as one im2col matmul, K = 9*Cin --------------------
    cols = []
    for dy in range(3):
        for dx in range(3):
            cols.append(xpad_ref[dy:dy + H, dx:dx + W, :].reshape(H * W, cin))
    patches = jnp.concatenate(cols, axis=-1).astype(jnp.bfloat16)
    h = jnp.dot(patches, w1_ref[...], preferred_element_type=jnp.float32)
    h = jnp.maximum(h, 0.0)

    # --- halo pad the intermediate in VMEM (never touches HBM) ---------------
    hpad_ref[...] = jnp.zeros((H + 2, W + 2, chid), jnp.float32)
    hpad_ref[1:H + 1, 1:W + 1, :] = h.reshape(H, W, chid)

    # --- conv2 at full resolution (stride applied by the wrapper) ------------
    cols2 = []
    for dy in range(3):
        for dx in range(3):
            cols2.append(hpad_ref[dy:dy + H, dx:dx + W, :].reshape(H * W, chid))
    patches2 = jnp.concatenate(cols2, axis=-1).astype(jnp.bfloat16)
    y = jnp.dot(patches2, w2_ref[...], preferred_element_type=jnp.float32)
    y = jnp.maximum(y, 0.0)

    if proj:
        # fused per-patch linear -> lane-dense 128-wide output slab
        y = jnp.dot(y.astype(jnp.bfloat16), pw_ref[...],
                    preferred_element_type=jnp.float32) + pb_ref[...]
    o_ref[0] = y.reshape(H, W, outc).astype(o_ref.dtype)


def conv_block(x, w1, w2, proj_w=None, proj_b=None):
    """x:[N,H,W,Cin]; w1:[9*Cin,Chid] bf16; w2:[9*Chid,Cout] bf16.
    Returns the stride-2 subsampled block output (and optionally per-patch
    projected tokens)."""
    N, H, W, Cin = x.shape
    Chid = w1.shape[1]
    Cout = w2.shape[1]
    proj = proj_w is not None
    out_c = proj_w.shape[1] if proj else Cout

    args = [x, w1, w2]
    in_specs = [pl.BlockSpec((1, H, W, Cin), lambda i: (i, 0, 0, 0)),
                pl.BlockSpec(w1.shape, _rep0(2)),
                pl.BlockSpec(w2.shape, _rep0(2))]
    if proj:
        args += [proj_w, proj_b.reshape(1, out_c)]
        in_specs += [pl.BlockSpec(proj_w.shape, _rep0(2)),
                     pl.BlockSpec((1, out_c), _rep0(2))]

    y = pl.pallas_call(
        functools.partial(_conv_block_kernel, H=H, W=W, proj=proj),
        out_shape=jax.ShapeDtypeStruct((N, H, W, out_c), jnp.float32),
        grid=(N,),
        in_specs=in_specs,
        out_specs=pl.BlockSpec((1, H, W, out_c), lambda i: (i, 0, 0, 0)),
        scratch_shapes=[pltpu.VMEM((H + 2, W + 2, Cin), jnp.float32),
                        pltpu.VMEM((H + 2, W + 2, Chid), jnp.float32)],
        compiler_params=pltpu.CompilerParams(dimension_semantics=("parallel",)),
    )(*args)
    # stride-2 conv == stride-1 conv subsampled at even pixels (pad=1).
    return y[:, ::2, ::2, :]


# ----------------------------------------------------------------------------
# Pallas kernel: fused encoder self-attention transformer layer
#   LN1 -> QKV -> MHA -> out-proj -> +res -> LN2 -> FF(GELU) -> +res
# ----------------------------------------------------------------------------
def _enc_layer_kernel(x_ref, ln1g_ref, ln1b_ref, qkvw_ref, outw_ref, outb_ref,
                      ln2g_ref, ln2b_ref, ff1w_ref, ff1b_ref, ff2w_ref,
                      ff2b_ref, o_ref, *, heads, dim_head):
    x = x_ref[0]                                   # (N, D) f32
    D = x.shape[-1]
    inner = heads * dim_head
    h = _layernorm(x, ln1g_ref[...], ln1b_ref[...], D)
    qkv = jnp.dot(h.astype(jnp.bfloat16), qkvw_ref[...],
                  preferred_element_type=jnp.float32)
    attn = _mha(qkv[:, :inner], qkv[:, inner:2 * inner], qkv[:, 2 * inner:],
                outw_ref[...], heads, dim_head)
    x = x + attn + outb_ref[...]
    h = _layernorm(x, ln2g_ref[...], ln2b_ref[...], D)
    f = _gelu(jnp.dot(h.astype(jnp.bfloat16), ff1w_ref[...],
                      preferred_element_type=jnp.float32) + ff1b_ref[...])
    x = x + jnp.dot(f.astype(jnp.bfloat16), ff2w_ref[...],
                    preferred_element_type=jnp.float32) + ff2b_ref[...]
    o_ref[0] = x.astype(o_ref.dtype)


def encoder_layer(x, p, heads, dim_head):
    B, N, D = x.shape
    inner = heads * dim_head
    mlp = p["ff1_w"].shape[1]
    return pl.pallas_call(
        functools.partial(_enc_layer_kernel, heads=heads, dim_head=dim_head),
        out_shape=jax.ShapeDtypeStruct((B, N, D), x.dtype),
        grid=(B,),
        in_specs=[
            pl.BlockSpec((1, N, D), lambda i: (i, 0, 0)),
            pl.BlockSpec((1, D), _rep0(2)), pl.BlockSpec((1, D), _rep0(2)),
            pl.BlockSpec((D, 3 * inner), _rep0(2)),
            pl.BlockSpec((inner, D), _rep0(2)), pl.BlockSpec((1, D), _rep0(2)),
            pl.BlockSpec((1, D), _rep0(2)), pl.BlockSpec((1, D), _rep0(2)),
            pl.BlockSpec((D, mlp), _rep0(2)), pl.BlockSpec((1, mlp), _rep0(2)),
            pl.BlockSpec((mlp, D), _rep0(2)), pl.BlockSpec((1, D), _rep0(2)),
        ],
        out_specs=pl.BlockSpec((1, N, D), lambda i: (i, 0, 0)),
        compiler_params=pltpu.CompilerParams(dimension_semantics=("parallel",)),
    )(x, p["ln1_g"].reshape(1, D), p["ln1_b"].reshape(1, D), p["qkv_w"],
      p["out_w"], p["out_b"].reshape(1, D),
      p["ln2_g"].reshape(1, D), p["ln2_b"].reshape(1, D),
      p["ff1_w"], p["ff1_b"].reshape(1, mlp), p["ff2_w"],
      p["ff2_b"].reshape(1, D))


# ----------------------------------------------------------------------------
# Pallas kernel: fused decoder cross-attention layer (queries layer-normed,
# z consumed raw for K/V) with optional fused render head on the last layer.
# The query feature dim is zero-padded to a lane-dense 128; LayerNorm uses the
# true 60 channels.
# ----------------------------------------------------------------------------
def _dec_layer_kernel(x_ref, z_ref, *rest, heads, dim_head, true_d, with_head):
    if with_head:
        (ln1g, ln1b, qw, kvw, outw, outb, ln2g, ln2b,
         ff1w, ff1b, ff2w, ff2b, hw1, hb1, hw2, hb2, o_ref) = rest
    else:
        (ln1g, ln1b, qw, kvw, outw, outb, ln2g, ln2b,
         ff1w, ff1b, ff2w, ff2b, o_ref) = rest

    x = x_ref[0]                                   # (R, Dpad) f32, pads == 0
    z = z_ref[0]                                   # (Nz, Dz)  f32
    inner = heads * dim_head

    h = _layernorm(x, ln1g[...], ln1b[...], true_d)
    q = jnp.dot(h.astype(jnp.bfloat16), qw[...],
                preferred_element_type=jnp.float32)
    kv = jnp.dot(z.astype(jnp.bfloat16), kvw[...],
                 preferred_element_type=jnp.float32)
    attn = _mha(q, kv[:, :inner], kv[:, inner:], outw[...], heads, dim_head)
    x = x + attn + outb[...]                       # padded lanes stay zero
    h = _layernorm(x, ln2g[...], ln2b[...], true_d)
    f = _gelu(jnp.dot(h.astype(jnp.bfloat16), ff1w[...],
                      preferred_element_type=jnp.float32) + ff1b[...])
    x = x + jnp.dot(f.astype(jnp.bfloat16), ff2w[...],
                    preferred_element_type=jnp.float32) + ff2b[...]

    if with_head:
        hh = jnp.maximum(
            jnp.dot(x.astype(jnp.bfloat16), hw1[...],
                    preferred_element_type=jnp.float32) + hb1[...], 0.0)
        y = jnp.dot(hh.astype(jnp.bfloat16), hw2[...],
                    preferred_element_type=jnp.float32) + hb2[...]
        o_ref[0] = (1.0 / (1.0 + jnp.exp(-y))).astype(o_ref.dtype)
    else:
        o_ref[0] = x.astype(o_ref.dtype)


def decoder_layer(x, z, p, heads, dim_head, true_d, head=None):
    B, R, Dp = x.shape
    _, Nz, Dz = z.shape
    inner = heads * dim_head
    mlp = p["ff1_w"].shape[1]
    with_head = head is not None
    out_c = head["w2"].shape[1] if with_head else Dp

    args = [x, z,
            p["ln1_g"].reshape(1, Dp), p["ln1_b"].reshape(1, Dp),
            p["q_w"], p["kv_w"], p["out_w"], p["out_b"].reshape(1, Dp),
            p["ln2_g"].reshape(1, Dp), p["ln2_b"].reshape(1, Dp),
            p["ff1_w"], p["ff1_b"].reshape(1, mlp),
            p["ff2_w"], p["ff2_b"].reshape(1, Dp)]
    in_specs = [
        pl.BlockSpec((1, R, Dp), lambda i: (i, 0, 0)),
        pl.BlockSpec((1, Nz, Dz), lambda i: (i, 0, 0)),
        pl.BlockSpec((1, Dp), _rep0(2)), pl.BlockSpec((1, Dp), _rep0(2)),
        pl.BlockSpec((Dp, inner), _rep0(2)),
        pl.BlockSpec((Dz, 2 * inner), _rep0(2)),
        pl.BlockSpec((inner, Dp), _rep0(2)), pl.BlockSpec((1, Dp), _rep0(2)),
        pl.BlockSpec((1, Dp), _rep0(2)), pl.BlockSpec((1, Dp), _rep0(2)),
        pl.BlockSpec((Dp, mlp), _rep0(2)), pl.BlockSpec((1, mlp), _rep0(2)),
        pl.BlockSpec((mlp, Dp), _rep0(2)), pl.BlockSpec((1, Dp), _rep0(2)),
    ]
    if with_head:
        H1 = head["w1"].shape[1]
        args += [head["w1"], head["b1"].reshape(1, H1),
                 head["w2"], head["b2"].reshape(1, out_c)]
        in_specs += [pl.BlockSpec((Dp, H1), _rep0(2)),
                     pl.BlockSpec((1, H1), _rep0(2)),
                     pl.BlockSpec((H1, out_c), _rep0(2)),
                     pl.BlockSpec((1, out_c), _rep0(2))]

    return pl.pallas_call(
        functools.partial(_dec_layer_kernel, heads=heads, dim_head=dim_head,
                          true_d=true_d, with_head=with_head),
        out_shape=jax.ShapeDtypeStruct((B, R, out_c), x.dtype),
        grid=(B,),
        in_specs=in_specs,
        out_specs=pl.BlockSpec((1, R, out_c), lambda i: (i, 0, 0)),
        compiler_params=pltpu.CompilerParams(dimension_semantics=("parallel",)),
    )(*args)


# ----------------------------------------------------------------------------
# Positional / ray encoding (elementwise glue; XLA fuses sin/cos)
# ----------------------------------------------------------------------------
def positional_encoding(coords, num_octaves, start_octave=0):
    """coords: [..., 3] -> [..., 2*3*num_octaves] = cat(sin, cos)."""
    *lead, d = coords.shape
    octaves = jnp.arange(start_octave, start_octave + num_octaves,
                         dtype=jnp.float32)
    mult = (2.0 ** octaves) * jnp.pi
    scaled = coords[..., None] * mult
    sines = jnp.sin(scaled).reshape(*lead, d * num_octaves)
    cosines = jnp.cos(scaled).reshape(*lead, d * num_octaves)
    return jnp.concatenate([sines, cosines], axis=-1)


# ----------------------------------------------------------------------------
# Encoder / Decoder / SRT forward
# ----------------------------------------------------------------------------
def srt_encoder(params, images, camera_pos, rays, extras, cfg):
    """images [B,K,3,H,W] (NCHW), camera_pos [B,K,3], rays [B,K,H,W,3]."""
    B, K = images.shape[:2]
    H, W = images.shape[-2:]
    # single NCHW -> NHWC transpose; conv path stays NHWC end-to-end
    x = jnp.transpose(images.reshape(B * K, 3, H, W), (0, 2, 3, 1))
    cpos = camera_pos.reshape(B * K, 3)
    rys = rays.reshape(B * K, H, W, 3)

    pos_enc = positional_encoding(cpos, cfg["pos_octaves"])
    pos_enc = jnp.broadcast_to(pos_enc[:, None, None, :],
                               (B * K, H, W, pos_enc.shape[-1]))
    ray_enc = positional_encoding(rys, cfg["ray_octaves"])
    x = jnp.concatenate([x, pos_enc, ray_enc], axis=-1)   # channel concat

    blocks = params["conv_blocks"]
    for bi, blk in enumerate(blocks):
        if bi == len(blocks) - 1:
            # per-patch linear fused into the last conv block (128-lane store)
            x = conv_block(x, blk["c1_w"], blk["c2_w"],
                           params["per_patch_w"], params["per_patch_b"])
        else:
            x = conv_block(x, blk["c1_w"], blk["c2_w"])

    BK, Hp, Wp, D = x.shape
    tokens = x.reshape(B, K * Hp * Wp, D)
    for lp in params["enc_layers"]:
        tokens = encoder_layer(tokens, lp, cfg["enc_heads"], cfg["enc_dim_head"])
    # TODO(synk): `extras` semantics of source/models_nvs.py are unknown; passed through.
    return tokens, extras


def srt_decoder(params, z, target_camera_pos, target_rays, extras, cfg):
    pos_enc = positional_encoding(target_camera_pos, cfg["pos_octaves"])
    ray_enc = positional_encoding(target_rays, cfg["ray_octaves"])
    x = jnp.concatenate([pos_enc, ray_enc], axis=-1)        # [B, R, 60]
    true_d = x.shape[-1]
    Dp = cfg["dec_dim_padded"]
    x = jnp.pad(x, ((0, 0), (0, 0), (0, Dp - true_d)))      # lane-dense pad

    n_layers = len(params["dec_layers"])
    for li, lp in enumerate(params["dec_layers"]):
        head = params["head"] if li == n_layers - 1 else None
        x = decoder_layer(x, z, lp, cfg["dec_heads"], cfg["dec_dim_head"],
                          true_d, head=head)
    rgb = x[..., :3]      # head output is a lane-dense 128 slab; slice RGB
    return rgb, extras


def srt_forward(params, input_images, input_camera_pos, input_rays,
                target_camera_pos, target_rays, extras, cfg):
    z, extras = srt_encoder(params, input_images, input_camera_pos, input_rays,
                            extras, cfg)
    return srt_decoder(params, z, target_camera_pos, target_rays, extras, cfg)


# ----------------------------------------------------------------------------
# Deterministic parameter init (synthetic; shapes follow the module structure)
# ----------------------------------------------------------------------------
def _init_linear(key, fan_in, fan_out, bias=True):
    bound = 1.0 / math.sqrt(fan_in)
    kw, kb = jax.random.split(key)
    w = jax.random.uniform(kw, (fan_in, fan_out), jnp.float32, -bound, bound)
    b = jax.random.uniform(kb, (fan_out,), jnp.float32, -bound, bound) if bias else None
    return w, b


def _init_conv3x3(key, cin, cout):
    bound = 1.0 / math.sqrt(cin * 9)
    w9 = jax.random.uniform(key, (9, cin, cout), jnp.float32, -bound, bound)
    return w9.reshape(9 * cin, cout)          # im2col layout


def _pad_rows(w, rows):
    return jnp.pad(w, ((0, rows - w.shape[0]), (0, 0)))


def _pad_cols(w, cols):
    return jnp.pad(w, ((0, 0), (0, cols - w.shape[1])))


def _pad_vec(v, n):
    return jnp.pad(v, (0, n - v.shape[0]))


def init_params(key, cfg):
    keys = iter(jax.random.split(key, 64))
    bf = jnp.bfloat16
    params = {}

    conv_blocks = []
    for (idim, hdim, odim) in cfg["conv_specs"]:
        conv_blocks.append({
            "c1_w": _init_conv3x3(next(keys), idim, hdim).astype(bf),
            "c2_w": _init_conv3x3(next(keys), hdim, odim).astype(bf),
        })
    params["conv_blocks"] = conv_blocks

    last_odim = cfg["conv_specs"][-1][2]
    pp_w, pp_b = _init_linear(next(keys), last_odim, cfg["enc_dim"])
    params["per_patch_w"], params["per_patch_b"] = pp_w.astype(bf), pp_b

    D = cfg["enc_dim"]
    inner = cfg["enc_heads"] * cfg["enc_dim_head"]
    mlp = cfg["enc_mlp"]
    enc_layers = []
    for _ in range(cfg["enc_depth"]):
        qkv_w, _ = _init_linear(next(keys), D, 3 * inner, bias=False)
        out_w, out_b = _init_linear(next(keys), inner, D)
        ff1_w, ff1_b = _init_linear(next(keys), D, mlp)
        ff2_w, ff2_b = _init_linear(next(keys), mlp, D)
        enc_layers.append({
            "ln1_g": jnp.ones((D,)), "ln1_b": jnp.zeros((D,)),
            "qkv_w": qkv_w.astype(bf), "out_w": out_w.astype(bf), "out_b": out_b,
            "ln2_g": jnp.ones((D,)), "ln2_b": jnp.zeros((D,)),
            "ff1_w": ff1_w.astype(bf), "ff1_b": ff1_b,
            "ff2_w": ff2_w.astype(bf), "ff2_b": ff2_b,
        })
    params["enc_layers"] = enc_layers

    Dq = cfg["dec_dim"]                       # true feature dim (60)
    Dp = cfg["dec_dim_padded"]                # lane-dense padded dim (128)
    inner_d = cfg["dec_heads"] * cfg["dec_dim_head"]
    dec_layers = []
    for _ in range(cfg["dec_depth"]):
        q_w, _ = _init_linear(next(keys), Dq, inner_d, bias=False)
        kv_w, _ = _init_linear(next(keys), cfg["enc_dim"], 2 * inner_d, bias=False)
        out_w, out_b = _init_linear(next(keys), inner_d, Dq)
        ff1_w, ff1_b = _init_linear(next(keys), Dq, cfg["dec_mlp"])
        ff2_w, ff2_b = _init_linear(next(keys), cfg["dec_mlp"], Dq)
        dec_layers.append({
            "ln1_g": _pad_vec(jnp.ones((Dq,)), Dp),
            "ln1_b": _pad_vec(jnp.zeros((Dq,)), Dp),
            "q_w": _pad_rows(q_w, Dp).astype(bf),
            "kv_w": kv_w.astype(bf),
            "out_w": _pad_cols(out_w, Dp).astype(bf),
            "out_b": _pad_vec(out_b, Dp),
            "ln2_g": _pad_vec(jnp.ones((Dq,)), Dp),
            "ln2_b": _pad_vec(jnp.zeros((Dq,)), Dp),
            "ff1_w": _pad_rows(ff1_w, Dp).astype(bf), "ff1_b": ff1_b,
            "ff2_w": _pad_cols(ff2_w, Dp).astype(bf),
            "ff2_b": _pad_vec(ff2_b, Dp),
        })
    params["dec_layers"] = dec_layers

    o1_w, o1_b = _init_linear(next(keys), Dq, cfg["dec_hidden"])
    o2_w, o2_b = _init_linear(next(keys), cfg["dec_hidden"], 3)
    params["head"] = {
        "w1": _pad_rows(o1_w, Dp).astype(bf), "b1": o1_b,
        "w2": _pad_cols(o2_w, Dp).astype(bf), "b2": _pad_vec(o2_b, Dp),
    }
    return params


# ----------------------------------------------------------------------------
# main
# ----------------------------------------------------------------------------
if __name__ == "__main__":
    POS_OCT, RAY_OCT = 5, 5
    ray_enc_ch = 2 * 3 * POS_OCT + 2 * 3 * RAY_OCT          # 60
    cfg = dict(
        pos_octaves=POS_OCT, ray_octaves=RAY_OCT,
        conv_specs=[(3 + ray_enc_ch, 16, 32), (32, 32, 64)],  # (idim, hdim, odim)
        enc_dim=128, enc_depth=2, enc_heads=4, enc_dim_head=32, enc_mlp=256,
        dec_dim=ray_enc_ch, dec_dim_padded=128,
        dec_depth=1, dec_heads=4, dec_dim_head=32,
        dec_mlp=128, dec_hidden=32,
    )

    B, K, H, W, R = 2, 2, 16, 16, 64
    key = jax.random.PRNGKey(0)
    k_img, k_cam, k_ray, k_tc, k_tr, k_par = jax.random.split(key, 6)

    input_images = jax.random.uniform(k_img, (B, K, 3, H, W), jnp.float32)
    input_camera_pos = jax.random.normal(k_cam, (B, K, 3), jnp.float32)
    input_rays = jax.random.normal(k_ray, (B, K, H, W, 3), jnp.float32)
    input_rays = input_rays / jnp.linalg.norm(input_rays, axis=-1, keepdims=True)
    target_camera_pos = jax.random.normal(k_tc, (B, R, 3), jnp.float32)
    target_rays = jax.random.normal(k_tr, (B, R, 3), jnp.float32)
    target_rays = target_rays / jnp.linalg.norm(target_rays, axis=-1, keepdims=True)
    extras = {}

    params = init_params(k_par, cfg)

    pixels, extras_out = srt_forward(params, input_images, input_camera_pos,
                                     input_rays, target_camera_pos, target_rays,
                                     extras, cfg)
    pixels = jax.block_until_ready(pixels)

    assert pixels.shape == (B, R, 3), pixels.shape
    assert bool(jnp.all(jnp.isfinite(pixels)))
    assert bool(jnp.all((pixels >= 0.0) & (pixels <= 1.0)))  # sigmoid output
    print("KERNEL_OK")
</pallas_src>

<mosaic_0001>
module attributes {stable_mosaic.version = 11 : i64} {
  func.func @_conv_block_kernel(%arg0: i32, %arg1: memref<1x16x16x63xf32, #tpu.memory_space<vmem>>, %arg2: memref<567x16xbf16, #tpu.memory_space<vmem>>, %arg3: memref<144x32xbf16, #tpu.memory_space<vmem>>, %arg4: memref<1x16x16x32xf32, #tpu.memory_space<vmem>>, %arg5: memref<18x18x63xf32, #tpu.memory_space<vmem>>, %arg6: memref<18x18x16xf32, #tpu.memory_space<vmem>>) attributes {dimension_semantics = [#tpu.dimension_semantics<parallel>], iteration_bounds = array<i64: 4>, scalar_prefetch = 0 : i64, scratch_operands = 2 : i64, tpu.core_type = #tpu.core_type<tc>, window_params = [{transform_indices = @transform_0, window_bounds = array<i64: 1, 16, 16, 63>}, {pipeline_mode = #tpu.pipeline_mode<synchronous>, transform_indices = @transform_1, window_bounds = array<i64: 567, 16>}, {pipeline_mode = #tpu.pipeline_mode<synchronous>, transform_indices = @transform_2, window_bounds = array<i64: 144, 32>}, {transform_indices = @transform_3, window_bounds = array<i64: 1, 16, 16, 32>}]} {
    %cst = arith.constant 0.000000e+00 : f32
    %0 = vector.broadcast %cst : f32 to vector<18x18x63xf32>
    %c0 = arith.constant 0 : index
    %c0_0 = arith.constant 0 : index
    %c0_1 = arith.constant 0 : index
    %1 = vector.load %arg5[%c0, %c0_0, %c0_1] : memref<18x18x63xf32, #tpu.memory_space<vmem>>, vector<18x18x63xf32>
    tpu.vector_store %arg5[%c0, %c0_0, %c0_1], %0 {strides = array<i32>} : memref<18x18x63xf32, #tpu.memory_space<vmem>>, vector<18x18x63xf32>,
    %c0_2 = arith.constant 0 : index
    %c0_3 = arith.constant 0 : index
    %c0_4 = arith.constant 0 : index
    %c0_5 = arith.constant 0 : index
    %2 = vector.load %arg1[%c0_2, %c0_3, %c0_4, %c0_5] : memref<1x16x16x63xf32, #tpu.memory_space<vmem>>, vector<1x16x16x63xf32>
    %3 = vector.shape_cast %2 : vector<1x16x16x63xf32> to vector<16x16x63xf32>
    %c1 = arith.constant 1 : index
    %c1_6 = arith.constant 1 : index
    %c0_7 = arith.constant 0 : index
    %4 = vector.load %arg5[%c1, %c1_6, %c0_7] : memref<18x18x63xf32, #tpu.memory_space<vmem>>, vector<16x16x63xf32>
    tpu.vector_store %arg5[%c1, %c1_6, %c0_7], %3 {strides = array<i32>} : memref<18x18x63xf32, #tpu.memory_space<vmem>>, vector<16x16x63xf32>,
    %c0_8 = arith.constant 0 : index
    %c0_9 = arith.constant 0 : index
    %c0_10 = arith.constant 0 : index
    %5 = vector.load %arg5[%c0_8, %c0_9, %c0_10] : memref<18x18x63xf32, #tpu.memory_space<vmem>>, vector<16x16x63xf32>
    %6 = vector.shape_cast %5 : vector<16x16x63xf32> to vector<256x63xf32>
    %c0_11 = arith.constant 0 : index
    %c1_12 = arith.constant 1 : index
    %c0_13 = arith.constant 0 : index
    %7 = vector.load %arg5[%c0_11, %c1_12, %c0_13] : memref<18x18x63xf32, #tpu.memory_space<vmem>>, vector<16x16x63xf32>
    %8 = vector.shape_cast %7 : vector<16x16x63xf32> to vector<256x63xf32>
    %c0_14 = arith.constant 0 : index
    %c2 = arith.constant 2 : index
    %c0_15 = arith.constant 0 : index
    %9 = vector.load %arg5[%c0_14, %c2, %c0_15] : memref<18x18x63xf32, #tpu.memory_space<vmem>>, vector<16x16x63xf32>
    %10 = vector.shape_cast %9 : vector<16x16x63xf32> to vector<256x63xf32>
    %c1_16 = arith.constant 1 : index
    %c0_17 = arith.constant 0 : index
    %c0_18 = arith.constant 0 : index
    %11 = vector.load %arg5[%c1_16, %c0_17, %c0_18] : memref<18x18x63xf32, #tpu.memory_space<vmem>>, vector<16x16x63xf32>
    %12 = vector.shape_cast %11 : vector<16x16x63xf32> to vector<256x63xf32>
    %c1_19 = arith.constant 1 : index
    %c1_20 = arith.constant 1 : index
    %c0_21 = arith.constant 0 : index
    %13 = vector.load %arg5[%c1_19, %c1_20, %c0_21] : memref<18x18x63xf32, #tpu.memory_space<vmem>>, vector<16x16x63xf32>
    %14 = vector.shape_cast %13 : vector<16x16x63xf32> to vector<256x63xf32>
    %c1_22 = arith.constant 1 : index
    %c2_23 = arith.constant 2 : index
    %c0_24 = arith.constant 0 : index
    %15 = vector.load %arg5[%c1_22, %c2_23, %c0_24] : memref<18x18x63xf32, #tpu.memory_space<vmem>>, vector<16x16x63xf32>
    %16 = vector.shape_cast %15 : vector<16x16x63xf32> to vector<256x63xf32>
    %c2_25 = arith.constant 2 : index
    %c0_26 = arith.constant 0 : index
    %c0_27 = arith.constant 0 : index
    %17 = vector.load %arg5[%c2_25, %c0_26, %c0_27] : memref<18x18x63xf32, #tpu.memory_space<vmem>>, vector<16x16x63xf32>
    %18 = vector.shape_cast %17 : vector<16x16x63xf32> to vector<256x63xf32>
    %c2_28 = arith.constant 2 : index
    %c1_29 = arith.constant 1 : index
    %c0_30 = arith.constant 0 : index
    %19 = vector.load %arg5[%c2_28, %c1_29, %c0_30] : memref<18x18x63xf32, #tpu.memory_space<vmem>>, vector<16x16x63xf32>
    %20 = vector.shape_cast %19 : vector<16x16x63xf32> to vector<256x63xf32>
    %c2_31 = arith.constant 2 : index
    %c2_32 = arith.constant 2 : index
    %c0_33 = arith.constant 0 : index
    %21 = vector.load %arg5[%c2_31, %c2_32, %c0_33] : memref<18x18x63xf32, #tpu.memory_space<vmem>>, vector<16x16x63xf32>
    %22 = vector.shape_cast %21 : vector<16x16x63xf32> to vector<256x63xf32>
    %23 = tpu.concatenate %6, %8, %10, %12, %14, %16, %18, %20, %22 in 1 : vector<256x63xf32>, vector<256x63xf32>, vector<256x63xf32>, vector<256x63xf32>, vector<256x63xf32>, vector<256x63xf32>, vector<256x63xf32>, vector<256x63xf32>, vector<256x63xf32> -> vector<256x567xf32>
    %24 = arith.truncf %23 : vector<256x567xf32> to vector<256x567xbf16>
    %c0_34 = arith.constant 0 : index
    %c0_35 = arith.constant 0 : index
    %25 = vector.load %arg2[%c0_34, %c0_35] : memref<567x16xbf16, #tpu.memory_space<vmem>>, vector<567x16xbf16>
    %cst_36 = arith.constant dense<0.000000e+00> : vector<256x16xf32>
    %26 = tpu.matmul %24, %25, %cst_36 {dimension_numbers = #tpu.dot_dimension_numbers<[1], [0], [0], [1], [0, 0, 1, 1], [], []>} : vector<256x567xbf16>, vector<567x16xbf16>, vector<256x16xf32> -> vector<256x16xf32>
    %cst_37 = arith.constant 0.000000e+00 : f32
    %27 = vector.broadcast %cst_37 : f32 to vector<256x16xf32>
    %28 = arith.maximumf %26, %27 : vector<256x16xf32>
    %cst_38 = arith.constant 0.000000e+00 : f32
    %29 = vector.broadcast %cst_38 : f32 to vector<18x18x16xf32>
    %c0_39 = arith.constant 0 : index
    %c0_40 = arith.constant 0 : index
    %c0_41 = arith.constant 0 : index
    %30 = vector.load %arg6[%c0_39, %c0_40, %c0_41] : memref<18x18x16xf32, #tpu.memory_space<vmem>>, vector<18x18x16xf32>
    tpu.vector_store %arg6[%c0_39, %c0_40, %c0_41], %29 {strides = array<i32>} : memref<18x18x16xf32, #tpu.memory_space<vmem>>, vector<18x18x16xf32>,
    %31 = vector.shape_cast %28 : vector<256x16xf32> to vector<16x16x16xf32>
    %c1_42 = arith.constant 1 : index
    %c1_43 = arith.constant 1 : index
    %c0_44 = arith.constant 0 : index
    %32 = vector.load %arg6[%c1_42, %c1_43, %c0_44] : memref<18x18x16xf32, #tpu.memory_space<vmem>>, vector<16x16x16xf32>
    tpu.vector_store %arg6[%c1_42, %c1_43, %c0_44], %31 {strides = array<i32>} : memref<18x18x16xf32, #tpu.memory_space<vmem>>, vector<16x16x16xf32>,
    %c0_45 = arith.constant 0 : index
    %c0_46 = arith.constant 0 : index
    %c0_47 = arith.constant 0 : index
    %33 = vector.load %arg6[%c0_45, %c0_46, %c0_47] : memref<18x18x16xf32, #tpu.memory_space<vmem>>, vector<16x16x16xf32>
    %34 = vector.shape_cast %33 : vector<16x16x16xf32> to vector<256x16xf32>
    %c0_48 = arith.constant 0 : index
    %c1_49 = arith.constant 1 : index
    %c0_50 = arith.constant 0 : index
    %35 = vector.load %arg6[%c0_48, %c1_49, %c0_50] : memref<18x18x16xf32, #tpu.memory_space<vmem>>, vector<16x16x16xf32>
    %36 = vector.shape_cast %35 : vector<16x16x16xf32> to vector<256x16xf32>
    %c0_51 = arith.constant 0 : index
    %c2_52 = arith.constant 2 : index
    %c0_53 = arith.constant 0 : index
    %37 = vector.load %arg6[%c0_51, %c2_52, %c0_53] : memref<18x18x16xf32, #tpu.memory_space<vmem>>, vector<16x16x16xf32>
    %38 = vector.shape_cast %37 : vector<16x16x16xf32> to vector<256x16xf32>
    %c1_54 = arith.constant 1 : index
    %c0_55 = arith.constant 0 : index
    %c0_56 = arith.constant 0 : index
    %39 = vector.load %arg6[%c1_54, %c0_55, %c0_56] : memref<18x18x16xf32, #tpu.memory_space<vmem>>, vector<16x16x16xf32>
    %40 = vector.shape_cast %39 : vector<16x16x16xf32> to vector<256x16xf32>
    %c1_57 = arith.constant 1 : index
    %c1_58 = arith.constant 1 : index
    %c0_59 = arith.constant 0 : index
    %41 = vector.load %arg6[%c1_57, %c1_58, %c0_59] : memref<18x18x16xf32, #tpu.memory_space<vmem>>, vector<16x16x16xf32>
    %42 = vector.shape_cast %41 : vector<16x16x16xf32> to vector<256x16xf32>
    %c1_60 = arith.constant 1 : index
    %c2_61 = arith.constant 2 : index
    %c0_62 = arith.constant 0 : index
    %43 = vector.load %arg6[%c1_60, %c2_61, %c0_62] : memref<18x18x16xf32, #tpu.memory_space<vmem>>, vector<16x16x16xf32>
    %44 = vector.shape_cast %43 : vector<16x16x16xf32> to vector<256x16xf32>
    %c2_63 = arith.constant 2 : index
    %c0_64 = arith.constant 0 : index
    %c0_65 = arith.constant 0 : index
    %45 = vector.load %arg6[%c2_63, %c0_64, %c0_65] : memref<18x18x16xf32, #tpu.memory_space<vmem>>, vector<16x16x16xf32>
    %46 = vector.shape_cast %45 : vector<16x16x16xf32> to vector<256x16xf32>
    %c2_66 = arith.constant 2 : index
    %c1_67 = arith.constant 1 : index
    %c0_68 = arith.constant 0 : index
    %47 = vector.load %arg6[%c2_66, %c1_67, %c0_68] : memref<18x18x16xf32, #tpu.memory_space<vmem>>, vector<16x16x16xf32>
    %48 = vector.shape_cast %47 : vector<16x16x16xf32> to vector<256x16xf32>
    %c2_69 = arith.constant 2 : index
    %c2_70 = arith.constant 2 : index
    %c0_71 = arith.constant 0 : index
    %49 = vector.load %arg6[%c2_69, %c2_70, %c0_71] : memref<18x18x16xf32, #tpu.memory_space<vmem>>, vector<16x16x16xf32>
    %50 = vector.shape_cast %49 : vector<16x16x16xf32> to vector<256x16xf32>
    %51 = tpu.concatenate %34, %36, %38, %40, %42, %44, %46, %48, %50 in 1 : vector<256x16xf32>, vector<256x16xf32>, vector<256x16xf32>, vector<256x16xf32>, vector<256x16xf32>, vector<256x16xf32>, vector<256x16xf32>, vector<256x16xf32>, vector<256x16xf32> -> vector<256x144xf32>
    %52 = arith.truncf %51 : vector<256x144xf32> to vector<256x144xbf16>
    %c0_72 = arith.constant 0 : index
    %c0_73 = arith.constant 0 : index
    %53 = vector.load %arg3[%c0_72, %c0_73] : memref<144x32xbf16, #tpu.memory_space<vmem>>, vector<144x32xbf16>
    %cst_74 = arith.constant dense<0.000000e+00> : vector<256x32xf32>
    %54 = tpu.matmul %52, %53, %cst_74 {dimension_numbers = #tpu.dot_dimension_numbers<[1], [0], [0], [1], [0, 0, 1, 1], [], []>} : vector<256x144xbf16>, vector<144x32xbf16>, vector<256x32xf32> -> vector<256x32xf32>
    %cst_75 = arith.constant 0.000000e+00 : f32
    %55 = vector.broadcast %cst_75 : f32 to vector<256x32xf32>
    %56 = arith.maximumf %54, %55 : vector<256x32xf32>
    %57 = vector.shape_cast %56 : vector<256x32xf32> to vector<16x16x32xf32>
    %c0_76 = arith.constant 0 : index
    %c0_77 = arith.constant 0 : index
    %c0_78 = arith.constant 0 : index
    %c0_79 = arith.constant 0 : index
    %58 = vector.load %arg4[%c0_76, %c0_77, %c0_78, %c0_79] : memref<1x16x16x32xf32, #tpu.memory_space<vmem>>, vector<1x16x16x32xf32>
    %59 = vector.shape_cast %58 : vector<1x16x16x32xf32> to vector<16x16x32xf32>
    %60 = vector.shape_cast %57 : vector<16x16x32xf32> to vector<1x16x16x32xf32>
    tpu.vector_store %arg4[%c0_76, %c0_77, %c0_78, %c0_79], %60 {strides = array<i32>} : memref<1x16x16x32xf32, #tpu.memory_space<vmem>>, vector<1x16x16x32xf32>,
    return
  }
  func.func @transform_0(%arg0: i32) -> (i32, i32, i32, i32) {
    %c0_i32 = arith.constant 0 : i32
    %c0_i32_0 = arith.constant 0 : i32
    %c0_i32_1 = arith.constant 0 : i32
    %c0_i32_2 = arith.constant 0 : i32
    return %arg0, %c0_i32, %c0_i32_0, %c0_i32_1 : i32, i32, i32, i32
  }
  func.func @transform_1(%arg0: i32) -> (i32, i32) {
    %c0_i32 = arith.constant 0 : i32
    %c0_i32_0 = arith.constant 0 : i32
    %c0_i32_1 = arith.constant 0 : i32
    return %c0_i32, %c0_i32_0 : i32, i32
  }
  func.func @transform_2(%arg0: i32) -> (i32, i32) {
    %c0_i32 = arith.constant 0 : i32
    %c0_i32_0 = arith.constant 0 : i32
    %c0_i32_1 = arith.constant 0 : i32
    return %c0_i32, %c0_i32_0 : i32, i32
  }
  func.func @transform_3(%arg0: i32) -> (i32, i32, i32, i32) {
    %c0_i32 = arith.constant 0 : i32
    %c0_i32_0 = arith.constant 0 : i32
    %c0_i32_1 = arith.constant 0 : i32
    %c0_i32_2 = arith.constant 0 : i32
    return %arg0, %c0_i32, %c0_i32_0, %c0_i32_1 : i32, i32, i32, i32
  }
}

</mosaic_0001>

<bundles_post_ra>
// kernel: tpu_custom_call.1
= control target key start
LH: loop header
LB: loop body
LE: loop exit
PB: predicated region body
PF: predicated region fallthrough
CT: control target
= control target key end

     0   :  { %8 = vsyncpa [#allocation5], 0  ;;  %s10074_s0 = inlined_call_operand.hbm [shape: f32[4,16,16,63], index: 0, kind: input, shape index: {}]   ;;  %s10075_s1 = inlined_call_operand.vmem [shape: bf16[567,16], index: 1, kind: input, shape index: {}]   ;;  %s10076_s2 = inlined_call_operand.vmem [shape: bf16[144,32], index: 2, kind: input, shape index: {}]   ;;  %s10077_s3 = inlined_call_operand.hbm [shape: f32[4,16,16,32], index: 3, kind: output, shape index: {}]  }
   0x1   :  { %10 = vsyncpa [#allocation5 + $0x1], 0 }
   0x2   :  { %11 = vsyncpa [#allocation6], 0 }
   0x3   :  { %13 = vsyncpa [#allocation6 + $0x1], 0  ;;  %s6481_s12 = smov 0   ;;  %s6483_s13 = smov 0  }
   0x4   :  { %s6485_s14 = smov 0   ;;  %s6487_s15 = smov 0  }
   0x5 LB: > { %s6502_s16 = sadd.s32 4294967295, %s6438_s15   ;;  %s4773_s17 = sadd.s32 4294967294, %s6438_s15   ;;  %s6438_s15 = sphi %s6487_s15, %s10454_s15   ;;  %s6434_s14 = sphi %s6485_s14, %s10453_s14   ;;  %s6430_s13 = sphi %s6483_s13, %s10452_s13   ;;  %s6426_s12 = sphi %s6481_s12, %s10451_s12  }
   0x6   : > { %s6506_s18 = sadd.s32 1, %s6438_s15   ;;  %s26_s19 = sadd.s32 1, %s6434_s14 }
   0x7   : > { %s23_s20 = ssub.s32 %s6438_s15, %s6506_s18  ;;  %p33_p0 = scmp.ne.s32.totalorder %s6434_s14, %s6430_s13 }
   0x8   : > { %p24_p1 = scmp.eq.s32.totalorder %s23_s20, 0  ;;  %p34_p2 = scmp.eq.s32.totalorder %s6438_s15, 0 }
   0x9   : > { %p39_p3 = scmp.ne.s32.totalorder %s6430_s13, %s6426_s12  ;;  %p40_p4 = scmp.eq.s32.totalorder %s6502_s16, 0 }
   0xa   : > { %s6518_s21 = scalar_select %p24_p1, %s6434_s14, %s26_s19  }
   0xb   : > { %p6520_p5 = por %p34_p2, %p33_p0  ;;  %p6524_p6 = por %p40_p4, %p39_p3 }
   0xc   : > { %p105_p7 = scmp.eq.s32.totalorder %s6502_s16, 3  ;;  %p111_p8 = scmp.eq.s32.totalorder %s4773_s17, 3 }
   0xd   : > { %p5077_p9 = scmp.lt.s32.totalorder %s6438_s15, 4  ;;  %s137_s26 = sand.u32 1, %s6434_s14  }
   0xe   : > { %p6530_p10 = por %p105_p7, %p33_p0  ;;  %p6534_p11 = por %p111_p8, %p39_p3 }
   0xf   : > { %s4995_s27 = sshll.u32 %s6438_s15, 8  ;;  %s4776_s28 = sshll.u32 %s137_s26, 8 }
  0x10   : > { %s146_s4 = scalar_lea.hbm %s10074_s0, %s4995_s27  ;;  %s141_s6 = scalar_lea.vmem [#allocation4], %s4776_s28 }
  0x11   : > { %s147_s5 = sshll.u32 %s146_s4, 4  ;;  %s149_s7 = sshll.u32 %s141_s6, 4  ;;  %s148_s5 = int_to_ptr.hbm [resolvable:$true] %s147_s5  ;;  %s150_s7 = int_to_ptr.vmem [resolvable:$true] %s149_s7 }
  0x12   : > { %p6545_p12 = pnand %p5077_p9, %p6520_p5  ;;  %p4779_p13 = scmp.ge.s32.totalorder %s6438_s15, 1 }
  0x13   : > { %p157_p0 = scmp.lt.s32.totalorder %s6438_s15, 5  ;;  %s138_s9 = scalar_lea.sflag [#allocation5], %s137_s26 }
  0x14   : > { %s6342_s10 = sshra.s32 %s148_s5, 4  ;;  %p6346_p2 = pneg %p6545_p12  ;;  %s6343_s10 = int_to_ptr.hbm [resolvable:$true] %s6342_s10 }
  0x15   : > { %s6344_s11 = scalar_lea.hbm %s6343_s10, 256  ;;  %s6349_s20 = scalar_lea.hbm %s10074_s0, 1024 }
  0x16   : > { %p6345_p1 = scmp.ne.s32.totalorder %s6343_s10, %s6344_s11  ;;  %p6350_p5 = scmp.lt.s32.totalorder %s6343_s10, %s10074_s0 }
  0x17   : > { %p6351_p7 = scmp.lt.s32.totalorder %s6349_s20, %s6344_s11 }
  0x18   : > { %p6347_p3 = pnand %p6346_p2, %p6345_p1 }
  0x19   : > { %p6352_p8 = por %p6351_p7, %p6350_p5 }
  0x1a   : > { %p6348_p4 = pneg %p6347_p3 }
  0x1c   : > { %p6353_p9 = pnand %p6352_p8, %p6348_p4 }
  0x1e   : > { %6356 = shalt.err (!%p6353_p9)
}
  0x1f   : > { %s6440_s26 = smov 128   ;;  %s6441_s28 = smov 8  }
  0x20   : > { %5072 = dma.hbm_to_vmem [thread:$0]  (!%p6545_p12), %s148_s5, 4096, %s150_s7, %s138_s9, %s6440_s26, %s6440_s26, %s6441_s28  }
  0x21   : > { %p158_p1 = pnand %p4779_p13, %p157_p0 }
  0x23   : > { %161 = sbr.rel (%p158_p1) target bundleno = 1244 (0x4dc), region = 32 }
  0x28   : > { %s6566_s29 = sand.u32 1, %s6430_s13  }
  0x29   : > { %s4780_s30 = sshll.u32 %s6566_s29, 8  ;;  %s164_s4 = scalar_lea.sflag [#allocation5], %s6566_s29 }
  0x2a   : > { %s6572_s6 = scalar_lea.vmem [#allocation4], %s4780_s30 }
  0x2b   : > { %6417 = dma.done.wait (%p6524_p6), %s164_s4, 4096  }
  0x2c   : > { %6419 = vsyncadd (%p6524_p6), %s164_s4, 4294963200  ;;  %vm192_vm0 = vcmask 515072   ;;  %vm195_vm1 = vcmask 508928   ;;  %v10078_v0 = vmov 0.0   ;;  %s6443_s23 = smov 63   ;;  %v254_v4 = vld [vmem:[%s6572_s6 + $0x30] sm:$0xff] }
  0x2d   : > { %193 = vst.msk [vmem:[#allocation2] sm:$0xff] %vm192_vm0, %v10078_v0  ;;  %v255_v5 = vld [vmem:[%s6572_s6 + $0x38] sm:$0xff]  ;;  %v250_v6 = vld [vmem:[%s6572_s6 + $0x10] sm:$0xff]  ;;  %v248_v8 = vld [vmem:[%s6572_s6] sm:$0xff]  ;;  %s6444_s5 = smov 126   ;;  %s6445_s7 = smov 61  }
  0x2e   : > { %194 = vst.msk [vmem:[#allocation2 + $0x8] sm:$0xff] %vm192_vm0, %v10078_v0  ;;  %v251_v7 = vld [vmem:[%s6572_s6 + $0x18] sm:$0xff]  ;;  %v249_v9 = vld [vmem:[%s6572_s6 + $0x8] sm:$0xff]  ;;  %v256_v10 = vld [vmem:[%s6572_s6 + $0x40] sm:$0xff]  ;;  %vm1658_vm2 = vcmask 1031168   ;;  %vm2302_vm3 = vcmask 1042432  }
  0x2f   : > { %196 = vst.msk [vmem:[#allocation2 + $0x10] sm:$0x3] %vm195_vm1, %v10078_v0  ;;  %v257_v11 = vld [vmem:[%s6572_s6 + $0x48] sm:$0xff]  ;;  %v252_v12 = vld [vmem:[%s6572_s6 + $0x20] sm:$0xff]  ;;  %v258_v15 = vld [vmem:[%s6572_s6 + $0x50] sm:$0xff]  ;;  %vm2303_vm4 = vcmask 1043456  }
  0x30   : > { %197 = vst.msk [vmem:[#allocation2 + $0x18] sm:$0xff] %vm192_vm0, %v10078_v0  ;;  %v253_v13 = vld [vmem:[%s6572_s6 + $0x28] sm:$0xff]  ;;  %v259_v17 = vld [vmem:[%s6572_s6 + $0x58] sm:$0xff]  ;;  %v262_v20 = vld [vmem:[%s6572_s6 + $0x70] sm:$0xff]  ;;  %s6449_s19 = smov 122   ;;  %vm1724_vm5 = vcmask 1014784  }
  0x31   : > { %198 = vst.msk [vmem:[#allocation2 + $0x20] sm:$0xff] %vm192_vm0, %v10078_v0  ;;  %v263_v22 = vld [vmem:[%s6572_s6 + $0x78] sm:$0xff]  ;;  %v260_v25 = vld [vmem:[%s6572_s6 + $0x60] sm:$0xff]  ;;  %v261_v27 = vld [vmem:[%s6572_s6 + $0x68] sm:$0xff]  ;;  %vm1691_vm6 = vcmask 498688   ;;  %s6451_s28 = smov 120  }
  0x32   : > { %199 = vst.msk [vmem:[#allocation2 + $0x28] sm:$0x3] %vm195_vm1, %v10078_v0  ;;  %v264_v30 = vld [vmem:[%s6572_s6 + $0x80] sm:$0xff]  ;;  %v265_v32 = vld [vmem:[%s6572_s6 + $0x88] sm:$0xff]  ;;  %v266_v40 = vld [vmem:[%s6572_s6 + $0x90] sm:$0xff]  ;;  %vm1757_vm7 = vcmask 482304  }
  0x33   : > { %200 = vst.msk [vmem:[#allocation2 + $0x30] sm:$0xff] %vm192_vm0, %v10078_v0  ;;  %v268_v35 = vld [vmem:[%s6572_s6 + $0xa0] sm:$0xff]  ;;  %v269_v37 = vld [vmem:[%s6572_s6 + $0xa8] sm:$0xff]  ;;  %v267_v42 = vld [vmem:[%s6572_s6 + $0x98] sm:$0xff]  ;;  %vm1790_vm8 = vcmask 998400   ;;  %vm1823_vm9 = vcmask 465920  }
  0x34   : > { %201 = vst.msk [vmem:[#allocation2 + $0x38] sm:$0xff] %vm192_vm0, %v10078_v0  ;;  %v270_v44 = vld [vmem:[%s6572_s6 + $0xb0] sm:$0xff]  ;;  %v271_v47 = vld [vmem:[%s6572_s6 + $0xb8] sm:$0xff]  ;;  %v272_v53 = vld [vmem:[%s6572_s6 + $0xc0] sm:$0xff]  ;;  %vm1856_vm10 = vcmask 982016   ;;  %vm2253_vm11 = vcmask 449536  }
  0x35   : > { %v345_v1 = vld [vmem:[#allocation2 + $0x1] sm:$0xff]  ;;  %202 = vst.msk [vmem:[#allocation2 + $0x40] sm:$0x3] %vm195_vm1, %v10078_v0  ;;  %v274_v48 = vld [vmem:[%s6572_s6 + $0xd0] sm:$0xff]  ;;  %v275_v51 = vld [vmem:[%s6572_s6 + $0xd8] sm:$0xff]  ;;  %vm2786_vm12 = vcmask 130048  }
  0x36   : > { %v346_v2 = vld [vmem:[#allocation2 + $0x9] sm:$0xff]  ;;  %203 = vst.msk [vmem:[#allocation2 + $0x48] sm:$0xff] %vm192_vm0, %v10078_v0  ;;  %v276_v58 = vld [vmem:[%s6572_s6 + $0xe0] sm:$0xff]  ;;  %vm2789_vm13 = vcmask 123904   ;;  %s6452_s17 = smov 16   ;;  %s6455_s27 = smov 48  }
  0x37   : > { %v5132_v3 = vpack.i.bf16 %v346_v2, %v345_v1  ;;  %204 = vst.msk [vmem:[#allocation2 + $0x50] sm:$0xff] %vm192_vm0, %v10078_v0  ;;  %v273_v56 = vld [vmem:[%s6572_s6 + $0xc8] sm:$0xff]  ;;  %s6456_s26 = smov 80   ;;  %vm4092_vm14 = vcmask 261120   ;;  %vm4125_vm15 = vcmask 392192   ;;  %s6392_s9 = scalar_lea.hbm %s10077_s3, 1024 }
  0x38   : > { %205 = vst.msk [vmem:[#allocation2 + $0x58] sm:$0x3] %vm195_vm1, %v10078_v0  ;;  %v277_v59 = vld [vmem:[%s6572_s6 + $0xe8] sm:$0xff] }
  0x39   : > { %5133 = vrot.lane.b32.xlu0 %v5132_v3, %s6443_s23  ;;  %206 = vst.msk [vmem:[#allocation2 + $0x60] sm:$0xff] %vm192_vm0, %v10078_v0 }
  0x3a   : > { %207 = vst.msk [vmem:[#allocation2 + $0x68] sm:$0xff] %vm192_vm0, %v10078_v0 }
  0x3b   : > { %208 = vst.msk [vmem:[#allocation2 + $0x70] sm:$0x3] %vm195_vm1, %v10078_v0 }
  0x3c   : > { %209 = vst.msk [vmem:[#allocation2 + $0x78] sm:$0xff] %vm192_vm0, %v10078_v0 }
  0x3d   : > { %210 = vst.msk [vmem:[#allocation2 + $0x80] sm:$0xff] %vm192_vm0, %v10078_v0 }
  0x3e   : > { %211 = vst.msk [vmem:[#allocation2 + $0x88] sm:$0x3] %vm195_vm1, %v10078_v0 }
  0x3f   : > { %212 = vst.msk [vmem:[#allocation2 + $0x90] sm:$0xff] %vm192_vm0, %v10078_v0 }
  0x40   : > { %213 = vst.msk [vmem:[#allocation2 + $0x98] sm:$0xff] %vm192_vm0, %v10078_v0 }
  0x41   : > { %214 = vst.msk [vmem:[#allocation2 + $0xa0] sm:$0x3] %vm195_vm1, %v10078_v0 }
  0x42   : > { %215 = vst.msk [vmem:[#allocation2 + $0xa8] sm:$0xff] %vm192_vm0, %v10078_v0 }
  0x43   : > { %216 = vst.msk [vmem:[#allocation2 + $0xb0] sm:$0xff] %vm192_vm0, %v10078_v0 }
  0x44   : > { %217 = vst.msk [vmem:[#allocation2 + $0xb8] sm:$0x3] %vm195_vm1, %v10078_v0 }
  0x45   : > { %218 = vst.msk [vmem:[#allocation2 + $0xc0] sm:$0xff] %vm192_vm0, %v10078_v0 }
  0x46   : > { %219 = vst.msk [vmem:[#allocation2 + $0xc8] sm:$0xff] %vm192_vm0, %v10078_v0 }
  0x47   : > { %220 = vst.msk [vmem:[#allocation2 + $0xd0] sm:$0x3] %vm195_vm1, %v10078_v0 }
  0x48   : > { %221 = vst.msk [vmem:[#allocation2 + $0xd8] sm:$0xff] %vm192_vm0, %v10078_v0 }
  0x49   : > { %222 = vst.msk [vmem:[#allocation2 + $0xe0] sm:$0xff] %vm192_vm0, %v10078_v0 }
  0x4a   : > { %223 = vst.msk [vmem:[#allocation2 + $0xe8] sm:$0x3] %vm195_vm1, %v10078_v0 }
  0x4b   : > { %224 = vst.msk [vmem:[#allocation2 + $0xf0] sm:$0xff] %vm192_vm0, %v10078_v0 }
  0x4c   : > { %225 = vst.msk [vmem:[#allocation2 + $0xf8] sm:$0xff] %vm192_vm0, %v10078_v0 }
  0x4d   : > { %226 = vst.msk [vmem:[#allocation2 + $0x100] sm:$0x3] %vm195_vm1, %v10078_v0 }
  0x4e   : > { %227 = vst.msk [vmem:[#allocation2 + $0x108] sm:$0xff] %vm192_vm0, %v10078_v0 }
  0x4f   : > { %228 = vst.msk [vmem:[#allocation2 + $0x110] sm:$0xff] %vm192_vm0, %v10078_v0 }
  0x50   : > { %229 = vst.msk [vmem:[#allocation2 + $0x118] sm:$0x3] %vm195_vm1, %v10078_v0 }
  0x51   : > { %230 = vst.msk [vmem:[#allocation2 + $0x120] sm:$0xff] %vm192_vm0, %v10078_v0 }
  0x52   : > { %231 = vst.msk [vmem:[#allocation2 + $0x128] sm:$0xff] %vm192_vm0, %v10078_v0 }
  0x53   : > { %232 = vst.msk [vmem:[#allocation2 + $0x130] sm:$0x3] %vm195_vm1, %v10078_v0 }
  0x54   : > { %233 = vst.msk [vmem:[#allocation2 + $0x138] sm:$0xff] %vm192_vm0, %v10078_v0 }
  0x55   : > { %234 = vst.msk [vmem:[#allocation2 + $0x140] sm:$0xff] %vm192_vm0, %v10078_v0 }
  0x56   : > { %235 = vst.msk [vmem:[#allocation2 + $0x148] sm:$0x3] %vm195_vm1, %v10078_v0 }
  0x57   : > { %236 = vst.msk [vmem:[#allocation2 + $0x150] sm:$0xff] %vm192_vm0, %v10078_v0 }
  0x58   : > { %237 = vst.msk [vmem:[#allocation2 + $0x158] sm:$0xff] %vm192_vm0, %v10078_v0 }
  0x59   : > { %238 = vst.msk [vmem:[#allocation2 + $0x160] sm:$0x3] %vm195_vm1, %v10078_v0 }
  0x5a   : > { %239 = vst.msk [vmem:[#allocation2 + $0x168] sm:$0xff] %vm192_vm0, %v10078_v0 }
  0x5b   : > { %240 = vst.msk [vmem:[#allocation2 + $0x170] sm:$0xff] %vm192_vm0, %v10078_v0 }
  0x5c   : > { %241 = vst.msk [vmem:[#allocation2 + $0x178] sm:$0x3] %vm195_vm1, %v10078_v0 }
  0x5d   : > { %242 = vst.msk [vmem:[#allocation2 + $0x180] sm:$0xff] %vm192_vm0, %v10078_v0 }
  0x5e   : > { %243 = vst.msk [vmem:[#allocation2 + $0x188] sm:$0xff] %vm192_vm0, %v10078_v0 }
  0x5f   : > { %244 = vst.msk [vmem:[#allocation2 + $0x190] sm:$0x3] %vm195_vm1, %v10078_v0 }
  0x60   : > { %245 = vst.msk [vmem:[#allocation2 + $0x198] sm:$0xff] %vm192_vm0, %v10078_v0 }
  0x61   : > { %246 = vst.msk [vmem:[#allocation2 + $0x1a0] sm:$0xff] %vm192_vm0, %v10078_v0 }
  0x62   : > { %247 = vst.msk [vmem:[#allocation2 + $0x1a8] sm:$0x3] %vm195_vm1, %v10078_v0  ;;  %vm4191_vm1 = vcmask 654336  }
  0x63   : > { %287 = vst.msk [vmem:[#allocation2 + $0x61] sm:$0xff] %vm192_vm0, %v254_v4 }
  0x64   : > { %288 = vst.msk [vmem:[#allocation2 + $0x69] sm:$0xff] %vm192_vm0, %v255_v5 }
  0x65   : > { %283 = vst.msk [vmem:[#allocation2 + $0x31] sm:$0xff] %vm192_vm0, %v250_v6 }
  0x66   : > { %284 = vst.msk [vmem:[#allocation2 + $0x39] sm:$0xff] %vm192_vm0, %v251_v7 }
  0x67   : > { %281 = vst.msk [vmem:[#allocation2 + $0x19] sm:$0xff] %vm192_vm0, %v248_v8 }
  0x68   : > { %282 = vst.msk [vmem:[#allocation2 + $0x21] sm:$0xff] %vm192_vm0, %v249_v9 }
  0x69   : > { %289 = vst.msk [vmem:[#allocation2 + $0x79] sm:$0xff] %vm192_vm0, %v256_v10 }
  0x6a   : > { %v353_v14 = vld [vmem:[#allocation2 + $0x61] sm:$0xff]  ;;  %290 = vst.msk [vmem:[#allocation2 + $0x81] sm:$0xff] %vm192_vm0, %v257_v11 }
  0x6b   : > { %v354_v16 = vld [vmem:[#allocation2 + $0x69] sm:$0xff]  ;;  %285 = vst.msk [vmem:[#allocation2 + $0x49] sm:$0xff] %vm192_vm0, %v252_v12 }
  0x6c   : > { %v6708_v18 = vpack.i.bf16 %v354_v16, %v353_v14  ;;  %v349_v19 = vld [vmem:[#allocation2 + $0x31] sm:$0xff]  ;;  %286 = vst.msk [vmem:[#allocation2 + $0x51] sm:$0xff] %vm192_vm0, %v253_v13 }
  0x6d   : > { %v350_v21 = vld [vmem:[#allocation2 + $0x39] sm:$0xff]  ;;  %291 = vst.msk [vmem:[#allocation2 + $0x91] sm:$0xff] %vm192_vm0, %v258_v15 }
  0x6e   : > { %5153 = vrot.lane.b32.xlu2 %v6708_v18, %s6443_s23  ;;  %v6716_v23 = vpack.i.bf16 %v350_v21, %v349_v19  ;;  %v347_v24 = vld [vmem:[#allocation2 + $0x19] sm:$0xff]  ;;  %292 = vst.msk [vmem:[#allocation2 + $0x99] sm:$0xff] %vm192_vm0, %v259_v17  ;;  %v377_v19 = vld [vmem:[#allocation2 + $0x2] sm:$0xff] }
  0x6f   : > { %v348_v26 = vld [vmem:[#allocation2 + $0x21] sm:$0xff]  ;;  %295 = vst.msk [vmem:[#allocation2 + $0xc1] sm:$0xff] %vm192_vm0, %v262_v20  ;;  %v378_v20 = vld [vmem:[#allocation2 + $0xa] sm:$0xff] }
  0x70   : > { %5143 = vrot.lane.b32.xlu1 %v6716_v23, %s6443_s23  ;;  %v6724_v28 = vpack.i.bf16 %v348_v26, %v347_v24  ;;  %v355_v29 = vld [vmem:[#allocation2 + $0x79] sm:$0xff]  ;;  %296 = vst.msk [vmem:[#allocation2 + $0xc9] sm:$0xff] %vm192_vm0, %v263_v22  ;;  %v380_v17 = vld [vmem:[#allocation2 + $0x22] sm:$0xff] }
  0x71   : > { %v356_v31 = vld [vmem:[#allocation2 + $0x81] sm:$0xff]  ;;  %293 = vst.msk [vmem:[#allocation2 + $0xa9] sm:$0xff] %vm192_vm0, %v260_v25  ;;  %v381_v22 = vld [vmem:[#allocation2 + $0x32] sm:$0xff]  ;;  %v5212_v25 = vpack.i.bf16 %v378_v20, %v377_v19 }
  0x72   : > { %5138 = vrot.lane.b32.xlu0 %v6724_v28, %s6443_s23  ;;  %v6732_v33 = vpack.i.bf16 %v356_v31, %v355_v29  ;;  %v351_v34 = vld [vmem:[#allocation2 + $0x49] sm:$0xff]  ;;  %294 = vst.msk [vmem:[#allocation2 + $0xb1] sm:$0xff] %vm192_vm0, %v261_v27  ;;  %v379_v16 = vld [vmem:[#allocation2 + $0x1a] sm:$0xff] }
  0x73   : > { %v352_v36 = vld [vmem:[#allocation2 + $0x51] sm:$0xff]  ;;  %297 = vst.msk [vmem:[#allocation2 + $0xd9] sm:$0xff] %vm192_vm0, %v264_v30  ;;  %v6807_v21 = vpack.i.bf16 %v380_v17, %v379_v16  ;;  %v382_v24 = vld [vmem:[#allocation2 + $0x3a] sm:$0xff]  ;;  %v385_v27 = vld [vmem:[#allocation2 + $0x62] sm:$0xff] }
  0x74   : > { %v6738_v38 = vpack.i.bf16 %v352_v36, %v351_v34  ;;  %v357_v39 = vld [vmem:[#allocation2 + $0x91] sm:$0xff]  ;;  %298 = vst.msk [vmem:[#allocation2 + $0xe1] sm:$0xff] %vm192_vm0, %v265_v32  ;;  %v6811_v26 = vpack.i.bf16 %v382_v24, %v381_v22  ;;  %v387_v34 = vld [vmem:[#allocation2 + $0x7a] sm:$0xff] }
  0x75   : > { %v358_v41 = vld [vmem:[#allocation2 + $0x99] sm:$0xff]  ;;  %301 = vst.msk [vmem:[#allocation2 + $0x109] sm:$0xff] %vm192_vm0, %v268_v35  ;;  %v386_v29 = vld [vmem:[#allocation2 + $0x6a] sm:$0xff]  ;;  %v388_v35 = vld [vmem:[#allocation2 + $0x82] sm:$0xff] }
  0x76   : > { %5158 = vrot.lane.b32.xlu2 %v6732_v33, %s6443_s23  ;;  %v6746_v43 = vpack.i.bf16 %v358_v41, %v357_v39  ;;  %302 = vst.msk [vmem:[#allocation2 + $0x111] sm:$0xff] %vm192_vm0, %v269_v37  ;;  %v361_v45 = vld [vmem:[#allocation2 + $0xc1] sm:$0xff]  ;;  %v383_v30 = vld [vmem:[#allocation2 + $0x4a] sm:$0xff]  ;;  %v384_v31 = vld [vmem:[#allocation2 + $0x52] sm:$0xff]  ;;  %v6816_v32 = vpack.i.bf16 %v386_v29, %v385_v27  ;;  %v6822_v37 = vpack.i.bf16 %v388_v35, %v387_v34 }
  0x77   : > { %v362_v46 = vld [vmem:[#allocation2 + $0xc9] sm:$0xff]  ;;  %299 = vst.msk [vmem:[#allocation2 + $0xf1] sm:$0xff] %vm192_vm0, %v266_v40  ;;  %v6818_v36 = vpack.i.bf16 %v384_v31, %v383_v30  ;;  %v389_v41 = vld [vmem:[#allocation2 + $0x92] sm:$0xff]  ;;  %v6882_v27 = vld [vmem:[#allocation2 + $0x60] sm:$0xff] }
  0x78   : > { %5148 = vrot.lane.b32.xlu1 %v6738_v38, %s6443_s23  ;;  %300 = vst.msk [vmem:[#allocation2 + $0xf9] sm:$0xff] %vm192_vm0, %v267_v42  ;;  %v359_v49 = vld [vmem:[#allocation2 + $0xa9] sm:$0xff]  ;;  %v6760_v52 = vpack.i.bf16 %v362_v46, %v361_v45  ;;  %v390_v42 = vld [vmem:[#allocation2 + $0x9a] sm:$0xff] }
  0x79   : > { %v360_v50 = vld [vmem:[#allocation2 + $0xb1] sm:$0xff]  ;;  %303 = vst.msk [vmem:[#allocation2 + $0x121] sm:$0xff] %vm192_vm0, %v270_v44  ;;  %v393_v45 = vld [vmem:[#allocation2 + $0xc2] sm:$0xff] }
  0x7a   : > { %5163 = vrot.lane.b32.xlu0 %v6746_v43, %s6443_s23  ;;  %304 = vst.msk [vmem:[#allocation2 + $0x129] sm:$0xff] %vm192_vm0, %v271_v47  ;;  %v363_v54 = vld [vmem:[#allocation2 + $0xd9] sm:$0xff]  ;;  %v6766_v57 = vpack.i.bf16 %v360_v50, %v359_v49  ;;  %v391_v39 = vld [vmem:[#allocation2 + $0xaa] sm:$0xff]  ;;  %v6830_v47 = vpack.i.bf16 %v390_v42, %v389_v41 }
  0x7b   : > { %v364_v55 = vld [vmem:[#allocation2 + $0xe1] sm:$0xff]  ;;  %307 = vst.msk [vmem:[#allocation2 + $0x151] sm:$0xff] %vm192_vm0, %v274_v48  ;;  %v392_v40 = vld [vmem:[#allocation2 + $0xb2] sm:$0xff]  ;;  %v394_v46 = vld [vmem:[#allocation2 + $0xca] sm:$0xff] }
  0x7c   : > { %308 = vst.msk [vmem:[#allocation2 + $0x159] sm:$0xff] %vm192_vm0, %v275_v51  ;;  %v6774_v60 = vpack.i.bf16 %v364_v55, %v363_v54  ;;  %v367_v61 = vld [vmem:[#allocation2 + $0x109] sm:$0xff]  ;;  %v6828_v44 = vpack.i.bf16 %v392_v40, %v391_v39  ;;  %v6834_v48 = vpack.i.bf16 %v394_v46, %v393_v45  ;;  %v395_v51 = vld [vmem:[#allocation2 + $0xda] sm:$0xff] }
  0x7d   : > { %305 = vst.msk [vmem:[#allocation2 + $0x139] sm:$0xff] %vm192_vm0, %v272_v53  ;;  %v368_v62 = vld [vmem:[#allocation2 + $0x111] sm:$0xff]  ;;  %v396_v53 = vld [vmem:[#allocation2 + $0xe2] sm:$0xff] }
  0x7e   : > { %5173 = vrot.lane.b32.xlu2 %v6760_v52, %s6443_s23  ;;  %306 = vst.msk [vmem:[#allocation2 + $0x141] sm:$0xff] %vm192_vm0, %v273_v56  ;;  %v365_v63 = vld [vmem:[#allocation2 + $0xf1] sm:$0xff]  ;;  %v6783_v2 = vpack.i.bf16 %v368_v62, %v367_v61  ;;  %v6884_v29 = vld [vmem:[#allocation2 + $0x68] sm:$0xff]  ;;  %v418_v40 = vld [vmem:[#allocation2 + $0x80] sm:$0xff] }
  0x7f   : > { %309 = vst.msk [vmem:[#allocation2 + $0x169] sm:$0xff] %vm192_vm0, %v276_v58  ;;  %v366_v1 = vld [vmem:[#allocation2 + $0xf9] sm:$0xff]  ;;  %v399_v55 = vld [vmem:[#allocation2 + $0x10a] sm:$0xff]  ;;  %v6842_v58 = vpack.i.bf16 %v396_v53, %v395_v51  ;;  %v6899_v35 = vpack.i.bf16 %v6884_v29, %v6882_v27 }
  0x80   : > { %5168 = vrot.lane.b32.xlu1 %v6766_v57, %s6443_s23  ;;  %310 = vst.msk [vmem:[#allocation2 + $0x171] sm:$0xff] %vm192_vm0, %v277_v59  ;;  %v369_v3 = vld [vmem:[#allocation2 + $0x121] sm:$0xff]  ;;  %v6785_v5 = vpack.i.bf16 %v366_v1, %v365_v63  ;;  %v397_v49 = vld [vmem:[#allocation2 + $0xf2] sm:$0xff] }
  0x81   : > { %v370_v4 = vld [vmem:[#allocation2 + $0x129] sm:$0xff]  ;;  %v398_v50 = vld [vmem:[#allocation2 + $0xfa] sm:$0xff]  ;;  %v400_v56 = vld [vmem:[#allocation2 + $0x112] sm:$0xff] }
  0x82   : > { %5178 = vrot.lane.b32.xlu0 %v6774_v60, %s6443_s23  ;;  %v6789_v6 = vpack.i.bf16 %v370_v4, %v369_v3  ;;  %v373_v7 = vld [vmem:[#allocation2 + $0x151] sm:$0xff]  ;;  %v6840_v54 = vpack.i.bf16 %v398_v50, %v397_v49  ;;  %v6846_v59 = vpack.i.bf16 %v400_v56, %v399_v55  ;;  %v401_v63 = vld [vmem:[#allocation2 + $0x122] sm:$0xff] }
  0x83   : > { %v374_v8 = vld [vmem:[#allocation2 + $0x159] sm:$0xff]  ;;  %v402_v1 = vld [vmem:[#allocation2 + $0x12a] sm:$0xff] }
  0x84   : > { %v371_v9 = vld [vmem:[#allocation2 + $0x139] sm:$0xff]  ;;  %v6795_v11 = vpack.i.bf16 %v374_v8, %v373_v7  ;;  %v6854_v8 = vpack.i.bf16 %v402_v1, %v401_v63  ;;  %v6870_v19 = vld [vmem:[#allocation2 + $0x30] sm:$0xff]  ;;  %v6891_v31 = vld [vmem:[#allocation2 + $0x48] sm:$0xff] }
  0x85   : > { %v372_v10 = vld [vmem:[#allocation2 + $0x141] sm:$0xff]  ;;  %v405_v4 = vld [vmem:[#allocation2 + $0x152] sm:$0xff] }
  0x86   : > { %5188 = vrot.lane.b32.xlu2 %v6783_v2, %s6443_s23  ;;  %v375_v12 = vld [vmem:[#allocation2 + $0x169] sm:$0xff]  ;;  %v6797_v14 = vpack.i.bf16 %v372_v10, %v371_v9  ;;  %v403_v61 = vld [vmem:[#allocation2 + $0x13a] sm:$0xff] }
  0x87   : > { %v376_v13 = vld [vmem:[#allocation2 + $0x171] sm:$0xff]  ;;  %v404_v62 = vld [vmem:[#allocation2 + $0x142] sm:$0xff]  ;;  %v406_v7 = vld [vmem:[#allocation2 + $0x15a] sm:$0xff] }
  0x88   : > { %5183 = vrot.lane.b32.xlu1 %v6785_v5, %s6443_s23  ;;  %v6801_v15 = vpack.i.bf16 %v376_v13, %v375_v12  ;;  %v6852_v3 = vpack.i.bf16 %v404_v62, %v403_v61  ;;  %v6858_v9 = vpack.i.bf16 %v406_v7, %v405_v4  ;;  %v6860_v10 = vld [vmem:[#allocation2 + $0x18] sm:$0xff]  ;;  %v6862_v12 = vld [vmem:[#allocation2 + $0x20] sm:$0xff]  ;;  %v407_v13 = vld [vmem:[#allocation2 + $0x16a] sm:$0xff] }
  0x89   : > { %v408_v16 = vld [vmem:[#allocation2 + $0x172] sm:$0xff]  ;;  %v5292_v17 = vpack.i.bf16 %v6862_v12, %v6860_v10  ;;  %v421_v45 = vld [vmem:[#allocation2 + $0xa8] sm:$0xff]  ;;  %v423_v55 = vld [vmem:[#allocation2 + $0xc0] sm:$0xff] }
  0x8a   : > { %5193 = vrot.lane.b32.xlu0 %v6789_v6, %s6443_s23  ;;  %v6872_v20 = vld [vmem:[#allocation2 + $0x38] sm:$0xff]  ;;  %v6874_v22 = vpack.i.bf16 %v408_v16, %v407_v13  ;;  %v6893_v34 = vld [vmem:[#allocation2 + $0x50] sm:$0xff]  ;;  %v424_v56 = vld [vmem:[#allocation2 + $0xc8] sm:$0xff] }
  0x8b   : > { %v6879_v24 = vpack.i.bf16 %v6872_v20, %v6870_v19  ;;  %v279_v30 = vld [vmem:[%s6572_s6 + $0xf8] sm:$0xff]  ;;  %v6903_v41 = vpack.i.bf16 %v6893_v34, %v6891_v31  ;;  %v422_v46 = vld [vmem:[#allocation2 + $0xb0] sm:$0xff]  ;;  %v6921_v62 = vpack.i.bf16 %v424_v56, %v423_v55  ;;  %v426_v16 = vld [vmem:[#allocation2 + $0xe0] sm:$0xff] }
  0x8c   : > { %312 = vst.msk [vmem:[#allocation2 + $0x189] sm:$0xff] %vm192_vm0, %v279_v30  ;;  %v417_v39 = vld [vmem:[#allocation2 + $0x78] sm:$0xff]  ;;  %v419_v50 = vld [vmem:[#allocation2 + $0x90] sm:$0xff]  ;;  %v6915_v53 = vpack.i.bf16 %v422_v46, %v421_v45  ;;  %v5001_v55 = vld [vmem:[%s10075_s1 + $0x28] sm:$0xff] }
  0x8d   : > { %v6907_v42 = vpack.i.bf16 %v418_v40, %v417_v39  ;;  %v420_v51 = vld [vmem:[#allocation2 + $0x98] sm:$0xff]  ;;  %v427_v63 = vld [vmem:[#allocation2 + $0xf0] sm:$0xff]  ;;  %v6954_v56 = vld [vmem:[#allocation2 + $0x120] sm:$0xff] }
  0x8e   : > { %5203 = vrot.lane.b32.xlu2 %v6795_v11, %s6443_s23  ;;  %v6917_v61 = vpack.i.bf16 %v420_v51, %v419_v50  ;;  %v428_v1 = vld [vmem:[#allocation2 + $0xf8] sm:$0xff]  ;;  %v430_v30 = vld [vmem:[#allocation2 + $0x110] sm:$0xff]  ;;  %v6945_v50 = vld [vmem:[#allocation2 + $0x140] sm:$0xff] }
  0x8f   : > { %v5003_v7 = vld [vmem:[%s10075_s1 + $0x38] sm:$0xff]  ;;  %v5002_v40 = vld [vmem:[%s10075_s1 + $0x30] sm:$0xff] }
  0x90   : > { %5198 = vrot.lane.b32.xlu1 %v6797_v14, %s6443_s23  ;;  %v425_v13 = vld [vmem:[#allocation2 + $0xd8] sm:$0xff]  ;;  %2309 = vmatpush.bf16.msra.mxu0 %v5003_v7 }
  0x91   : > { %5041 = vmatpush.bf16.msra.mxu3 %v5003_v7  ;;  %v6934_v39 = vpack.i.bf16 %v426_v16, %v425_v13  ;;  %v6943_v46 = vld [vmem:[#allocation2 + $0x138] sm:$0xff]  ;;  %v6966_v13 = vld [vmem:[#allocation2 + $0x150] sm:$0xff] }
  0x92   : > { %5208 = vrot.lane.b32.xlu0 %v6801_v15, %s6443_s23  ;;  %v6964_v7 = vpack.i.bf16 %v6945_v50, %v6943_v46  ;;  %v6968_v16 = vld [vmem:[#allocation2 + $0x158] sm:$0xff]  ;;  %s6450_s23 = smov 57  }
  0x93   : > { %10203 = vst [vmem:[#allocation12_spill] sm:$0xff] %v6934_v39 }
  0x94   : > { %2310 = vmatpush.bf16.msra.mxu0 %v5002_v40  ;;  %10206 = vst [vmem:[#allocation15_spill] sm:$0xff] %v6964_v7 }
  0x95   : > { %5042 = vmatpush.bf16.msra.mxu3 %v5002_v40  ;;  %v6981_v40 = vpack.i.bf16 %v6968_v16, %v6966_v13 }
  0x96   : > { %5218 = vrot.lane.b32.xlu2 %v6807_v21, %s6444_s5 }
  0x97   : > { %10208 = vst [vmem:[#allocation17_spill] sm:$0xff] %v6981_v40 }
  0x98   : > { %5213 = vrot.lane.b32.xlu1 %v5212_v25, %s6444_s5  ;;  %v278_v25 = vld [vmem:[%s6572_s6 + $0xf0] sm:$0xff]  ;;  %2311 = vmatpush.bf16.msra.mxu0 %v5001_v55  ;;  %s4685_s6 = scalar_lea.sflag [#allocation6], %s6566_s29 }
  0x99   : > { %311 = vst.msk [vmem:[#allocation2 + $0x181] sm:$0xff] %vm192_vm0, %v278_v25  ;;  %v429_v25 = vld [vmem:[#allocation2 + $0x108] sm:$0xff]  ;;  %5043 = vmatpush.bf16.msra.mxu3 %v5001_v55 }
  0x9a   : > { %5223 = vrot.lane.b32.xlu0 %v6811_v26, %s6444_s5  ;;  %v6941_v45 = vpack.i.bf16 %v430_v30, %v429_v25  ;;  %v5000_v30 = vld [vmem:[%s10075_s1 + $0x20] sm:$0xff] }
  0x9c   : > { %10204 = vst [vmem:[#allocation13_spill] sm:$0xff] %v6941_v45  ;;  %2312 = vmatpush.bf16.msra.mxu0 %v5000_v30 }
  0x9d   : > { %5044 = vmatpush.bf16.msra.mxu3 %v5000_v30 }
  0x9e   : > { %5233 = vrot.lane.b32.xlu2 %v6816_v32, %s6444_s5 }
  0xa0   : > { %5228 = vrot.lane.b32.xlu1 %v6818_v36, %s6444_s5  ;;  %v439_v0 = vld [vmem:[#allocation2 + $0x180] sm:$0xff] }
  0xa2   : > { %5238 = vrot.lane.b32.xlu0 %v6822_v37, %s6444_s5 }
  0xa6   : > { %5248 = vrot.lane.b32.xlu2 %v6828_v44, %s6444_s5 }
  0xa8   : > { %5243 = vrot.lane.b32.xlu1 %v6830_v47, %s6444_s5 }
  0xaa   : > { %5253 = vrot.lane.b32.xlu0 %v6834_v48, %s6444_s5 }
  0xae   : > { %5263 = vrot.lane.b32.xlu2 %v6840_v54, %s6444_s5 }
  0xb0   : > { %5258 = vrot.lane.b32.xlu1 %v6842_v58, %s6444_s5 }
  0xb2   : > { %5268 = vrot.lane.b32.xlu0 %v6846_v59, %s6444_s5 }
  0xb6   : > { %5278 = vrot.lane.b32.xlu2 %v6852_v3, %s6444_s5 }
  0xb8   : > { %5273 = vrot.lane.b32.xlu1 %v6854_v8, %s6444_s5 }
  0xba   : > { %5283 = vrot.lane.b32.xlu0 %v6858_v9, %s6444_s5 }
  0xbe   : > { %5293 = vrot.lane.b32.xlu2 %v5292_v17, %s6445_s7  ;;  %v6932_v17 = vpack.i.bf16 %v428_v1, %v427_v63  ;;  %v6956_v63 = vld [vmem:[#allocation2 + $0x128] sm:$0xff]  ;;  %v6960_v1 = vpop.permute.xlu0 %5133 }
  0xbf   : > { %v6972_v25 = vpack.i.bf16 %v6956_v63, %v6954_v56 }
  0xc0   : > { %5288 = vrot.lane.b32.xlu1 %v6874_v22, %s6444_s5  ;;  %10202 = vst [vmem:[#allocation11_spill] sm:$0xff] %v6932_v17  ;;  %s6446_s5 = smov 124  }
  0xc1   : > { %10207 = vst [vmem:[#allocation16_spill] sm:$0xff] %v6972_v25 }
  0xc2   : > { %5298 = vrot.lane.b32.xlu0 %v6879_v24, %s6445_s7 }
  0xc6   : > { %5308 = vrot.lane.b32.xlu2 %v6899_v35, %s6445_s7 }
  0xc8   : > { %5303 = vrot.lane.b32.xlu1 %v6903_v41, %s6445_s7  ;;  %v6911_v49 = vpop.permute.xlu2 %5153 }
  0xca   : > { %5313 = vrot.lane.b32.xlu0 %v6907_v42, %s6445_s7 }
  0xce   : > { %5323 = vrot.lane.b32.xlu2 %v6915_v53, %s6445_s7 }
  0xd0   : > { %5318 = vrot.lane.b32.xlu1 %v6917_v61, %s6445_s7  ;;  %v6925_v4 = vpop.permute.xlu2 %5158 }
  0xd1   : > { %10201 = vst [vmem:[#allocation10_spill] sm:$0xff] %v6925_v4 }
  0xd2   : > { %5328 = vrot.lane.b32.xlu0 %v6921_v62, %s6445_s7 }
  0xd6   : > { %5338 = vrot.lane.b32.xlu2 %v6932_v17, %s6445_s7  ;;  %v4999_v17 = vld [vmem:[%s10075_s1 + $0x18] sm:$0xff] }
  0xd7   : > { %2313 = vmatpush.bf16.msra.mxu0 %v4999_v17  ;;  %5045 = vmatpush.bf16.msra.mxu3 %v4999_v17  ;;  %v4997_v17 = vld [vmem:[%s10075_s1 + $0x8] sm:$0xff] }
  0xd8   : > { %5333 = vrot.lane.b32.xlu1 %v6934_v39, %s6445_s7  ;;  %v6949_v51 = vpop.permute.xlu2 %5173 }
  0xd9   : > { %10205 = vst [vmem:[#allocation14_spill] sm:$0xff] %v6949_v51  ;;  %v440_v51 = vld [vmem:[#allocation2 + $0x188] sm:$0xff] }
  0xda   : > { %5343 = vrot.lane.b32.xlu0 %v6941_v45, %s6445_s7  ;;  %v6990_v45 = vld [vmem:[#allocation2 + $0x168] sm:$0xff]  ;;  %v5367_v39 = vpack.i.bf16 %v440_v51, %v439_v0 }
  0xde   : > { %5353 = vrot.lane.b32.xlu2 %v6964_v7, %s6445_s7  ;;  %v6992_v7 = vld [vmem:[#allocation2 + $0x170] sm:$0xff] }
  0xe0   : > { %5348 = vrot.lane.b32.xlu1 %v6972_v25, %s6445_s7  ;;  %v6985_v55 = vpop.permute.xlu2 %5188  ;;  %v4998_v25 = vld [vmem:[%s10075_s1 + $0x10] sm:$0xff] }
  0xe1   : > { %10209 = vst [vmem:[#allocation18_spill] sm:$0xff] %v6985_v55  ;;  %v7002_v55 = vpack.i.bf16 %v6992_v7, %v6990_v45  ;;  %2314 = vmatpush.bf16.msra.mxu0 %v4998_v25  ;;  %5046 = vmatpush.bf16.msra.mxu3 %v4998_v25  ;;  %v4996_v25 = vld [vmem:[%s10075_s1] sm:$0xff] }
  0xe2   : > { %5358 = vrot.lane.b32.xlu0 %v6981_v40, %s6445_s7  ;;  %v6996_v4 = vpop.permute.xlu1 %5143  ;;  %v5155_v40 = vunpack.i.l.bf16 %v6911_v49 }
  0xe3   : > { %10210 = vst [vmem:[#allocation19_spill] sm:$0xff] %v7002_v55 }
  0xe4   : > { %v6998_v30 = vpop.permute.xlu0 %5138 }
  0xe5   : > { %2315 = vmatpush.bf16.msra.mxu0 %v4997_v17  ;;  %5047 = vmatpush.bf16.msra.mxu3 %v4997_v17 }
  0xe6   : > { %5368 = vrot.lane.b32.xlu2 %v5367_v39, %s6445_s7 }
  0xe8   : > { %5363 = vrot.lane.b32.xlu1 %v7002_v55, %s6445_s7  ;;  %v7010_v0 = vpop.permute.xlu2 %5203  ;;  %s6447_s7 = smov 59  }
  0xe9   : > { %2316 = vmatpush.bf16.msra.mxu0 %v4996_v25  ;;  %5048 = vmatpush.bf16.msra.mxu3 %v4996_v25 }
  0xea   : > { %5373 = vrot.lane.b32.xlu0 %v6724_v28, %s6446_s5  ;;  %v7017_v51 = vpop.permute.xlu1 %5148 }
  0xec   : > { %v7019_v39 = vpop.permute.xlu0 %5163 }
  0xed   : > { %10211 = vst [vmem:[#allocation20_spill] sm:$0xff] %v7019_v39  ;;  %v5156_v39 = vunpack.i.h.bf16 %v6911_v49  ;;  %v1634_v49 = vsel %vm192_vm0, %v6882_v27, %v5155_v40 }
  0xee   : > { %5383 = vrot.lane.b32.xlu2 %v6738_v38, %s6446_s5 }
  0xf0   : > { %5378 = vrot.lane.b32.xlu1 %v6716_v23, %s6446_s5  ;;  %v7028_v55 = vpop.permute.xlu2 %5218 }
  0xf2   : > { %5388 = vrot.lane.b32.xlu0 %v6708_v18, %s6446_s5  ;;  %v7032_v28 = vpop.permute.xlu1 %5168 }
  0xf3   : > { %10212 = vst [vmem:[#allocation21_spill] sm:$0xff] %v7032_v28 }
  0xf4   : > { %v7034_v17 = vpop.permute.xlu0 %5178 }
  0xf5   : > { %10213 = vst [vmem:[#allocation22_spill] sm:$0xff] %v7034_v17 }
  0xf6   : > { %5398 = vrot.lane.b32.xlu2 %v6746_v43, %s6446_s5  ;;  %v1635_v43 = vsel %vm192_vm0, %v6884_v29, %v5156_v39  ;;  %v5136_v39 = vunpack.i.h.bf16 %v6960_v1 }
  0xf8   : > { %5393 = vrot.lane.b32.xlu1 %v6732_v33, %s6446_s5  ;;  %v7042_v23 = vpop.permute.xlu2 %5233 }
  0xf9   : > { %10214 = vst [vmem:[#allocation23_spill] sm:$0xff] %v7042_v23  ;;  %v10093_v38 = vunpack.i.h.bf16 %v7042_v23  ;;  %v10094_v18 = vunpack.i.l.bf16 %v7042_v23 }
  0xfa   : > { %5403 = vrot.lane.b32.xlu0 %v6766_v57, %s6446_s5  ;;  %v7048_v25 = vpop.permute.xlu1 %5183 }
  0xfb   : > { %10215 = vst [vmem:[#allocation24_spill] sm:$0xff] %v7048_v25  ;;  %v7057_v33 = vsel %vm1658_vm2, %v1634_v49, %v10094_v18  ;;  %v7062_v17 = vsel %vm1658_vm2, %v1635_v43, %v10093_v38  ;;  %v5135_v49 = vunpack.i.l.bf16 %v6960_v1  ;;  %v314_v43 = vld [vmem:[#allocation2 + $0x8] sm:$0xff] }
  0xfc   : > { %v7064_v57 = vpop.permute.xlu0 %5193  ;;  %v471_v18 = vld [vmem:[#allocation2 + $0x181] sm:$0xff]  ;;  %v472_v25 = vld [vmem:[#allocation2 + $0x189] sm:$0xff] }
  0xfd   : > { %v5447_v28 = vpack.i.bf16 %v472_v25, %v471_v18 }
  0xfe   : > { %5413 = vrot.lane.b32.xlu2 %v6774_v60, %s6446_s5  ;;  %v313_v60 = vld [vmem:[#allocation2] sm:$0xff] }
  0xff   : > { %v1626_v1 = vsel %vm192_vm0, %v313_v60, %v5135_v49 }
 0x100   : > { %5408 = vrot.lane.b32.xlu1 %v6760_v52, %s6446_s5  ;;  %v7072_v27 = vpop.permute.xlu2 %5248 }
 0x101   : > { %10216 = vst [vmem:[#allocation25_spill] sm:$0xff] %v7072_v27 }
 0x102   : > { %5418 = vrot.lane.b32.xlu0 %v6785_v5, %s6446_s5  ;;  %v7076_v29 = vpop.permute.xlu1 %5198 }
 0x104   : > { %v7078_v40 = vpop.permute.xlu0 %5208 }
 0x106   : > { %5428 = vrot.lane.b32.xlu2 %v6789_v6, %s6446_s5 }
 0x108   : > { %5423 = vrot.lane.b32.xlu1 %v6783_v2, %s6446_s5  ;;  %v7086_v52 = vpop.permute.xlu2 %5263  ;;  %v1627_v2 = vsel %vm192_vm0, %v314_v43, %v5136_v39  ;;  %v5141_v43 = vunpack.i.h.bf16 %v6998_v30 }
 0x109   : > { %10217 = vst [vmem:[#allocation26_spill] sm:$0xff] %v7086_v52 }
 0x10a   : > { %5433 = vrot.lane.b32.xlu0 %v6797_v14, %s6446_s5  ;;  %v7090_v5 = vpop.permute.xlu1 %5213 }
 0x10b   : > { %v5216_v38 = vunpack.i.h.bf16 %v7090_v5  ;;  %v5215_v6 = vunpack.i.l.bf16 %v7090_v5  ;;  %v10227_v5 = vld [vmem:[#allocation15_spill] sm:$0xff] }
 0x10c   : > { %v7094_v23 = vpop.permute.xlu0 %5223 }
 0x10d   : > { %v1659_v52 = vsel %vm1658_vm2, %v1626_v1, %v5215_v6  ;;  %v1660_v14 = vsel %vm1658_vm2, %v1627_v2, %v5216_v38  ;;  %v5140_v1 = vunpack.i.l.bf16 %v6998_v30 }
 0x10e   : > { %5443 = vrot.lane.b32.xlu2 %v6801_v15, %s6446_s5  ;;  %v1889_v27 = vpack.c.bf16 %v1660_v14, %v1659_v52  ;;  %v10104_v15 = vunpack.i.h.bf16 %v7028_v55  ;;  %v5145_v14 = vunpack.i.l.bf16 %v6996_v4 }
 0x10f   : > { %v1628_v30 = vsel %vm192_vm0, %v6860_v10, %v5140_v1  ;;  %v5196_v1 = vunpack.i.h.bf16 %v7064_v57 }
 0x110   : > { %5438 = vrot.lane.b32.xlu1 %v6795_v11, %s6446_s5  ;;  %2317 = vmatmul.bf16.vlgmr.msra.gmra.mxu0 %v1889_v27  ;;  %v7108_v49 = vpop.permute.xlu2 %5278  ;;  %v10105_v11 = vunpack.i.l.bf16 %v7028_v55 }
 0x112   : > { %5448 = vrot.lane.b32.xlu0 %v5447_v28, %s6446_s5  ;;  %v7111_v39 = vpop.permute.xlu1 %5228  ;;  %v1661_v25 = vsel %vm1658_vm2, %v1628_v30, %v10105_v11  ;;  %v5195_v30 = vunpack.i.l.bf16 %v7064_v57  ;;  %v1630_v57 = vsel %vm192_vm0, %v6870_v19, %v5145_v14 }
 0x114   : > { %v7113_v60 = vpop.permute.xlu0 %5238  ;;  %v1650_v19 = vsel %vm192_vm0, %v6954_v56, %v5195_v30 }
 0x116   : > { %5458 = vrot.lane.b32.xlu2 %v6811_v26, %s6447_s7  ;;  %v1629_v26 = vsel %vm192_vm0, %v6862_v12, %v5141_v43  ;;  %v5011_v12 = vld [vmem:[%s10075_s1 + $0x78] sm:$0xff]  ;;  %v5226_v43 = vunpack.i.h.bf16 %v7094_v23 }
 0x117   : > { %2398 = vmatpush.bf16.msra.mxu1 %v5011_v12  ;;  %5049 = vmatpush.bf16.msrb.mxu3 %v5011_v12 }
 0x118   : > { %5453 = vrot.lane.b32.xlu1 %v6807_v21, %s6447_s7  ;;  %v7123_v28 = vpop.permute.xlu2 %5293  ;;  %v1662_v21 = vsel %vm1658_vm2, %v1629_v26, %v10104_v15 }
 0x11a   : > { %5463 = vrot.lane.b32.xlu0 %v6818_v36, %s6447_s7  ;;  %v7127_v18 = vpop.permute.xlu1 %5243  ;;  %v1894_v36 = vpack.c.bf16 %v1662_v21, %v1661_v25  ;;  %v5205_v25 = vunpack.i.l.bf16 %v7010_v0 }
 0x11c   : > { %v7139_v27 = vpop.permute.xlu0 %5253 }
 0x11e   : > { %5473 = vrot.lane.b32.xlu2 %v6822_v37, %s6447_s7  ;;  %v5146_v37 = vunpack.i.h.bf16 %v6996_v4  ;;  %v5009_v4 = vld [vmem:[%s10075_s1 + $0x68] sm:$0xff] }
 0x120   : > { %5468 = vrot.lane.b32.xlu1 %v6816_v32, %s6447_s7  ;;  %2322 = vmatmul.bf16.gmra.mxu0 %v1894_v36  ;;  %v7145_v10 = vpop.permute.xlu2 %5308  ;;  %v5010_v32 = vld [vmem:[%s10075_s1 + $0x70] sm:$0xff] }
 0x121   : > { %2399 = vmatpush.bf16.msra.mxu1 %v5010_v32  ;;  %5050 = vmatpush.bf16.msrb.mxu3 %v5010_v32 }
 0x122   : > { %5478 = vrot.lane.b32.xlu0 %v6830_v47, %s6447_s7  ;;  %v7152_v52 = vpop.permute.xlu1 %5258  ;;  %v5225_v47 = vunpack.i.l.bf16 %v7094_v23  ;;  %v5241_v23 = vunpack.i.h.bf16 %v7113_v60 }
 0x124   : > { %v7154_v2 = vpop.permute.xlu0 %5268  ;;  %v1663_v32 = vsel %vm1658_vm2, %v1630_v57, %v5225_v47 }
 0x125   : > { %2400 = vmatpush.bf16.msra.mxu1 %v5009_v4  ;;  %5051 = vmatpush.bf16.msrb.mxu3 %v5009_v4 }
 0x126   : > { %5488 = vrot.lane.b32.xlu2 %v6834_v48, %s6447_s7  ;;  %v5206_v48 = vunpack.i.h.bf16 %v7010_v0 }
 0x128   : > { %5483 = vrot.lane.b32.xlu1 %v6828_v44, %s6447_s7  ;;  %v7169_v26 = vpop.permute.xlu2 %5323  ;;  %v1631_v44 = vsel %vm192_vm0, %v6872_v20, %v5146_v37  ;;  %v1651_v20 = vsel %vm192_vm0, %v6956_v63, %v5196_v1  ;;  %v1654_v1 = vsel %vm192_vm0, %v6966_v13, %v5205_v25  ;;  %v1655_v30 = vsel %vm192_vm0, %v6968_v16, %v5206_v48  ;;  %v5007_v25 = vld [vmem:[%s10075_s1 + $0x58] sm:$0xff] }
 0x129   : > { %v5211_v16 = vunpack.i.h.bf16 %v7078_v40  ;;  %v5210_v48 = vunpack.i.l.bf16 %v7078_v40  ;;  %v5150_v40 = vunpack.i.l.bf16 %v7017_v51 }
 0x12a   : > { %5493 = vrot.lane.b32.xlu0 %v6842_v58, %s6447_s7  ;;  %v7178_v21 = vpop.permute.xlu1 %5273  ;;  %v1664_v58 = vsel %vm1658_vm2, %v1631_v44, %v5226_v43  ;;  %v5008_v44 = vld [vmem:[%s10075_s1 + $0x60] sm:$0xff] }
 0x12b   : > { %v10100_v36 = vunpack.i.h.bf16 %v7178_v21  ;;  %v10103_v12 = vunpack.i.l.bf16 %v7178_v21  ;;  %v1899_v56 = vpack.c.bf16 %v1664_v58, %v1663_v32  ;;  %2401 = vmatpush.bf16.msra.mxu1 %v5008_v44  ;;  %5052 = vmatpush.bf16.msrb.mxu3 %v5008_v44  ;;  %v5200_v44 = vunpack.i.l.bf16 %v7076_v29 }
 0x12c   : > { %v7192_v0 = vpop.permute.xlu0 %5283  ;;  %v1632_v15 = vsel %vm192_vm0, %v6891_v31, %v5150_v40 }
 0x12d   : > { %v10106_v37 = vunpack.i.h.bf16 %v7192_v0  ;;  %v5285_v14 = vunpack.i.l.bf16 %v7192_v0  ;;  %v1683_v57 = vsel %vm1658_vm2, %v1650_v19, %v10103_v12  ;;  %v1684_v4 = vsel %vm1658_vm2, %v1651_v20, %v10100_v36  ;;  %v504_v12 = vld [vmem:[#allocation2 + $0x18a] sm:$0xff] }
 0x12e   : > { %5503 = vrot.lane.b32.xlu2 %v6846_v59, %s6447_s7  ;;  %v1949_v63 = vpack.c.bf16 %v1684_v4, %v1683_v57  ;;  %v5151_v57 = vunpack.i.h.bf16 %v7017_v51  ;;  %v5201_v4 = vunpack.i.h.bf16 %v7076_v29  ;;  %v1657_v51 = vsel %vm192_vm0, %v6992_v7, %v5211_v16 }
 0x12f   : > { %v7218_v19 = vsel %vm1658_vm2, %v1654_v1, %v5285_v14  ;;  %v7223_v20 = vsel %vm1658_vm2, %v1655_v30, %v10106_v37  ;;  %2402 = vmatpush.bf16.msra.mxu1 %v5007_v25  ;;  %5053 = vmatpush.bf16.msrb.mxu3 %v5007_v25  ;;  %v1656_v1 = vsel %vm192_vm0, %v6990_v45, %v5210_v48  ;;  %v5231_v36 = vunpack.i.h.bf16 %v7111_v39 }
 0x130   : > { %5498 = vrot.lane.b32.xlu1 %v6840_v54, %s6447_s7  ;;  %2327 = vmatmul.bf16.gmra.mxu0 %v1899_v56  ;;  %v7227_v59 = vpop.permute.xlu2 %5338  ;;  %v1959_v13 = vpack.c.bf16 %v7223_v20, %v7218_v19  ;;  %v5230_v45 = vunpack.i.l.bf16 %v7111_v39  ;;  %v6448_v7 = vmov 65535   ;;  %v10115_v48 = vunpack.i.h.bf16 %v7108_v49  ;;  %v10220_v20 = vld [vmem:[#allocation10_spill] sm:$0xff]  ;;  %v5017_v39 = vld [vmem:[%s10075_s1 + $0xa8] sm:$0xff] }
 0x131   : > { %2377 = vmatmul.bf16.vlgmr.msra.gmra.mxu3 %v1949_v63  ;;  %v2039_v63 = vld [vmem:[%s10075_s1 + $0x118] sm:$0xf]  ;;  %v2304_v16 = vsel %vm2302_vm3, 4294967295, %v6448_v7  ;;  %v5005_v7 = vld [vmem:[%s10075_s1 + $0x48] sm:$0xff]  ;;  %vm4257_vm3 = vcmask 916480  }
 0x132   : > { %5508 = vrot.lane.b32.xlu0 %v6854_v8, %s6447_s7  ;;  %v7238_v32 = vpop.permute.xlu1 %5288  ;;  %v5006_v8 = vld [vmem:[%s10075_s1 + $0x50] sm:$0xff]  ;;  %v2181_v29 = vunpack.c.l.b16 %v2039_v63  ;;  %v10121_v63 = vunpack.i.l.bf16 %v7108_v49  ;;  %v1665_v11 = vsel %vm1658_vm2, %v1632_v15, %v5230_v45 }
 0x133   : > { %v10101_v54 = vunpack.i.h.bf16 %v7238_v32  ;;  %v10102_v58 = vunpack.i.l.bf16 %v7238_v32  ;;  %2403 = vmatpush.bf16.msra.mxu1 %v5006_v8  ;;  %5054 = vmatpush.bf16.msrb.mxu3 %v5006_v8 }
 0x134   : > { %v7246_v56 = vpop.permute.xlu0 %5298 }
 0x135   : > { %v7263_v30 = vsel %vm1658_vm2, %v1656_v1, %v10102_v58  ;;  %v7268_v25 = vsel %vm1658_vm2, %v1657_v51, %v10101_v54  ;;  %v2217_v51 = vpack.c.b16 %v2181_v29, %v2181_v29  ;;  %v2305_v54 = vsel %vm2303_vm4, %v2304_v16, 0  ;;  %v503_v58 = vld [vmem:[#allocation2 + $0x182] sm:$0xff] }
 0x136   : > { %5518 = vrot.lane.b32.xlu2 %v6858_v9, %s6447_s7  ;;  %v1964_v9 = vpack.c.bf16 %v7268_v25, %v7263_v30  ;;  %v1652_v29 = vsel %vm192_vm0, %v6943_v46, %v5200_v44 }
 0x137   : > { %v2307_v16 = vand.u32 %v2305_v54, %v2217_v51  ;;  %2404 = vmatpush.bf16.msra.mxu1 %v5005_v7  ;;  %5055 = vmatpush.bf16.msrb.mxu3 %v5005_v7  ;;  %v1685_v46 = vsel %vm1658_vm2, %v1652_v29, %v10121_v63  ;;  %v5004_v54 = vld [vmem:[%s10075_s1 + $0x40] sm:$0xff]  ;;  %v10218_v29 = vpack.c.bf16 %v7062_v17, %v7057_v33 }
 0x138   : > { %5513 = vrot.lane.b32.xlu1 %v6852_v3, %s6447_s7  ;;  %v7278_v1 = vpop.permute.xlu2 %5353  ;;  %v1633_v3 = vsel %vm192_vm0, %v6893_v34, %v5151_v57  ;;  %v5527_v34 = vpack.i.bf16 %v504_v12, %v503_v58 }
 0x139   : > { %v1666_v37 = vsel %vm1658_vm2, %v1633_v3, %v5231_v36  ;;  %2669 = vmatpush.bf16.msrb.mxu0 %v2307_v16 }
 0x13a   : > { %5523 = vrot.lane.b32.xlu0 %v6874_v22, %s6447_s7  ;;  %v5304_v8 = vpop.permute.xlu1 %5303  ;;  %v1653_v22 = vsel %vm192_vm0, %v6945_v50, %v5201_v4  ;;  %v1904_v50 = vpack.c.bf16 %v1666_v37, %v1665_v11 }
 0x13b   : > { %v1686_v15 = vsel %vm1658_vm2, %v1653_v22, %v10115_v48  ;;  %2405 = vmatpush.bf16.msra.mxu1 %v5004_v54  ;;  %5056 = vmatpush.bf16.msrb.mxu3 %v5004_v54  ;;  %v5306_v4 = vunpack.i.h.bf16 %v5304_v8  ;;  %v5305_v44 = vunpack.i.l.bf16 %v5304_v8  ;;  %v539_v48 = vld [vmem:[#allocation2 + $0x39] sm:$0xff]  ;;  %v545_v8 = vld [vmem:[#allocation2 + $0x81] sm:$0xff] }
 0x13c   : > { %v7300_v31 = vpop.permute.xlu0 %5313  ;;  %v1954_v57 = vpack.c.bf16 %v1686_v15, %v1685_v46  ;;  %v5160_v46 = vunpack.i.l.bf16 %v10220_v20 }
 0x13d   : > { %v1696_v51 = vsel %vm1691_vm6, %v5225_v47, %v5305_v44  ;;  %v10221_v44 = vld [vmem:[#allocation13_spill] sm:$0xff] }
 0x13e   : > { %5533 = vrot.lane.b32.xlu2 %v6879_v24, %s6449_s19 }
 0x140   : > { %5528 = vrot.lane.b32.xlu1 %v5527_v34, %s6447_s7  ;;  %2332 = vmatmul.bf16.gmra.mxu0 %v1904_v50  ;;  %v7314_v12 = vpop.permute.xlu2 %5368  ;;  %v10219_v34 = vld [vmem:[#allocation12_spill] sm:$0xff]  ;;  %v323_v50 = vld [vmem:[#allocation2 + $0x78] sm:$0xff]  ;;  %s6454_s7 = smov 64  }
 0x141   : > { %2382 = vmatmul.bf16.gmra.mxu3 %v1954_v57  ;;  %v324_v57 = vld [vmem:[#allocation2 + $0x80] sm:$0xff] }
 0x142   : > { %5538 = vrot.lane.b32.xlu0 %v6903_v41, %s6449_s19  ;;  %v5319_v58 = vpop.permute.xlu1 %5318 }
 0x143   : > { %v5321_v47 = vunpack.i.h.bf16 %v5319_v58  ;;  %v5320_v3 = vunpack.i.l.bf16 %v5319_v58 }
 0x144   : > { %v7318_v40 = vpop.permute.xlu0 %5328 }
 0x145   : > { %v1703_v17 = vsel %vm1691_vm6, %v5241_v23, %v5321_v47  ;;  %v10222_v47 = vld [vmem:[#allocation11_spill] sm:$0xff] }
 0x146   : > { %5548 = vrot.lane.b32.xlu2 %v6907_v42, %s6449_s19 }
 0x148   : > { %5543 = vrot.lane.b32.xlu1 %v6899_v35, %s6449_s19  ;;  %v7324_v24 = vpop.permute.xlu2 %5383  ;;  %v1697_v35 = vsel %vm1691_vm6, %v5226_v43, %v5306_v4  ;;  %v5240_v43 = vunpack.i.l.bf16 %v7113_v60 }
 0x149   : > { %v10111_v11 = vunpack.i.h.bf16 %v7324_v24  ;;  %v10112_v37 = vunpack.i.l.bf16 %v7324_v24 }
 0x14a   : > { %5553 = vrot.lane.b32.xlu0 %v6917_v61, %s6449_s19  ;;  %v5334_v41 = vpop.permute.xlu1 %5333 }
 0x14b   : > { %v7339_v42 = vsel %vm1724_vm5, %v1696_v51, %v10112_v37  ;;  %v7344_v7 = vsel %vm1724_vm5, %v1697_v35, %v10111_v11  ;;  %v5336_v58 = vunpack.i.h.bf16 %v5334_v41  ;;  %v5335_v4 = vunpack.i.l.bf16 %v5334_v41  ;;  %v534_v37 = vld [vmem:[#allocation2 + $0x180] sm:$0xff] }
 0x14c   : > { %v7346_v61 = vpop.permute.xlu0 %5343  ;;  %v10123_v51 = vunpack.i.h.bf16 %v7139_v27  ;;  %v10124_v35 = vunpack.i.l.bf16 %v7139_v27 }
 0x14e   : > { %5563 = vrot.lane.b32.xlu2 %v6921_v62, %s6449_s19 }
 0x150   : > { %5558 = vrot.lane.b32.xlu1 %v6915_v53, %s6449_s19  ;;  %2337 = vmatmul.bf16.gmra.mxu0 %v10218_v29  ;;  %v7359_v16 = vpop.permute.xlu2 %5398  ;;  %v1702_v53 = vsel %vm1691_vm6, %v5240_v43, %v5320_v3  ;;  %v1636_v29 = vsel %vm192_vm0, %v323_v50, %v5160_v46  ;;  %v1709_v46 = vsel %vm1691_vm6, %v10123_v51, %v5336_v58  ;;  %v10118_v50 = vunpack.i.h.bf16 %v7154_v2 }
 0x151   : > { %2387 = vmatmul.bf16.gmra.mxu3 %v1959_v13  ;;  %v10107_v22 = vunpack.i.h.bf16 %v7359_v16  ;;  %v10108_v62 = vunpack.i.l.bf16 %v7359_v16  ;;  %v5161_v13 = vunpack.i.h.bf16 %v10220_v20 }
 0x152   : > { %5568 = vrot.lane.b32.xlu0 %v10219_v34, %s6449_s19  ;;  %v7368_v60 = vpop.permute.xlu1 %5348 }
 0x153   : > { %v7375_v33 = vsel %vm1724_vm5, %v1702_v53, %v10108_v62  ;;  %v7380_v19 = vsel %vm1724_vm5, %v1703_v17, %v10107_v22  ;;  %v1637_v34 = vsel %vm192_vm0, %v324_v57, %v5161_v13  ;;  %v1669_v17 = vsel %vm1658_vm2, %v1636_v29, %v5240_v43 }
 0x154   : > { %v7384_v15 = vpop.permute.xlu0 %5358  ;;  %v1670_v20 = vsel %vm1658_vm2, %v1637_v34, %v5241_v23  ;;  %v5295_v22 = vunpack.i.l.bf16 %v7123_v28  ;;  %v1708_v13 = vsel %vm1691_vm6, %v10124_v35, %v5335_v4  ;;  %v5351_v29 = vunpack.i.h.bf16 %v7368_v60 }
 0x155   : > { %v1914_v58 = vpack.c.bf16 %v1670_v20, %v1669_v17  ;;  %v5350_v34 = vunpack.i.l.bf16 %v7368_v60  ;;  %v536_v60 = vld [vmem:[#allocation2 + $0x198] sm:$0xff]  ;;  %v537_v20 = vld [vmem:[#allocation2 + $0x1a0] sm:$0xff] }
 0x156   : > { %5578 = vrot.lane.b32.xlu2 %v10221_v44, %s6449_s19  ;;  %v5296_v44 = vunpack.i.h.bf16 %v7123_v28  ;;  %v1715_v25 = vsel %vm1691_vm6, %v10118_v50, %v5351_v29  ;;  %v543_v50 = vld [vmem:[#allocation2 + $0x69] sm:$0xff] }
 0x158   : > { %5573 = vrot.lane.b32.xlu1 %v10222_v47, %s6449_s19  ;;  %v7394_v3 = vpop.permute.xlu2 %5413  ;;  %v10224_v47 = vld [vmem:[#allocation16_spill] sm:$0xff] }
 0x159   : > { %10223 = vst [vmem:[#allocation12_spill] sm:$0xff] %v7394_v3  ;;  %v10109_v53 = vunpack.i.h.bf16 %v7394_v3  ;;  %v10110_v41 = vunpack.i.l.bf16 %v7394_v3 }
 0x15a   : > { %5583 = vrot.lane.b32.xlu0 %v10224_v47, %s6449_s19  ;;  %v7406_v62 = vpop.permute.xlu1 %5363  ;;  %v10225_v47 = vld [vmem:[#allocation17_spill] sm:$0xff] }
 0x15b   : > { %v7417_v23 = vsel %vm1724_vm5, %v1708_v13, %v10110_v41  ;;  %v7422_v28 = vsel %vm1724_vm5, %v1709_v46, %v10109_v53  ;;  %v1692_v13 = vsel %vm1691_vm6, %v5215_v6, %v5295_v22  ;;  %v1693_v46 = vsel %vm1691_vm6, %v5216_v38, %v5296_v44  ;;  %v10226_v41 = vld [vmem:[#allocation20_spill] sm:$0xff]  ;;  %v5019_v44 = vld [vmem:[%s10075_s1 + $0xb8] sm:$0xff] }
 0x15c   : > { %v7424_v43 = vpop.permute.xlu0 %5373  ;;  %v10119_v6 = vunpack.i.l.bf16 %v7154_v2  ;;  %2487 = vmatpush.bf16.msra.mxu2 %v5019_v44  ;;  %5057 = vmatpush.bf16.msra.mxu3 %v5019_v44  ;;  %v5246_v44 = vunpack.i.h.bf16 %v7127_v18 }
 0x15d   : > { %v10113_v57 = vunpack.i.h.bf16 %v7424_v43  ;;  %v10114_v4 = vunpack.i.l.bf16 %v7424_v43 }
 0x15e   : > { %5593 = vrot.lane.b32.xlu2 %v10225_v47, %s6449_s19  ;;  %v5165_v47 = vunpack.i.l.bf16 %v10226_v41  ;;  %v1714_v30 = vsel %vm1691_vm6, %v10119_v6, %v5350_v34 }
 0x15f   : > { %v1725_v53 = vsel %vm1724_vm5, %v1692_v13, %v10114_v4  ;;  %v1726_v17 = vsel %vm1724_vm5, %v1693_v46, %v10113_v57  ;;  %v5166_v13 = vunpack.i.h.bf16 %v10226_v41  ;;  %v5607_v41 = vpack.i.bf16 %v537_v20, %v536_v60  ;;  %v326_v57 = vld [vmem:[#allocation2 + $0x98] sm:$0xff] }
 0x160   : > { %5588 = vrot.lane.b32.xlu1 %v10227_v5, %s6449_s19  ;;  %2342 = vmatmul.bf16.gmra.mxu0 %v1914_v58  ;;  %v1890_v38 = vpack.c.bf16 %v1726_v17, %v1725_v53  ;;  %v7451_v22 = vpop.permute.xlu2 %5428  ;;  %v535_v5 = vld [vmem:[#allocation2 + $0x188] sm:$0xff]  ;;  %v325_v58 = vld [vmem:[#allocation2 + $0x90] sm:$0xff]  ;;  %v5310_v53 = vunpack.i.l.bf16 %v7145_v10 }
 0x161   : > { %10228 = vst [vmem:[#allocation10_spill] sm:$0xff] %v7451_v22  ;;  %2392 = vmatmul.bf16.gmra.mxu3 %v1964_v9  ;;  %v10117_v46 = vunpack.i.h.bf16 %v7451_v22  ;;  %v10116_v11 = vunpack.i.l.bf16 %v7451_v22  ;;  %v10229_v17 = vld [vmem:[#allocation19_spill] sm:$0xff]  ;;  %v5311_v9 = vunpack.i.h.bf16 %v7145_v10  ;;  %v538_v4 = vld [vmem:[#allocation2 + $0x31] sm:$0xff]  ;;  %v5602_v20 = vpack.i.bf16 %v535_v5, %v534_v37 }
 0x162   : > { %5598 = vrot.lane.b32.xlu0 %v10229_v17, %s6449_s19  ;;  %2406 = vmatmul.bf16.vlgmr.msra.gmra.mxu1 %v1890_v38  ;;  %v7465_v54 = vpop.permute.xlu1 %5378  ;;  %v1638_v29 = vsel %vm192_vm0, %v325_v58, %v5165_v47  ;;  %v5030_v37 = vld [vmem:[%s10075_s1 + $0x110] sm:$0xff]  ;;  %v5366_v47 = vunpack.i.h.bf16 %v7406_v62  ;;  %v5365_v5 = vunpack.i.l.bf16 %v7406_v62  ;;  %v5612_v58 = vpack.i.bf16 %v539_v48, %v538_v4  ;;  %v542_v10 = vld [vmem:[#allocation2 + $0x61] sm:$0xff] }
 0x163   : > { %v7477_v38 = vsel %vm1724_vm5, %v1714_v30, %v10116_v11  ;;  %v7482_v60 = vsel %vm1724_vm5, %v1715_v25, %v10117_v46  ;;  %v1639_v11 = vsel %vm192_vm0, %v326_v57, %v5166_v13  ;;  %v5018_v25 = vld [vmem:[%s10075_s1 + $0xb0] sm:$0xff]  ;;  %v1698_v46 = vsel %vm1691_vm6, %v5230_v45, %v5310_v53  ;;  %2670 = vmatpush.bf16.msrb.mxu0 %v5030_v37  ;;  %v544_v37 = vld [vmem:[#allocation2 + $0x79] sm:$0xff] }
 0x164   : > { %10230 = vst [vmem:[#allocation13_spill] sm:$0xff] %v7477_v38  ;;  %v7484_v34 = vpop.permute.xlu0 %5388  ;;  %v5245_v57 = vunpack.i.l.bf16 %v7127_v18  ;;  %v5326_v13 = vunpack.i.h.bf16 %v7169_v26  ;;  %2488 = vmatpush.bf16.msra.mxu2 %v5018_v25  ;;  %v1699_v6 = vsel %vm1691_vm6, %v5231_v36, %v5311_v9  ;;  %v5301_v62 = vunpack.i.h.bf16 %v7246_v56  ;;  %5058 = vmatpush.bf16.msra.mxu3 %v5018_v25  ;;  %v540_v9 = vld [vmem:[#allocation2 + $0x49] sm:$0xff] }
 0x165   : > { %v10122_v17 = vunpack.i.h.bf16 %v7484_v34  ;;  %v10120_v30 = vunpack.i.l.bf16 %v7484_v34  ;;  %v5300_v45 = vunpack.i.l.bf16 %v7246_v56  ;;  %v10127_v4 = vunpack.i.h.bf16 %v7465_v54  ;;  %v10256_v38 = vld [vmem:[#allocation23_spill] sm:$0xff] }
 0x166   : > { %5608 = vrot.lane.b32.xlu2 %v5607_v41, %s6449_s19  ;;  %v1720_v25 = vsel %vm1691_vm6, %v5285_v14, %v5365_v5  ;;  %v1671_v35 = vsel %vm1658_vm2, %v1638_v29, %v5245_v57  ;;  %v553_v5 = vld [vmem:[#allocation2 + $0xe1] sm:$0xff] }
 0x167   : > { %v7513_v48 = vsel %vm1724_vm5, %v1698_v46, %v10120_v30  ;;  %v7527_v36 = vsel %vm1724_vm5, %v1699_v6, %v10122_v17  ;;  %v10128_v46 = vunpack.i.l.bf16 %v7465_v54  ;;  %v5325_v30 = vunpack.i.l.bf16 %v7169_v26 }
 0x168   : > { %5603 = vrot.lane.b32.xlu1 %v5602_v20, %s6449_s19  ;;  %v7519_v53 = vpop.permute.xlu2 %5443  ;;  %v541_v20 = vld [vmem:[#allocation2 + $0x51] sm:$0xff]  ;;  %v5622_v6 = vpack.i.bf16 %v543_v50, %v542_v10  ;;  %v10231_v17 = vunpack.i.h.bf16 %v7192_v0  ;;  %v1672_v26 = vsel %vm1658_vm2, %v1639_v11, %v5246_v44  ;;  %2489 = vmatpush.bf16.msra.mxu2 %v5017_v39  ;;  %v10232_v10 = vunpack.i.l.bf16 %v7028_v55  ;;  %s6453_s19 = smov 32  }
 0x169   : > { %v10125_v56 = vunpack.i.h.bf16 %v7519_v53  ;;  %v10126_v41 = vunpack.i.l.bf16 %v7519_v53  ;;  %v5617_v29 = vpack.i.bf16 %v541_v20, %v540_v9  ;;  %5059 = vmatpush.bf16.msra.mxu3 %v5017_v39  ;;  %v5627_v39 = vpack.i.bf16 %v545_v8, %v544_v37 }
 0x16a   : > { %5613 = vrot.lane.b32.xlu0 %v5612_v58, %s6450_s23  ;;  %v7536_v63 = vpop.permute.xlu1 %5393  ;;  %v1721_v51 = vsel %vm1691_vm6, %v10231_v17, %v5366_v47  ;;  %v1694_v11 = vsel %vm1691_vm6, %v10232_v10, %v5300_v45  ;;  %v10233_v17 = vunpack.i.h.bf16 %v7028_v55  ;;  %v5016_v55 = vld [vmem:[%s10075_s1 + $0xa0] sm:$0xff]  ;;  %v1704_v20 = vsel %vm1691_vm6, %v5245_v57, %v5325_v30  ;;  %v548_v10 = vld [vmem:[#allocation2 + $0xa9] sm:$0xff]  ;;  %v546_v30 = vld [vmem:[#allocation2 + $0x91] sm:$0xff] }
 0x16b   : > { %v7551_v50 = vsel %vm1724_vm5, %v1720_v25, %v10126_v41  ;;  %v7556_v0 = vsel %vm1724_vm5, %v1721_v51, %v10125_v56  ;;  %v1727_v9 = vsel %vm1724_vm5, %v1694_v11, %v10128_v46  ;;  %v1705_v25 = vsel %vm1691_vm6, %v5246_v44, %v5326_v13  ;;  %v549_v11 = vld [vmem:[#allocation2 + $0xb1] sm:$0xff]  ;;  %v547_v57 = vld [vmem:[#allocation2 + $0x99] sm:$0xff]  ;;  %v327_v41 = vld [vmem:[#allocation2 + $0xa8] sm:$0xff] }
 0x16c   : > { %v7558_v14 = vpop.permute.xlu0 %5403  ;;  %v1695_v47 = vsel %vm1691_vm6, %v10233_v17, %v5301_v62  ;;  %v1919_v62 = vpack.c.bf16 %v1672_v26, %v1671_v35  ;;  %2490 = vmatpush.bf16.msra.mxu2 %v5016_v55  ;;  %v5015_v35 = vld [vmem:[%s10075_s1 + $0x98] sm:$0xff]  ;;  %v5341_v13 = vunpack.i.h.bf16 %v7227_v59  ;;  %v5340_v37 = vunpack.i.l.bf16 %v7227_v59 }
 0x16d   : > { %v10129_v58 = vunpack.i.h.bf16 %v7558_v14  ;;  %v10130_v51 = vunpack.i.l.bf16 %v7558_v14  ;;  %v1728_v45 = vsel %vm1724_vm5, %v1695_v47, %v10127_v4  ;;  %5060 = vmatpush.bf16.msra.mxu3 %v5016_v55  ;;  %v550_v47 = vld [vmem:[#allocation2 + $0xc1] sm:$0xff]  ;;  %v5632_v55 = vpack.i.bf16 %v547_v57, %v546_v30  ;;  %v10235_v44 = vld [vmem:[#allocation25_spill] sm:$0xff] }
 0x16e   : > { %5623 = vrot.lane.b32.xlu2 %v5622_v6, %s6450_s23  ;;  %v1895_v8 = vpack.c.bf16 %v1728_v45, %v1727_v9  ;;  %v551_v9 = vld [vmem:[#allocation2 + $0xc9] sm:$0xff]  ;;  %v10133_v45 = vunpack.i.h.bf16 %v7152_v52  ;;  %v10135_v4 = vunpack.i.h.bf16 %v10235_v44  ;;  %v10136_v46 = vunpack.i.l.bf16 %v10235_v44 }
 0x16f   : > { %v7587_v17 = vsel %vm1724_vm5, %v1704_v20, %v10130_v51  ;;  %v7592_v6 = vsel %vm1724_vm5, %v1705_v25, %v10129_v58  ;;  %v10234_v25 = vld [vmem:[#allocation21_spill] sm:$0xff]  ;;  %v328_v51 = vld [vmem:[#allocation2 + $0xb0] sm:$0xff] }
 0x170   : > { %5618 = vrot.lane.b32.xlu1 %v5617_v29, %s6450_s23  ;;  %2347 = vmatmul.bf16.gmra.mxu0 %v1919_v62  ;;  %v7595_v18 = vpop.permute.xlu2 %5458  ;;  %v5637_v29 = vpack.i.bf16 %v549_v11, %v548_v10  ;;  %v10134_v62 = vunpack.i.l.bf16 %v7152_v52  ;;  %v5170_v56 = vunpack.i.l.bf16 %v10234_v25  ;;  %v5014_v10 = vld [vmem:[%s10075_s1 + $0x90] sm:$0xff]  ;;  %v5171_v11 = vunpack.i.h.bf16 %v10234_v25  ;;  %v552_v25 = vld [vmem:[#allocation2 + $0xd9] sm:$0xff] }
 0x171   : > { %2491 = vmatpush.bf16.msra.mxu2 %v5015_v35  ;;  %5061 = vmatpush.bf16.msra.mxu3 %v5015_v35  ;;  %v1711_v57 = vsel %vm1691_vm6, %v10133_v45, %v5341_v13  ;;  %v554_v58 = vld [vmem:[#allocation2 + $0xf1] sm:$0xff]  ;;  %v555_v35 = vld [vmem:[#allocation2 + $0xf9] sm:$0xff] }
 0x172   : > { %5628 = vrot.lane.b32.xlu0 %v5627_v39, %s6450_s23  ;;  %2411 = vmatmul.bf16.gmra.mxu1 %v1895_v8  ;;  %v7605_v26 = vpop.permute.xlu1 %5408  ;;  %v5642_v8 = vpack.i.bf16 %v551_v9, %v550_v47  ;;  %v1710_v30 = vsel %vm1691_vm6, %v10134_v62, %v5340_v37  ;;  %v5013_v47 = vld [vmem:[%s10075_s1 + $0x88] sm:$0xff]  ;;  %v1641_v45 = vsel %vm192_vm0, %v328_v51, %v5171_v11  ;;  %v5012_v51 = vld [vmem:[%s10075_s1 + $0x80] sm:$0xff] }
 0x174   : > { %v7609_v20 = vpop.permute.xlu0 %5418 }
 0x175   : > { %v10132_v59 = vunpack.i.h.bf16 %v7609_v20  ;;  %v10131_v39 = vunpack.i.l.bf16 %v7609_v20  ;;  %2492 = vmatpush.bf16.msra.mxu2 %v5014_v10  ;;  %5062 = vmatpush.bf16.msra.mxu3 %v5014_v10  ;;  %v557_v10 = vld [vmem:[#allocation2 + $0x111] sm:$0xff] }
 0x176   : > { %5638 = vrot.lane.b32.xlu2 %v5637_v29, %s6450_s23 }
 0x177   : > { %v7630_v29 = vsel %vm1724_vm5, %v1710_v30, %v10131_v39  ;;  %v7635_v37 = vsel %vm1724_vm5, %v1711_v57, %v10132_v59  ;;  %v1640_v30 = vsel %vm192_vm0, %v327_v41, %v5170_v56  ;;  %v5356_v39 = vunpack.i.h.bf16 %v7278_v1  ;;  %v556_v41 = vld [vmem:[#allocation2 + $0x109] sm:$0xff] }
 0x178   : > { %5633 = vrot.lane.b32.xlu1 %v5632_v55, %s6450_s23  ;;  %v7638_v13 = vpop.permute.xlu2 %5473  ;;  %v5355_v57 = vunpack.i.l.bf16 %v7278_v1  ;;  %v5652_v59 = vpack.i.bf16 %v555_v35, %v554_v58  ;;  %v1673_v9 = vsel %vm1658_vm2, %v1640_v30, %v10136_v46  ;;  %v1674_v56 = vsel %vm1658_vm2, %v1641_v45, %v10135_v4  ;;  %v560_v46 = vld [vmem:[#allocation2 + $0x139] sm:$0xff] }
 0x179   : > { %2493 = vmatpush.bf16.msra.mxu2 %v5013_v47  ;;  %v5647_v1 = vpack.i.bf16 %v553_v5, %v552_v25  ;;  %5063 = vmatpush.bf16.msra.mxu3 %v5013_v47  ;;  %v1924_v11 = vpack.c.bf16 %v1674_v56, %v1673_v9  ;;  %v5657_v35 = vpack.i.bf16 %v557_v10, %v556_v41  ;;  %v10236_v45 = vunpack.i.l.bf16 %v7178_v21  ;;  %v559_v56 = vld [vmem:[#allocation2 + $0x129] sm:$0xff] }
 0x17a   : > { %5643 = vrot.lane.b32.xlu0 %v5642_v8, %s6450_s23  ;;  %v7649_v55 = vpop.permute.xlu1 %5423  ;;  %v10237_v4 = vunpack.i.h.bf16 %v7178_v21  ;;  %v558_v21 = vld [vmem:[#allocation2 + $0x121] sm:$0xff]  ;;  %v10238_v41 = vpack.c.bf16 %v7344_v7, %v7339_v42 }
 0x17b   : > { %v1716_v30 = vsel %vm1691_vm6, %v10236_v45, %v5355_v57  ;;  %v563_v45 = vld [vmem:[#allocation2 + $0x159] sm:$0xff] }
 0x17c   : > { %v7658_v62 = vpop.permute.xlu0 %5433  ;;  %v1717_v5 = vsel %vm1691_vm6, %v10237_v4, %v5356_v39  ;;  %v5371_v4 = vunpack.i.h.bf16 %v7314_v12  ;;  %v5370_v39 = vunpack.i.l.bf16 %v7314_v12  ;;  %v329_v7 = vld [vmem:[#allocation2 + $0xc0] sm:$0xff] }
 0x17d   : > { %v10137_v8 = vunpack.i.h.bf16 %v7658_v62  ;;  %v10138_v58 = vunpack.i.l.bf16 %v7658_v62  ;;  %2494 = vmatpush.bf16.msra.mxu2 %v5012_v51  ;;  %5064 = vmatpush.bf16.msra.mxu3 %v5012_v51  ;;  %v10239_v51 = vld [vmem:[#allocation14_spill] sm:$0xff] }
 0x17e   : > { %5653 = vrot.lane.b32.xlu2 %v5652_v59, %s6450_s23  ;;  %v561_v59 = vld [vmem:[#allocation2 + $0x141] sm:$0xff] }
 0x17f   : > { %v1749_v25 = vsel %vm1724_vm5, %v1716_v30, %v10138_v58  ;;  %v1750_v47 = vsel %vm1724_vm5, %v1717_v5, %v10137_v8  ;;  %v5662_v5 = vpack.i.bf16 %v559_v56, %v558_v21  ;;  %v566_v56 = vld [vmem:[#allocation2 + $0x181] sm:$0xff] }
 0x180   : > { %5648 = vrot.lane.b32.xlu1 %v5647_v1, %s6450_s23  ;;  %2352 = vmatmul.bf16.gmra.mxu0 %v1924_v11  ;;  %v1950_v9 = vpack.c.bf16 %v1750_v47, %v1749_v25  ;;  %v7679_v57 = vpop.permute.xlu2 %5488  ;;  %v5667_v1 = vpack.i.bf16 %v561_v59, %v560_v46  ;;  %v562_v11 = vld [vmem:[#allocation2 + $0x151] sm:$0xff]  ;;  %v5175_v25 = vunpack.i.l.bf16 %v10239_v51  ;;  %v10240_v46 = vunpack.i.l.bf16 %v7238_v32  ;;  %v330_v8 = vld [vmem:[#allocation2 + $0xc8] sm:$0xff] }
 0x181   : > { %v5672_v42 = vpack.i.bf16 %v563_v45, %v562_v11  ;;  %v5360_v11 = vunpack.i.l.bf16 %v7384_v15  ;;  %v564_v45 = vld [vmem:[#allocation2 + $0x169] sm:$0xff] }
 0x182   : > { %5658 = vrot.lane.b32.xlu0 %v5657_v35, %s6450_s23  ;;  %2416 = vmatmul.bf16.gmra.mxu1 %v10238_v41  ;;  %v7687_v10 = vpop.permute.xlu1 %5438  ;;  %v5176_v35 = vunpack.i.h.bf16 %v10239_v51  ;;  %v1722_v59 = vsel %vm1691_vm6, %v10240_v46, %v5370_v39  ;;  %v567_v41 = vld [vmem:[#allocation2 + $0x189] sm:$0xff]  ;;  %v565_v51 = vld [vmem:[#allocation2 + $0x171] sm:$0xff]  ;;  %v1642_v46 = vsel %vm192_vm0, %v329_v7, %v5175_v25  ;;  %v568_v25 = vld [vmem:[#allocation2 + $0x199] sm:$0xff] }
 0x183   : > { %2466 = vmatmul.bf16.vlgmr.msrb.gmra.mxu3 %v1950_v9  ;;  %v10241_v9 = vunpack.i.h.bf16 %v7238_v32  ;;  %v569_v7 = vld [vmem:[#allocation2 + $0x1a1] sm:$0xff] }
 0x184   : > { %v7689_v30 = vpop.permute.xlu0 %5448 }
 0x185   : > { %v10139_v47 = vunpack.i.h.bf16 %v7689_v30  ;;  %v10140_v12 = vunpack.i.l.bf16 %v7689_v30  ;;  %v1723_v21 = vsel %vm1691_vm6, %v10241_v9, %v5371_v4  ;;  %v5361_v4 = vunpack.i.h.bf16 %v7384_v15 }
 0x186   : > { %5668 = vrot.lane.b32.xlu2 %v5667_v1, %s6450_s23  ;;  %v10243_v15 = vunpack.i.h.bf16 %v7139_v27  ;;  %v5677_v9 = vpack.i.bf16 %v565_v51, %v564_v45  ;;  %v572_v51 = vld [vmem:[#allocation2 + $0x4a] sm:$0xff] }
 0x187   : > { %v7705_v58 = vsel %vm1724_vm5, %v1722_v59, %v10140_v12  ;;  %v7710_v1 = vsel %vm1724_vm5, %v1723_v21, %v10139_v47  ;;  %v5682_v21 = vpack.i.bf16 %v567_v41, %v566_v56  ;;  %v1643_v47 = vsel %vm192_vm0, %v330_v8, %v5176_v35 }
 0x188   : > { %5663 = vrot.lane.b32.xlu1 %v5662_v5, %s6450_s23  ;;  %v7713_v39 = vpop.permute.xlu2 %5503  ;;  %v10242_v12 = vunpack.i.l.bf16 %v7139_v27  ;;  %v1676_v22 = vsel %vm1658_vm2, %v1643_v47, %v10243_v15  ;;  %v10245_v56 = vunpack.i.h.bf16 %v7108_v49  ;;  %v5687_v35 = vpack.i.bf16 %v569_v7, %v568_v25  ;;  %v10249_v15 = vld [vmem:[#allocation22_spill] sm:$0xff] }
 0x189   : > { %v10246_v27 = vunpack.i.l.bf16 %v7687_v10  ;;  %v10247_v41 = vunpack.i.h.bf16 %v7687_v10  ;;  %v5180_v25 = vunpack.i.l.bf16 %v10249_v15  ;;  %v574_v7 = vld [vmem:[#allocation2 + $0x62] sm:$0xff] }
 0x18a   : > { %5673 = vrot.lane.b32.xlu0 %v5672_v42, %s6450_s23  ;;  %v7723_v5 = vpop.permute.xlu1 %5453  ;;  %v1675_v32 = vsel %vm1658_vm2, %v1642_v46, %v10242_v12  ;;  %v10244_v42 = vunpack.i.l.bf16 %v7108_v49  ;;  %v1719_v8 = vsel %vm1691_vm6, %v10245_v56, %v5361_v4  ;;  %v573_v46 = vld [vmem:[#allocation2 + $0x52] sm:$0xff] }
 0x18b   : > { %v1929_v12 = vpack.c.bf16 %v1676_v22, %v1675_v32  ;;  %v1752_v45 = vsel %vm1724_vm5, %v1719_v8, %v10247_v41  ;;  %v10248_v22 = vpack.c.bf16 %v7527_v36, %v7513_v48  ;;  %v5697_v32 = vpack.i.bf16 %v573_v46, %v572_v51  ;;  %v331_v8 = vld [vmem:[#allocation2 + $0xd8] sm:$0xff] }
 0x18c   : > { %v7732_v59 = vpop.permute.xlu0 %5463  ;;  %v1718_v3 = vsel %vm1691_vm6, %v10244_v42, %v5360_v11  ;;  %v570_v11 = vld [vmem:[#allocation2 + $0x32] sm:$0xff]  ;;  %v5456_v48 = vunpack.i.h.bf16 %v7723_v5  ;;  %v5455_v36 = vunpack.i.l.bf16 %v7723_v5  ;;  %v579_v41 = vld [vmem:[#allocation2 + $0x9a] sm:$0xff]  ;;  %v1644_v51 = vsel %vm192_vm0, %v331_v8, %v5180_v25  ;;  %v577_v25 = vld [vmem:[#allocation2 + $0x82] sm:$0xff] }
 0x18d   : > { %v1751_v47 = vsel %vm1724_vm5, %v1718_v3, %v10246_v27  ;;  %v5316_v46 = vunpack.i.h.bf16 %v7300_v31 }
 0x18e   : > { %5683 = vrot.lane.b32.xlu2 %v5682_v21, %s6450_s23  ;;  %v1955_v4 = vpack.c.bf16 %v1752_v45, %v1751_v47  ;;  %v571_v21 = vld [vmem:[#allocation2 + $0x3a] sm:$0xff]  ;;  %v578_v47 = vld [vmem:[#allocation2 + $0x92] sm:$0xff] }
 0x18f   : > { %v5692_v56 = vpack.i.bf16 %v571_v21, %v570_v11  ;;  %v332_v45 = vld [vmem:[#allocation2 + $0xe0] sm:$0xff]  ;;  %v10252_v21 = vunpack.i.l.bf16 %v7152_v52 }
 0x190   : > { %5678 = vrot.lane.b32.xlu1 %v5677_v9, %s6450_s23  ;;  %2357 = vmatmul.bf16.gmra.mxu0 %v1929_v12  ;;  %v7748_v49 = vpop.permute.xlu2 %5518  ;;  %v575_v9 = vld [vmem:[#allocation2 + $0x6a] sm:$0xff] }
 0x191   : > { %v5029_v12 = vld [vmem:[%s10075_s1 + $0x108] sm:$0xff]  ;;  %v5702_v27 = vpack.i.bf16 %v575_v9, %v574_v7 }
 0x192   : > { %5688 = vrot.lane.b32.xlu0 %v5687_v35, %s6450_s23  ;;  %2421 = vmatmul.bf16.gmra.mxu1 %v10248_v22  ;;  %v7754_v3 = vpop.permute.xlu1 %5468  ;;  %v5181_v35 = vunpack.i.h.bf16 %v10249_v15  ;;  %v576_v15 = vld [vmem:[#allocation2 + $0x7a] sm:$0xff]  ;;  %v1677_v22 = vsel %vm1658_vm2, %v1644_v51, %v10252_v21  ;;  %v10257_v51 = vunpack.i.l.bf16 %v10256_v38  ;;  %v10258_v21 = vunpack.i.h.bf16 %v10256_v38  ;;  %s6458_s23 = smov 112  }
 0x193   : > { %2471 = vmatmul.bf16.gmra.mxu3 %v1955_v4  ;;  %2671 = vmatpush.bf16.msrb.mxu0 %v5029_v12  ;;  %v5315_v4 = vunpack.i.l.bf16 %v7300_v31  ;;  %v5712_v31 = vpack.i.bf16 %v579_v41, %v578_v47  ;;  %v10251_v12 = vunpack.i.h.bf16 %v7424_v43 }
 0x194   : > { %v7757_v42 = vpop.permute.xlu0 %5478  ;;  %v1645_v9 = vsel %vm192_vm0, %v332_v45, %v5181_v35  ;;  %v580_v45 = vld [vmem:[#allocation2 + $0xaa] sm:$0xff] }
 0x195   : > { %v1759_v5 = vsel %vm1757_vm7, %v10251_v12, %v5456_v48  ;;  %v5707_v48 = vpack.i.bf16 %v577_v25, %v576_v15  ;;  %v5471_v15 = vunpack.i.h.bf16 %v7754_v3  ;;  %v5470_v25 = vunpack.i.l.bf16 %v7754_v3 }
 0x196   : > { %5698 = vrot.lane.b32.xlu2 %v5697_v32, %s6451_s28  ;;  %v10253_v32 = vunpack.i.h.bf16 %v7152_v52  ;;  %v1700_v52 = vsel %vm1691_vm6, %v10257_v51, %v5315_v4 }
 0x198   : > { %5693 = vrot.lane.b32.xlu1 %v5692_v56, %s6451_s28  ;;  %v7770_v11 = vpop.permute.xlu2 %5533  ;;  %v10250_v56 = vunpack.i.l.bf16 %v7424_v43  ;;  %v581_v43 = vld [vmem:[#allocation2 + $0xb2] sm:$0xff] }
 0x199   : > { %v10254_v47 = vunpack.i.l.bf16 %v7770_v11  ;;  %v10255_v41 = vunpack.i.h.bf16 %v7770_v11  ;;  %v5717_v38 = vpack.i.bf16 %v581_v43, %v580_v45  ;;  %v10263_v45 = vunpack.i.h.bf16 %v7484_v34 }
 0x19a   : > { %5703 = vrot.lane.b32.xlu0 %v5702_v27, %s6451_s28  ;;  %v7777_v7 = vpop.permute.xlu1 %5483  ;;  %v1758_v8 = vsel %vm1757_vm7, %v10250_v56, %v5455_v36  ;;  %v1678_v27 = vsel %vm1658_vm2, %v1645_v9, %v10253_v32  ;;  %v1701_v32 = vsel %vm1691_vm6, %v10258_v21, %v5316_v46  ;;  %v10259_v9 = vunpack.i.l.bf16 %v7536_v63  ;;  %v584_v46 = vld [vmem:[#allocation2 + $0xda] sm:$0xff] }
 0x19b   : > { %v1791_v35 = vsel %vm1790_vm8, %v1758_v8, %v10254_v47  ;;  %v1792_v36 = vsel %vm1790_vm8, %v1759_v5, %v10255_v41  ;;  %v10260_v5 = vunpack.i.h.bf16 %v7536_v63  ;;  %v7812_v41 = vpop.f32.mrf.mxu0  ;;  %v1934_v4 = vpack.c.bf16 %v1678_v27, %v1677_v22 }
 0x19c   : > { %v7798_v56 = vpop.permute.xlu0 %5493  ;;  %v1891_v12 = vpack.c.bf16 %v1792_v36, %v1791_v35  ;;  %v1733_v8 = vsel %vm1724_vm5, %v1700_v52, %v10259_v9  ;;  %10261 = vst [vmem:[#allocation11_spill] sm:$0xff] %v7812_v41  ;;  %v585_v35 = vld [vmem:[#allocation2 + $0xe2] sm:$0xff]  ;;  %v583_v9 = vld [vmem:[#allocation2 + $0xca] sm:$0xff]  ;;  %v1765_v43 = vsel %vm1757_vm7, %v10263_v45, %v5471_v15  ;;  %v10269_v45 = vunpack.i.l.bf16 %v7558_v14 }
 0x19d   : > { %v1734_v47 = vsel %vm1724_vm5, %v1701_v32, %v10260_v5  ;;  %v582_v32 = vld [vmem:[#allocation2 + $0xc2] sm:$0xff]  ;;  %v5727_v22 = vpack.i.bf16 %v585_v35, %v584_v46  ;;  %v5485_v46 = vunpack.i.l.bf16 %v7777_v7 }
 0x19e   : > { %5713 = vrot.lane.b32.xlu2 %v5712_v31, %s6451_s28  ;;  %2495 = vmatmul.bf16.vlgmr.msra.gmra.mxu2 %v1891_v12  ;;  %v1910_v36 = vpack.c.bf16 %v1734_v47, %v1733_v8  ;;  %v10262_v31 = vunpack.i.l.bf16 %v7484_v34  ;;  %v586_v12 = vld [vmem:[#allocation2 + $0xf2] sm:$0xff]  ;;  %v587_v8 = vld [vmem:[#allocation2 + $0xfa] sm:$0xff]  ;;  %v5722_v34 = vpack.i.bf16 %v583_v9, %v582_v32  ;;  %v590_v32 = vld [vmem:[#allocation2 + $0x122] sm:$0xff] }
 0x19f   : > { %v5732_v35 = vpack.i.bf16 %v587_v8, %v586_v12  ;;  %v591_v9 = vld [vmem:[#allocation2 + $0x12a] sm:$0xff]  ;;  %v589_v12 = vld [vmem:[#allocation2 + $0x112] sm:$0xff] }
 0x1a0   : > { %5708 = vrot.lane.b32.xlu1 %v5707_v48, %s6451_s28  ;;  %2362 = vmatmul.bf16.gmra.mxu0 %v1934_v4  ;;  %v7818_v51 = vpop.permute.xlu2 %5548  ;;  %v1764_v27 = vsel %vm1757_vm7, %v10262_v31, %v5470_v25  ;;  %v10264_v48 = vpack.c.bf16 %v7556_v0, %v7551_v50  ;;  %v10266_v50 = vld [vmem:[#allocation24_spill] sm:$0xff]  ;;  %v10267_v31 = vld [vmem:[#allocation26_spill] sm:$0xff]  ;;  %v5742_v15 = vpack.i.bf16 %v591_v9, %v590_v32 }
 0x1a1   : > { %v10147_v52 = vunpack.i.h.bf16 %v7818_v51  ;;  %v10146_v21 = vunpack.i.l.bf16 %v7818_v51  ;;  %v5185_v0 = vunpack.i.l.bf16 %v10266_v50  ;;  %v5186_v4 = vunpack.i.h.bf16 %v10266_v50  ;;  %v593_v32 = vld [vmem:[#allocation2 + $0x142] sm:$0xff] }
 0x1a2   : > { %5718 = vrot.lane.b32.xlu0 %v5717_v38, %s6451_s28  ;;  %2426 = vmatmul.bf16.gmra.mxu1 %v1910_v36  ;;  %v7823_v3 = vpop.permute.xlu1 %5498  ;;  %v5486_v38 = vunpack.i.h.bf16 %v7777_v7  ;;  %v333_v36 = vld [vmem:[#allocation2 + $0xf0] sm:$0xff]  ;;  %v10271_v7 = vunpack.i.l.bf16 %v10267_v31 }
 0x1a3   : > { %2476 = vmatmul.bf16.gmra.mxu3 %v10264_v48  ;;  %v7837_v5 = vsel %vm1790_vm8, %v1764_v27, %v10146_v21  ;;  %v7842_v47 = vsel %vm1790_vm8, %v1765_v43, %v10147_v52  ;;  %v334_v43 = vld [vmem:[#allocation2 + $0xf8] sm:$0xff]  ;;  %v7855_v48 = vpop.f32.mrf.mxu0  ;;  %v1646_v8 = vsel %vm192_vm0, %v333_v36, %v5185_v0  ;;  %v10272_v0 = vunpack.i.h.bf16 %v10267_v31 }
 0x1a4   : > { %v7844_v25 = vpop.permute.xlu0 %5508  ;;  %10268 = vst [vmem:[#allocation17_spill] sm:$0xff] %v7855_v48  ;;  %v1647_v27 = vsel %vm192_vm0, %v334_v43, %v5186_v4  ;;  %v10270_v48 = vunpack.i.h.bf16 %v7558_v14  ;;  %v1679_v41 = vsel %vm1658_vm2, %v1646_v8, %v10271_v7  ;;  %v592_v36 = vld [vmem:[#allocation2 + $0x13a] sm:$0xff]  ;;  %v5500_v7 = vunpack.i.l.bf16 %v7823_v3  ;;  %v594_v43 = vld [vmem:[#allocation2 + $0x152] sm:$0xff] }
 0x1a5   : > { %10265 = vst [vmem:[#allocation16_spill] sm:$0xff] %v7844_v25 }
 0x1a6   : > { %5728 = vrot.lane.b32.xlu2 %v5727_v22, %s6451_s28  ;;  %v588_v22 = vld [vmem:[#allocation2 + $0x10a] sm:$0xff]  ;;  %v1771_v21 = vsel %vm1757_vm7, %v10270_v48, %v5486_v38  ;;  %v5501_v48 = vunpack.i.h.bf16 %v7823_v3  ;;  %v595_v3 = vld [vmem:[#allocation2 + $0x15a] sm:$0xff] }
 0x1a8   : > { %5723 = vrot.lane.b32.xlu1 %v5722_v34, %s6451_s28  ;;  %v7858_v50 = vpop.permute.xlu2 %5563  ;;  %v1770_v34 = vsel %vm1757_vm7, %v10269_v45, %v5485_v46  ;;  %v5737_v45 = vpack.i.bf16 %v589_v12, %v588_v22  ;;  %v5460_v12 = vunpack.i.l.bf16 %v7595_v18 }
 0x1a9   : > { %v10273_v4 = vunpack.i.l.bf16 %v7858_v50  ;;  %v10274_v46 = vunpack.i.h.bf16 %v7858_v50 }
 0x1aa   : > { %5733 = vrot.lane.b32.xlu0 %v5732_v35, %s6451_s28  ;;  %v7864_v52 = vpop.permute.xlu1 %5513  ;;  %v1680_v35 = vsel %vm1658_vm2, %v1647_v27, %v10272_v0  ;;  %v5027_v27 = vld [vmem:[%s10075_s1 + $0xf8] sm:$0xff] }
 0x1ab   : > { %v7882_v9 = vsel %vm1790_vm8, %v1770_v34, %v10273_v4  ;;  %v7887_v14 = vsel %vm1790_vm8, %v1771_v21, %v10274_v46  ;;  %v1939_v8 = vpack.c.bf16 %v1680_v35, %v1679_v41  ;;  %v5747_v34 = vpack.i.bf16 %v593_v32, %v592_v36  ;;  %v596_v21 = vld [vmem:[#allocation2 + $0x16a] sm:$0xff]  ;;  %v597_v0 = vld [vmem:[#allocation2 + $0x172] sm:$0xff]  ;;  %2576 = vmatpush.bf16.msrb.mxu3 %v5027_v27  ;;  %v7906_v41 = vpop.f32.mrf.mxu0 }
 0x1ac   : > { %v7889_v38 = vpop.permute.xlu0 %5523  ;;  %10275 = vst [vmem:[#allocation20_spill] sm:$0xff] %v7906_v41  ;;  %v10276_v35 = vpack.c.bf16 %v7380_v19, %v7375_v33  ;;  %v5757_v32 = vpack.i.bf16 %v597_v0, %v596_v21  ;;  %v599_v46 = vld [vmem:[#allocation2 + $0x18a] sm:$0xff] }
 0x1ae   : > { %5743 = vrot.lane.b32.xlu2 %v5742_v15, %s6451_s28  ;;  %v5461_v15 = vunpack.i.h.bf16 %v7595_v18  ;;  %v10279_v18 = vpack.c.bf16 %v7710_v1, %v7705_v58  ;;  %v5752_v58 = vpack.i.bf16 %v595_v3, %v594_v43  ;;  %v5515_v43 = vunpack.i.l.bf16 %v7864_v52 }
 0x1af   : > { %v10284_v1 = vunpack.i.h.bf16 %v7465_v54 }
 0x1b0   : > { %5738 = vrot.lane.b32.xlu1 %v5737_v45, %s6451_s28  ;;  %2367 = vmatmul.bf16.gmra.mxu0 %v1939_v8  ;;  %v7900_v22 = vpop.permute.xlu2 %5578  ;;  %v10277_v45 = vunpack.i.l.bf16 %v7609_v20  ;;  %v10278_v8 = vunpack.i.h.bf16 %v7609_v20 }
 0x1b1   : > { %v10280_v33 = vunpack.i.l.bf16 %v7900_v22  ;;  %v10281_v21 = vunpack.i.h.bf16 %v7900_v22 }
 0x1b2   : > { %5748 = vrot.lane.b32.xlu0 %v5747_v34, %s6451_s28  ;;  %2431 = vmatmul.bf16.gmra.mxu1 %v10276_v35  ;;  %v7912_v36 = vpop.permute.xlu1 %5528  ;;  %v1776_v27 = vsel %vm1757_vm7, %v10277_v45, %v5500_v7  ;;  %v1777_v4 = vsel %vm1757_vm7, %v10278_v8, %v5501_v48  ;;  %v598_v34 = vld [vmem:[#allocation2 + $0x182] sm:$0xff]  ;;  %v10283_v8 = vunpack.i.l.bf16 %v7465_v54  ;;  %v1761_v45 = vsel %vm1757_vm7, %v10284_v1, %v5461_v15  ;;  %v600_v1 = vld [vmem:[#allocation2 + $0x19a] sm:$0xff] }
 0x1b3   : > { %2481 = vmatmul.bf16.gmra.mxu3 %v10279_v18  ;;  %v7926_v19 = vsel %vm1790_vm8, %v1776_v27, %v10280_v33  ;;  %v7931_v0 = vsel %vm1790_vm8, %v1777_v4, %v10281_v21  ;;  %v10282_v7 = vld [vmem:[#allocation18_spill] sm:$0xff]  ;;  %v335_v4 = vld [vmem:[#allocation2 + $0x108] sm:$0xff]  ;;  %v336_v33 = vld [vmem:[#allocation2 + $0x110] sm:$0xff]  ;;  %v5762_v3 = vpack.i.bf16 %v599_v46, %v598_v34 }
 0x1b4   : > { %v5191_v20 = vunpack.i.h.bf16 %v10282_v7  ;;  %v5190_v48 = vunpack.i.l.bf16 %v10282_v7  ;;  %v7935_v35 = vpop.permute.xlu0 %5538  ;;  %v1760_v18 = vsel %vm1757_vm7, %v10283_v8, %v5460_v12  ;;  %v5026_v21 = vld [vmem:[%s10075_s1 + $0xf0] sm:$0xff]  ;;  %v5516_v7 = vunpack.i.h.bf16 %v7864_v52  ;;  %v7959_v25 = vpop.f32.mrf.mxu3 }
 0x1b5   : > { %v10151_v27 = vunpack.i.l.bf16 %v7935_v35  ;;  %v10285_v8 = vunpack.i.h.bf16 %v7935_v35  ;;  %2577 = vmatpush.bf16.msrb.mxu3 %v5026_v21 }
 0x1b6   : > { %5758 = vrot.lane.b32.xlu2 %v5757_v32, %s6451_s28  ;;  %v1648_v54 = vsel %vm192_vm0, %v335_v4, %v5190_v48  ;;  %v1649_v46 = vsel %vm192_vm0, %v336_v33, %v5191_v20  ;;  %v5475_v48 = vunpack.i.l.bf16 %v7638_v13  ;;  %v10288_v20 = vunpack.i.l.bf16 %v7658_v62 }
 0x1b7   : > { %v1793_v12 = vsel %vm1790_vm8, %v1760_v18, %v10151_v27  ;;  %v1794_v41 = vsel %vm1790_vm8, %v1761_v45, %v10285_v8  ;;  %v601_v18 = vld [vmem:[#allocation2 + $0x1a2] sm:$0xff]  ;;  %v10286_v45 = vunpack.i.l.bf16 %v7154_v2  ;;  %v10287_v8 = vunpack.i.h.bf16 %v7154_v2 }
 0x1b8   : > { %5753 = vrot.lane.b32.xlu1 %v5752_v58, %s6451_s28  ;;  %v1896_v52 = vpack.c.bf16 %v1794_v41, %v1793_v12  ;;  %v7962_v32 = vpop.permute.xlu2 %5593  ;;  %v5476_v58 = vunpack.i.h.bf16 %v7638_v13  ;;  %v1782_v4 = vsel %vm1757_vm7, %v10288_v20, %v5515_v43  ;;  %v10289_v33 = vunpack.i.h.bf16 %v7658_v62 }
 0x1b9   : > { %v10150_v15 = vunpack.i.h.bf16 %v7962_v32  ;;  %v10149_v34 = vunpack.i.l.bf16 %v7962_v32  ;;  %v1681_v21 = vsel %vm1658_vm2, %v1648_v54, %v10286_v45  ;;  %v1682_v41 = vsel %vm1658_vm2, %v1649_v46, %v10287_v8  ;;  %v7991_v46 = vpop.f32.mrf.mxu0 }
 0x1ba   : > { %v1783_v12 = vsel %vm1757_vm7, %v10289_v33, %v5516_v7  ;;  %5763 = vrot.lane.b32.xlu0 %v5762_v3, %s6451_s28  ;;  %2500 = vmatmul.bf16.gmra.mxu2 %v1896_v52  ;;  %v7983_v54 = vpop.permute.xlu1 %5543  ;;  %10290 = vst [vmem:[#allocation15_spill] sm:$0xff] %v7991_v46  ;;  %v5767_v62 = vpack.i.bf16 %v601_v18, %v600_v1  ;;  %v5531_v8 = vunpack.i.h.bf16 %v7912_v36  ;;  %v5530_v20 = vunpack.i.l.bf16 %v7912_v36 }
 0x1bb   : > { %v1815_v2 = vsel %vm1790_vm8, %v1782_v4, %v10149_v34  ;;  %v1816_v13 = vsel %vm1790_vm8, %v1783_v12, %v10150_v15  ;;  %v1944_v52 = vpack.c.bf16 %v1682_v41, %v1681_v21  ;;  %v10291_v4 = vunpack.i.l.bf16 %v7536_v63  ;;  %v5025_v41 = vld [vmem:[%s10075_s1 + $0xe8] sm:$0xff] }
 0x1bc   : > { %v7993_v43 = vpop.permute.xlu0 %5553  ;;  %v1951_v45 = vpack.c.bf16 %v1816_v13, %v1815_v2  ;;  %v10292_v12 = vunpack.i.h.bf16 %v7536_v63  ;;  %v5466_v36 = vunpack.i.h.bf16 %v7732_v59  ;;  %v5465_v21 = vunpack.i.l.bf16 %v7732_v59  ;;  %2578 = vmatpush.bf16.msrb.mxu3 %v5025_v41 }
 0x1bd   : > { %v10152_v7 = vunpack.i.h.bf16 %v7993_v43  ;;  %v10153_v3 = vunpack.i.l.bf16 %v7993_v43  ;;  %v1766_v33 = vsel %vm1757_vm7, %v10291_v4, %v5475_v48  ;;  %v10155_v48 = vunpack.i.h.bf16 %v7983_v54 }
 0x1be   : > { %v1767_v34 = vsel %vm1757_vm7, %v10292_v12, %v5476_v58  ;;  %v5491_v13 = vunpack.i.h.bf16 %v7679_v57  ;;  %v10294_v4 = vpack.c.bf16 %v7592_v6, %v7587_v17  ;;  %v10295_v12 = vunpack.i.l.bf16 %v7689_v30 }
 0x1bf   : > { %v8008_v1 = vsel %vm1790_vm8, %v1766_v33, %v10153_v3  ;;  %v8013_v18 = vsel %vm1790_vm8, %v1767_v34, %v10152_v7  ;;  %v10154_v34 = vunpack.i.l.bf16 %v7983_v54  ;;  %v10296_v27 = vunpack.i.h.bf16 %v7689_v30 }
 0x1c0   : > { %5768 = vrot.lane.b32.xlu1 %v5767_v62, %s6451_s28  ;;  %2372 = vmatmul.bf16.gmra.mxu0 %v1944_v52  ;;  %v8018_v63 = vpop.permute.xlu2 %5608  ;;  %v5490_v62 = vunpack.i.l.bf16 %v7679_v57  ;;  %v8031_v52 = vpop.f32.mrf.mxu3  ;;  %v1788_v15 = vsel %vm1757_vm7, %v10295_v12, %v5530_v20  ;;  %v5411_v3 = vunpack.i.h.bf16 %v7605_v26  ;;  %v5410_v6 = vunpack.i.l.bf16 %v7605_v26  ;;  %s6457_s28 = smov 96  }
 0x1c1   : > { %v10157_v2 = vunpack.i.h.bf16 %v8018_v63  ;;  %v10156_v59 = vunpack.i.l.bf16 %v8018_v63  ;;  %10293 = vst [vmem:[#allocation19_spill] sm:$0xff] %v8031_v52  ;;  %v1789_v7 = vsel %vm1757_vm7, %v10296_v27, %v5531_v8  ;;  %v10297_v30 = vunpack.i.l.bf16 %v7324_v24 }
 0x1c2   : > { %2436 = vmatmul.bf16.gmra.mxu1 %v10294_v4  ;;  %v8036_v33 = vpop.permute.xlu1 %5558  ;;  %vm4158_vm0 = vcmask 523264   ;;  %vm4224_vm2 = vcmask 785408  }
 0x1c3   : > { %2555 = vmatmul.bf16.vlgmr.msra.gmra.mxu3 %v1951_v45  ;;  %v8048_v57 = vsel %vm1790_vm8, %v1788_v15, %v10156_v59  ;;  %v8053_v17 = vsel %vm1790_vm8, %v1789_v7, %v10157_v2  ;;  %v1762_v27 = vsel %vm1757_vm7, %v10297_v30, %v5465_v21  ;;  %v10298_v45 = vunpack.i.h.bf16 %v7324_v24  ;;  %v8074_v21 = vpop.f32.mrf.mxu0 }
 0x1c4   : > { %v8056_v20 = vpop.permute.xlu0 %5568  ;;  %v1795_v26 = vsel %vm1790_vm8, %v1762_v27, %v10154_v34  ;;  %10299 = vst [vmem:[#allocation21_spill] sm:$0xff] %v8074_v21  ;;  %v1772_v24 = vsel %vm1757_vm7, %v5410_v6, %v5490_v62  ;;  %v5331_v27 = vunpack.i.h.bf16 %v7318_v40  ;;  %v5028_v62 = vld [vmem:[%s10075_s1 + $0x100] sm:$0xff]  ;;  %v10301_v15 = vunpack.i.l.bf16 %v10235_v44 }
 0x1c5   : > { %v1763_v8 = vsel %vm1757_vm7, %v10298_v45, %v5466_v36  ;;  %v10158_v41 = vunpack.i.h.bf16 %v8056_v20  ;;  %v10159_v7 = vunpack.i.l.bf16 %v8056_v20  ;;  %v1773_v36 = vsel %vm1757_vm7, %v5411_v3, %v5491_v13  ;;  %v5024_v13 = vld [vmem:[%s10075_s1 + $0xe0] sm:$0xff]  ;;  %2672 = vmatpush.bf16.msrb.mxu0 %v5028_v62 }
 0x1c6   : > { %v1796_v4 = vsel %vm1790_vm8, %v1763_v8, %v10155_v48  ;;  %v5330_v45 = vunpack.i.l.bf16 %v7318_v40  ;;  %v5505_v48 = vunpack.i.l.bf16 %v7713_v39  ;;  %2579 = vmatpush.bf16.msrb.mxu3 %v5024_v13 }
 0x1c7   : > { %v8081_v12 = vsel %vm1790_vm8, %v1772_v24, %v10159_v7  ;;  %v8086_v30 = vsel %vm1790_vm8, %v1773_v36, %v10158_v41  ;;  %v1901_v8 = vpack.c.bf16 %v1796_v4, %v1795_v26  ;;  %v5506_v36 = vunpack.i.h.bf16 %v7713_v39 }
 0x1c8   : > { %v8090_v34 = vpop.permute.xlu2 %5623  ;;  %v10162_v26 = vunpack.i.h.bf16 %v7649_v55  ;;  %v10163_v4 = vunpack.i.l.bf16 %v7649_v55  ;;  %v8106_v59 = vpop.f32.mrf.mxu3  ;;  %v1706_v24 = vsel %vm1691_vm6, %v10301_v15, %v5330_v45  ;;  %v10302_v41 = vunpack.i.h.bf16 %v10235_v44 }
 0x1c9   : > { %10300 = vst [vmem:[#allocation25_spill] sm:$0xff] %v8106_v59  ;;  %v1739_v62 = vsel %vm1724_vm5, %v1706_v24, %v5410_v6  ;;  %v10164_v24 = vunpack.i.h.bf16 %v8036_v33 }
 0x1ca   : > { %2505 = vmatmul.bf16.gmra.mxu2 %v1901_v8  ;;  %v8102_v40 = vpop.permute.xlu1 %5573  ;;  %v1707_v39 = vsel %vm1691_vm6, %v10302_v41, %v5331_v27  ;;  %v1778_v58 = vsel %vm1757_vm7, %v10163_v4, %v5505_v48  ;;  %v1779_v15 = vsel %vm1757_vm7, %v10162_v26, %v5506_v36  ;;  %v5023_v48 = vld [vmem:[%s10075_s1 + $0xd8] sm:$0xff] }
 0x1cb   : > { %v1740_v7 = vsel %vm1724_vm5, %v1707_v39, %v5411_v3  ;;  %v8136_v6 = vpop.f32.mrf.mxu0  ;;  %2580 = vmatpush.bf16.msrb.mxu3 %v5023_v48  ;;  %v10305_v48 = vunpack.i.l.bf16 %v7687_v10 }
 0x1cc   : > { %v8108_v2 = vpop.permute.xlu0 %5583  ;;  %10303 = vst [vmem:[#allocation14_spill] sm:$0xff] %v8136_v6  ;;  %v1925_v3 = vpack.c.bf16 %v1740_v7, %v1739_v62 }
 0x1cd   : > { %v10160_v8 = vunpack.i.h.bf16 %v8108_v2  ;;  %v10161_v13 = vunpack.i.l.bf16 %v8108_v2 }
 0x1cf   : > { %v8129_v44 = vsel %vm1790_vm8, %v1778_v58, %v10161_v13  ;;  %v8134_v41 = vsel %vm1790_vm8, %v1779_v15, %v10160_v8  ;;  %v10165_v58 = vunpack.i.l.bf16 %v8036_v33  ;;  %v5521_v15 = vunpack.i.h.bf16 %v7748_v49 }
 0x1d0   : > { %v5639_v27 = vpop.permute.xlu2 %5638  ;;  %v5520_v8 = vunpack.i.l.bf16 %v7748_v49 }
 0x1d1   : > { %v5641_v36 = vunpack.i.h.bf16 %v5639_v27  ;;  %v5640_v39 = vunpack.i.l.bf16 %v5639_v27 }
 0x1d2   : > { %2441 = vmatmul.bf16.gmra.mxu1 %v1925_v3  ;;  %v8147_v7 = vpop.permute.xlu1 %5588  ;;  %v8163_v3 = vpop.f32.mrf.mxu3  ;;  %v1784_v26 = vsel %vm1757_vm7, %v10305_v48, %v5520_v8  ;;  %v10168_v8 = vunpack.i.h.bf16 %v8102_v40 }
 0x1d3   : > { %v8152_v62 = vsel %vm1823_vm9, %v10165_v58, %v5640_v39  ;;  %v8157_v45 = vsel %vm1823_vm9, %v10164_v24, %v5641_v36  ;;  %10304 = vst [vmem:[#allocation22_spill] sm:$0xff] %v8163_v3  ;;  %v10306_v39 = vunpack.i.h.bf16 %v7687_v10  ;;  %v5022_v3 = vld [vmem:[%s10075_s1 + $0xd0] sm:$0xff]  ;;  %v10167_v10 = vunpack.i.l.bf16 %v8102_v40 }
 0x1d4   : > { %v8159_v27 = vpop.permute.xlu0 %5598  ;;  %2581 = vmatpush.bf16.msrb.mxu3 %v5022_v3  ;;  %v10311_v6 = vunpack.i.h.bf16 %v8147_v7 }
 0x1d5   : > { %v10166_v13 = vunpack.i.h.bf16 %v8159_v27  ;;  %v10169_v49 = vunpack.i.l.bf16 %v8159_v27  ;;  %v1785_v4 = vsel %vm1757_vm7, %v10306_v39, %v5521_v15  ;;  %v8182_v39 = vpop.f32.mrf.mxu0 }
 0x1d6   : > { %10307 = vst [vmem:[#allocation23_spill] sm:$0xff] %v8182_v39  ;;  %v10310_v39 = vpack.c.bf16 %v7422_v28, %v7417_v23  ;;  %v10314_v28 = vunpack.i.h.bf16 %v7519_v53 }
 0x1d7   : > { %v1817_v36 = vsel %vm1790_vm8, %v1784_v26, %v10169_v49  ;;  %v1818_v24 = vsel %vm1790_vm8, %v1785_v4, %v10166_v13  ;;  %v10308_v26 = vpack.c.bf16 %v7842_v47, %v7837_v5  ;;  %v5526_v13 = vunpack.i.h.bf16 %v7889_v38 }
 0x1d8   : > { %v1956_v58 = vpack.c.bf16 %v1818_v24, %v1817_v36  ;;  %v5654_v52 = vpop.permute.xlu2 %5653  ;;  %v5525_v5 = vunpack.i.l.bf16 %v7889_v38 }
 0x1d9   : > { %v5656_v48 = vunpack.i.h.bf16 %v5654_v52  ;;  %v5655_v15 = vunpack.i.l.bf16 %v5654_v52 }
 0x1da   : > { %2510 = vmatmul.bf16.gmra.mxu2 %v10308_v26  ;;  %2560 = vmatmul.bf16.gmra.mxu3 %v1956_v58  ;;  %v5604_v4 = vpop.permute.xlu1 %5603  ;;  %v10170_v58 = vunpack.i.l.bf16 %v8147_v7  ;;  %v8203_v26 = vpop.f32.mrf.mxu3 }
 0x1db   : > { %v8190_v24 = vsel %vm1823_vm9, %v10167_v10, %v5655_v15  ;;  %v8195_v36 = vsel %vm1823_vm9, %v10168_v8, %v5656_v48  ;;  %10309 = vst [vmem:[#allocation24_spill] sm:$0xff] %v8203_v26  ;;  %v5021_v10 = vld [vmem:[%s10075_s1 + $0xc8] sm:$0xff]  ;;  %v5606_v48 = vunpack.i.h.bf16 %v5604_v4  ;;  %v5605_v8 = vunpack.i.l.bf16 %v5604_v4 }
 0x1dc   : > { %v8197_v52 = vpop.permute.xlu0 %5613  ;;  %2582 = vmatpush.bf16.msrb.mxu3 %v5021_v10  ;;  %v1787_v10 = vsel %vm1757_vm7, %v10314_v28, %v5526_v13 }
 0x1dd   : > { %v8221_v46 = vpop.f32.mrf.mxu0 }
 0x1de   : > { %10312 = vst [vmem:[#allocation26_spill] sm:$0xff] %v8221_v46 }
 0x1e0   : > { %v5669_v15 = vpop.permute.xlu2 %5668 }
 0x1e1   : > { %v5671_v3 = vunpack.i.h.bf16 %v5669_v15  ;;  %v5670_v49 = vunpack.i.l.bf16 %v5669_v15  ;;  %v10313_v15 = vunpack.i.l.bf16 %v7519_v53 }
 0x1e2   : > { %2446 = vmatmul.bf16.gmra.mxu1 %v10310_v39  ;;  %v5619_v38 = vpop.permute.xlu1 %5618  ;;  %v1820_v39 = vsel %vm1790_vm8, %v1787_v10, %v5606_v48  ;;  %v8236_v59 = vpop.f32.mrf.mxu3 }
 0x1e3   : > { %v8214_v47 = vsel %vm1823_vm9, %v10170_v58, %v5670_v49  ;;  %v8219_v21 = vsel %vm1823_vm9, %v10311_v6, %v5671_v3  ;;  %v1786_v23 = vsel %vm1757_vm7, %v10313_v15, %v5525_v5  ;;  %v5020_v6 = vld [vmem:[%s10075_s1 + $0xc0] sm:$0xff]  ;;  %10315 = vst [vmem:[#allocation18_spill] sm:$0xff] %v8236_v59  ;;  %v10316_v5 = vpack.c.bf16 %v8013_v18, %v8008_v1 }
 0x1e4   : > { %v8223_v4 = vpop.permute.xlu0 %5628  ;;  %v1819_v49 = vsel %vm1790_vm8, %v1786_v23, %v5605_v8  ;;  %2583 = vmatpush.bf16.msrb.mxu3 %v5020_v6  ;;  %v10320_v6 = vunpack.i.h.bf16 %v7858_v50 }
 0x1e5   : > { %v1961_v58 = vpack.c.bf16 %v1820_v39, %v1819_v49  ;;  %v10318_v39 = vunpack.i.h.bf16 %v7993_v43 }
 0x1e8   : > { %v5684_v26 = vpop.permute.xlu2 %5683 }
 0x1e9   : > { %v5686_v3 = vunpack.i.h.bf16 %v5684_v26  ;;  %v5685_v46 = vunpack.i.l.bf16 %v5684_v26  ;;  %v10317_v26 = vunpack.i.l.bf16 %v7993_v43 }
 0x1ea   : > { %2515 = vmatmul.bf16.gmra.mxu2 %v10316_v5  ;;  %2565 = vmatmul.bf16.gmra.mxu3 %v1961_v58  ;;  %v5634_v53 = vpop.permute.xlu1 %5633  ;;  %v5621_v5 = vunpack.i.h.bf16 %v5619_v38 }
 0x1eb   : > { %v8242_v13 = vsel %vm1823_vm9, %v5605_v8, %v5685_v46  ;;  %v8245_v15 = vsel %vm1823_vm9, %v5606_v48, %v5686_v3  ;;  %v5636_v23 = vunpack.i.h.bf16 %v5634_v53  ;;  %v5635_v28 = vunpack.i.l.bf16 %v5634_v53  ;;  %v8255_v48 = vpop.f32.mrf.mxu0 }
 0x1ec   : > { %v5644_v10 = vpop.permute.xlu0 %5643  ;;  %v5481_v46 = vunpack.i.h.bf16 %v7757_v42  ;;  %v5480_v8 = vunpack.i.l.bf16 %v7757_v42  ;;  %10319 = vst [vmem:[#allocation27_spill] sm:$0xff] %v8255_v48  ;;  %v5620_v3 = vunpack.i.l.bf16 %v5619_v38 }
 0x1ed   : > { %v1832_v49 = vsel %vm1823_vm9, %v10317_v26, %v5635_v28  ;;  %v1833_v1 = vsel %vm1823_vm9, %v10318_v39, %v5636_v23  ;;  %v5646_v18 = vunpack.i.h.bf16 %v5644_v10  ;;  %v5645_v58 = vunpack.i.l.bf16 %v5644_v10 }
 0x1ee   : > { %v10321_v28 = vunpack.i.l.bf16 %v7858_v50  ;;  %v10322_v26 = vunpack.i.l.bf16 %v7935_v35  ;;  %v10323_v39 = vpack.c.bf16 %v7635_v37, %v7630_v29  ;;  %v10324_v50 = vunpack.i.l.bf16 %v7359_v16  ;;  %v8291_v37 = vpop.f32.mrf.mxu3 }
 0x1ef   : > { %v8260_v53 = vsel %vm1823_vm9, %v10320_v6, %v5646_v18  ;;  %v10325_v6 = vunpack.i.h.bf16 %v7359_v16  ;;  %v10326_v10 = vunpack.i.h.bf16 %v7935_v35 }
 0x1f0   : > { %v8265_v43 = vsel %vm1823_vm9, %v10321_v28, %v5645_v58  ;;  %v8267_v23 = vpop.permute.xlu2 %5698  ;;  %v1826_v38 = vsel %vm1823_vm9, %v10322_v26, %v5620_v3  ;;  %v1768_v58 = vsel %vm1757_vm7, %v10324_v50, %v5480_v8  ;;  %v10328_v8 = vunpack.i.l.bf16 %v8036_v33 }
 0x1f1   : > { %v1769_v28 = vsel %vm1757_vm7, %v10325_v6, %v5481_v46  ;;  %v1827_v42 = vsel %vm1823_vm9, %v10326_v10, %v5621_v5  ;;  %v10327_v3 = vunpack.i.l.bf16 %v8267_v23  ;;  %v10329_v46 = vunpack.i.h.bf16 %v8036_v33 }
 0x1f2   : > { %2451 = vmatmul.bf16.gmra.mxu1 %v10323_v39  ;;  %v5649_v18 = vpop.permute.xlu1 %5648  ;;  %v1801_v16 = vsel %vm1790_vm8, %v1768_v58, %v10328_v8  ;;  %v10330_v5 = vunpack.i.h.bf16 %v8267_v23  ;;  %v10331_v39 = vunpack.i.l.bf16 %v8056_v20  ;;  %v5345_v58 = vunpack.i.l.bf16 %v7346_v61 }
 0x1f3   : > { %v5651_v59 = vunpack.i.h.bf16 %v5649_v18  ;;  %v5650_v48 = vunpack.i.l.bf16 %v5649_v18  ;;  %v8289_v29 = vsel %vm1856_vm10, %v1826_v38, %v10327_v3  ;;  %v1802_v35 = vsel %vm1790_vm8, %v1769_v28, %v10329_v46 }
 0x1f4   : > { %v5659_v26 = vpop.permute.xlu0 %5658  ;;  %v8302_v10 = vsel %vm1856_vm10, %v1827_v42, %v10330_v5  ;;  %v10332_v18 = vunpack.i.h.bf16 %v8056_v20  ;;  %v5346_v28 = vunpack.i.h.bf16 %v7346_v61  ;;  %v10333_v42 = vunpack.i.h.bf16 %v7900_v22 }
 0x1f5   : > { %v1838_v38 = vsel %vm1823_vm9, %v10331_v39, %v5650_v48  ;;  %v5661_v6 = vunpack.i.h.bf16 %v5659_v26  ;;  %v5660_v3 = vunpack.i.l.bf16 %v5659_v26  ;;  %v10334_v48 = vunpack.i.l.bf16 %v7900_v22 }
 0x1f6   : > { %v1839_v50 = vsel %vm1823_vm9, %v10332_v18, %v5651_v59  ;;  %v8324_v59 = vpop.f32.mrf.mxu0  ;;  %v1916_v26 = vpack.c.bf16 %v1802_v35, %v1801_v16  ;;  %v10336_v61 = vpack.c.bf16 %v8053_v17, %v8048_v57  ;;  %v10337_v22 = vunpack.i.l.bf16 %v10267_v31 }
 0x1f7   : > { %v8317_v8 = vsel %vm1823_vm9, %v10333_v42, %v5661_v6  ;;  %v8322_v20 = vsel %vm1823_vm9, %v10334_v48, %v5660_v3  ;;  %10335 = vst [vmem:[#allocation28_spill] sm:$0xff] %v8324_v59  ;;  %v10338_v16 = vunpack.i.h.bf16 %v10267_v31  ;;  %v10339_v57 = vunpack.i.l.bf16 %v7649_v55 }
 0x1f8   : > { %v8326_v46 = vpop.permute.xlu2 %5713  ;;  %v1712_v6 = vsel %vm1691_vm6, %v10337_v22, %v5345_v58  ;;  %v10353_v59 = vunpack.i.l.bf16 %v7770_v11 }
 0x1f9   : > { %v10172_v5 = vunpack.i.h.bf16 %v8326_v46  ;;  %v10171_v39 = vunpack.i.l.bf16 %v8326_v46  ;;  %v1713_v35 = vsel %vm1691_vm6, %v10338_v16, %v5346_v28  ;;  %v1745_v17 = vsel %vm1724_vm5, %v1712_v6, %v10339_v57  ;;  %v8361_v6 = vpop.f32.mrf.mxu3 }
 0x1fa   : > { %2520 = vmatmul.bf16.gmra.mxu2 %v1916_v26  ;;  %2570 = vmatmul.bf16.gmra.mxu3 %v10336_v61  ;;  %v5664_v18 = vpop.permute.xlu1 %5663  ;;  %v10340_v61 = vunpack.i.h.bf16 %v7649_v55  ;;  %v10341_v28 = vunpack.i.l.bf16 %v8108_v2  ;;  %10343 = vst [vmem:[#allocation29_spill] sm:$0xff] %v8361_v6  ;;  %v10345_v57 = vunpack.i.l.bf16 %v7962_v32 }
 0x1fb   : > { %v5666_v3 = vunpack.i.h.bf16 %v5664_v18  ;;  %v5665_v42 = vunpack.i.l.bf16 %v5664_v18  ;;  %v8342_v48 = vsel %vm1856_vm10, %v1832_v49, %v10171_v39  ;;  %v8353_v31 = vsel %vm1856_vm10, %v1833_v1, %v10172_v5 }
 0x1fc   : > { %v5674_v26 = vpop.permute.xlu0 %5673  ;;  %v1746_v58 = vsel %vm1724_vm5, %v1713_v35, %v10340_v61  ;;  %v10342_v49 = vunpack.i.h.bf16 %v8108_v2  ;;  %v10344_v35 = vunpack.i.h.bf16 %v7962_v32 }
 0x1fd   : > { %v1844_v18 = vsel %vm1823_vm9, %v10341_v28, %v5665_v42  ;;  %v5676_v16 = vunpack.i.h.bf16 %v5674_v26  ;;  %v5675_v39 = vunpack.i.l.bf16 %v5674_v26  ;;  %v1940_v2 = vpack.c.bf16 %v1746_v58, %v1745_v17 }
 0x1fe   : > { %v1845_v22 = vsel %vm1823_vm9, %v10342_v49, %v5666_v3  ;;  %v8379_v28 = vpop.f32.mrf.mxu0  ;;  %v10347_v58 = vunpack.i.l.bf16 %v8159_v27 }
 0x1ff   : > { %v8368_v1 = vsel %vm1823_vm9, %v10344_v35, %v5676_v16  ;;  %v8373_v42 = vsel %vm1823_vm9, %v10345_v57, %v5675_v39  ;;  %10346 = vst [vmem:[#allocation30_spill] sm:$0xff] %v8379_v28  ;;  %v10348_v35 = vunpack.i.h.bf16 %v8159_v27  ;;  %v5616_v27 = vunpack.i.h.bf16 %v8197_v52 }
 0x200   : > { %v8375_v61 = vpop.permute.xlu2 %5728 }
 0x201   : > { %v10174_v3 = vunpack.i.h.bf16 %v8375_v61  ;;  %v10173_v26 = vunpack.i.l.bf16 %v8375_v61 }
 0x202   : > { %2456 = vmatmul.bf16.gmra.mxu1 %v1940_v2  ;;  %v5679_v49 = vpop.permute.xlu1 %5678 }
 0x203   : > { %v5681_v55 = vunpack.i.h.bf16 %v5679_v49  ;;  %v5680_v5 = vunpack.i.l.bf16 %v5679_v49  ;;  %v8384_v32 = vsel %vm1856_vm10, %v1838_v38, %v10173_v26  ;;  %v8389_v17 = vsel %vm1856_vm10, %v1839_v50, %v10174_v3 }
 0x204   : > { %v5689_v39 = vpop.permute.xlu0 %5688  ;;  %v10349_v26 = vunpack.i.h.bf16 %v8018_v63  ;;  %v10350_v3 = vunpack.i.l.bf16 %v8018_v63  ;;  %v5626_v38 = vunpack.i.h.bf16 %v8090_v34 }
 0x205   : > { %v1850_v16 = vsel %vm1823_vm9, %v10347_v58, %v5680_v5  ;;  %v1851_v57 = vsel %vm1823_vm9, %v10348_v35, %v5681_v55  ;;  %v5691_v2 = vunpack.i.h.bf16 %v5689_v39  ;;  %v5690_v49 = vunpack.i.l.bf16 %v5689_v39 }
 0x206   : > { %v8397_v33 = vpop.f32.mrf.mxu3  ;;  %v5615_v55 = vunpack.i.l.bf16 %v8197_v52  ;;  %v10352_v58 = vunpack.i.h.bf16 %v7770_v11  ;;  %v10356_v11 = vunpack.i.h.bf16 %v7983_v54 }
 0x207   : > { %v8404_v50 = vsel %vm1823_vm9, %v10349_v26, %v5691_v2  ;;  %v8409_v5 = vsel %vm1823_vm9, %v10350_v3, %v5690_v49  ;;  %v10351_v26 = vpack.c.bf16 %v7887_v14, %v7882_v9  ;;  %v5625_v3 = vunpack.i.l.bf16 %v8090_v34  ;;  %v8433_v9 = vpop.f32.mrf.mxu0 }
 0x208   : > { %v8413_v39 = vpop.permute.xlu2 %5743  ;;  %v1825_v28 = vsel %vm1823_vm9, %v10352_v58, %v5616_v27  ;;  %v1824_v6 = vsel %vm1823_vm9, %v10353_v59, %v5615_v55  ;;  %10354 = vst [vmem:[#allocation31_spill] sm:$0xff] %v8433_v9  ;;  %v1829_v59 = vsel %vm1823_vm9, %v10356_v11, %v5626_v38 }
 0x209   : > { %v10175_v35 = vunpack.i.l.bf16 %v8413_v39  ;;  %v10355_v34 = vunpack.i.h.bf16 %v8413_v39 }
 0x20a   : > { %2525 = vmatmul.bf16.gmra.mxu2 %v10351_v26  ;;  %v5694_v63 = vpop.permute.xlu1 %5693 }
 0x20b   : > { %v5696_v2 = vunpack.i.h.bf16 %v5694_v63  ;;  %v5695_v49 = vunpack.i.l.bf16 %v5694_v63  ;;  %v8425_v52 = vsel %vm1856_vm10, %v1844_v18, %v10175_v35  ;;  %v8440_v26 = vsel %vm1856_vm10, %v1845_v22, %v10355_v34 }
 0x20c   : > { %v8435_v14 = vpop.permute.xlu0 %5703  ;;  %v10358_v34 = vunpack.i.l.bf16 %v7983_v54  ;;  %v10362_v22 = vunpack.i.l.bf16 %v8267_v23 }
 0x20d   : > { %v1857_v18 = vsel %vm1856_vm10, %v1824_v6, %v5695_v49  ;;  %v1858_v63 = vsel %vm1856_vm10, %v1825_v28, %v5696_v2  ;;  %v1893_v35 = vpack.c.bf16 %v5696_v2, %v5695_v49  ;;  %v10179_v27 = vunpack.i.h.bf16 %v8435_v14 }
 0x20e   : > { %v1892_v55 = vpack.c.bf16 %v1858_v63, %v1857_v18  ;;  %v10184_v58 = vunpack.i.l.bf16 %v8435_v14  ;;  %v8449_v9 = vpop.f32.mrf.mxu3  ;;  %v1828_v6 = vsel %vm1823_vm9, %v10358_v34, %v5625_v3  ;;  %v10359_v3 = vld [vmem:[#allocation13_spill] sm:$0xff] }
 0x20f   : > { %10357 = vst [vmem:[#allocation32_spill] sm:$0xff] %v8449_v9  ;;  %4922 = vmatmul.msk.bf16.vlgmr.msrb.gmra.mxu0 %vm2253_vm11, %v1893_v35  ;;  %v8460_v28 = vsel %vm1856_vm10, %v1829_v59, %v10179_v27  ;;  %v10360_v18 = vpack.c.bf16 %v7482_v60, %v10359_v3  ;;  %v8492_v60 = vpop.f32.mrf.mxu0 }
 0x210   : > { %2584 = vmatmul.bf16.vlgmr.msrb.gmra.mxu3 %v1892_v55  ;;  %v8462_v38 = vpop.permute.xlu2 %5758  ;;  %v8467_v2 = vsel %vm1856_vm10, %v1828_v6, %v10184_v58 }
 0x211   : > { %v10176_v49 = vunpack.i.h.bf16 %v8462_v38  ;;  %v10177_v54 = vunpack.i.l.bf16 %v8462_v38 }
 0x212   : > { %2461 = vmatmul.bf16.gmra.mxu1 %v10360_v18  ;;  %v8476_v63 = vpop.permute.xlu1 %5708 }
 0x213   : > { %v8481_v11 = vsel %vm1856_vm10, %v1850_v16, %v10177_v54  ;;  %v8488_v55 = vsel %vm1856_vm10, %v1851_v57, %v10176_v49  ;;  %v10361_v54 = vpack.c.bf16 %v8086_v30, %v8081_v12 }
 0x214   : > { %v8483_v59 = vpop.permute.xlu0 %5718 }
 0x215   : > { %v10180_v34 = vunpack.i.h.bf16 %v8483_v59  ;;  %v10178_v6 = vunpack.i.l.bf16 %v8483_v59 }
 0x216   : > { %v8494_v3 = vpop.f32.mrf.mxu3 }
 0x217   : > { %v8502_v16 = vsel %vm1856_vm10, %v8152_v62, %v10178_v6  ;;  %v8508_v57 = vsel %vm1856_vm10, %v8157_v45, %v10180_v34  ;;  %v10363_v62 = vunpack.i.h.bf16 %v8267_v23 }
 0x219   : > { %v1898_v6 = vpack.c.bf16 %v10363_v62, %v10362_v22  ;;  %v5495_v22 = vunpack.i.l.bf16 %v7798_v56  ;;  %v5496_v62 = vunpack.i.h.bf16 %v7798_v56  ;;  %v10370_v56 = vunpack.i.h.bf16 %v8102_v40 }
 0x21a   : > { %2530 = vmatmul.bf16.gmra.mxu2 %v10361_v54  ;;  %v8515_v18 = vpop.permute.xlu1 %5723 }
 0x21b   : > { %v10182_v35 = vunpack.i.h.bf16 %v8515_v18  ;;  %v10181_v27 = vunpack.i.l.bf16 %v8515_v18 }
 0x21c   : > { %v8523_v45 = vpop.permute.xlu0 %5733 }
 0x21d   : > { %v10185_v34 = vunpack.i.h.bf16 %v8523_v45  ;;  %v10183_v49 = vunpack.i.l.bf16 %v8523_v45  ;;  %v8531_v12 = vsel %vm1856_vm10, %v8265_v43, %v10181_v27  ;;  %v8539_v23 = vsel %vm1856_vm10, %v8260_v53, %v10182_v35  ;;  %v8552_v27 = vpop.f32.mrf.mxu0 }
 0x21e   : > { %v8533_v30 = vpop.f32.mrf.mxu3  ;;  %v10365_v53 = vpack.c.bf16 %v8302_v10, %v8289_v29 }
 0x21f   : > { %10364 = vst [vmem:[#allocation13_spill] sm:$0xff] %v8533_v30  ;;  %4923 = vmatmul.msk.bf16.gmra.mxu0 %vm2253_vm11, %v1898_v6  ;;  %v8549_v43 = vsel %vm1856_vm10, %v8190_v24, %v10183_v49  ;;  %v8561_v6 = vsel %vm1856_vm10, %v8195_v36, %v10185_v34  ;;  %v10366_v49 = vld [vmem:[#allocation12_spill] sm:$0xff]  ;;  %v10369_v34 = vunpack.i.l.bf16 %v8102_v40 }
 0x220   : > { %2589 = vmatmul.bf16.gmra.mxu3 %v10365_v53  ;;  %v10367_v58 = vunpack.i.l.bf16 %v10366_v49  ;;  %v10368_v53 = vunpack.i.h.bf16 %v10366_v49 }
 0x222   : > { %v8565_v35 = vpop.permute.xlu1 %5738  ;;  %v1774_v29 = vsel %vm1757_vm7, %v10367_v58, %v5495_v22  ;;  %v1775_v36 = vsel %vm1757_vm7, %v10368_v53, %v5496_v62 }
 0x223   : > { %v1807_v54 = vsel %vm1790_vm8, %v1774_v29, %v10369_v34  ;;  %v1808_v9 = vsel %vm1790_vm8, %v1775_v36, %v10370_v56  ;;  %v10371_v58 = vunpack.i.l.bf16 %v8565_v35  ;;  %v10372_v62 = vunpack.i.h.bf16 %v8565_v35 }
 0x224   : > { %v8572_v10 = vpop.permute.xlu0 %5748  ;;  %v1931_v56 = vpack.c.bf16 %v1808_v9, %v1807_v54 }
 0x225   : > { %v10187_v30 = vunpack.i.h.bf16 %v8572_v10  ;;  %v10186_v24 = vunpack.i.l.bf16 %v8572_v10  ;;  %v8589_v22 = vsel %vm1856_vm10, %v8322_v20, %v10371_v58  ;;  %v8597_v34 = vsel %vm1856_vm10, %v8317_v8, %v10372_v62  ;;  %v8615_v53 = vpop.f32.mrf.mxu0 }
 0x226   : > { %v8591_v49 = vpop.f32.mrf.mxu3  ;;  %v10373_v58 = vunpack.i.l.bf16 %v8435_v14 }
 0x227   : > { %v8605_v40 = vsel %vm1856_vm10, %v8214_v47, %v10186_v24  ;;  %v8611_v20 = vsel %vm1856_vm10, %v8219_v21, %v10187_v30  ;;  %v10374_v47 = vunpack.i.h.bf16 %v8435_v14 }
 0x229   : > { %v1903_v62 = vpack.c.bf16 %v10374_v47, %v10373_v58 }
 0x22a   : > { %2535 = vmatmul.bf16.gmra.mxu2 %v1931_v56  ;;  %v8617_v36 = vpop.permute.xlu1 %5753 }
 0x22b   : > { %v10188_v9 = vunpack.i.h.bf16 %v8617_v36  ;;  %v10191_v54 = vunpack.i.l.bf16 %v8617_v36 }
 0x22c   : > { %v8625_v24 = vpop.permute.xlu0 %5763 }
 0x22d   : > { %v10190_v21 = vunpack.i.h.bf16 %v8625_v24  ;;  %v10189_v8 = vunpack.i.l.bf16 %v8625_v24  ;;  %v8633_v56 = vsel %vm1856_vm10, %v8373_v42, %v10191_v54  ;;  %v8641_v14 = vsel %vm1856_vm10, %v8368_v1, %v10188_v9 }
 0x22e   : > { %v8635_v30 = vpop.f32.mrf.mxu3  ;;  %v10376_v42 = vpack.c.bf16 %v8460_v28, %v8467_v2  ;;  %v5631_v2 = vunpack.i.h.bf16 %v8223_v4  ;;  %v5711_v54 = vunpack.i.h.bf16 %v8476_v63 }
 0x22f   : > { %10375 = vst [vmem:[#allocation12_spill] sm:$0xff] %v8635_v30  ;;  %4924 = vmatmul.msk.bf16.gmra.mxu0 %vm2253_vm11, %v1903_v62  ;;  %v8650_v47 = vsel %vm1856_vm10, %v8242_v13, %v10189_v8  ;;  %v8659_v1 = vsel %vm1856_vm10, %v8245_v15, %v10190_v21  ;;  %v8667_v8 = vpop.f32.mrf.mxu0 }
 0x230   : > { %2594 = vmatmul.bf16.gmra.mxu3 %v10376_v42  ;;  %10377 = vst [vmem:[#allocation33_spill] sm:$0xff] %v8667_v8  ;;  %v5630_v42 = vunpack.i.l.bf16 %v8223_v4  ;;  %v10382_v4 = vpack.c.bf16 %v7931_v0, %v7926_v19  ;;  %v10383_v0 = vpack.c.bf16 %v8134_v41, %v8129_v44 }
 0x232   : > { %v8663_v58 = vpop.permute.xlu1 %5768 }
 0x233   : > { %v10193_v9 = vunpack.i.h.bf16 %v8663_v58  ;;  %v10192_v13 = vunpack.i.l.bf16 %v8663_v58 }
 0x235   : > { %v8673_v28 = vsel %vm1856_vm10, %v8409_v5, %v10192_v13  ;;  %v8679_v15 = vsel %vm1856_vm10, %v8404_v50, %v10193_v9  ;;  %v5710_v5 = vunpack.i.l.bf16 %v8476_v63  ;;  %v10380_v13 = vunpack.i.h.bf16 %v7818_v51 }
 0x236   : > { %10378 = vst [vmem:[#allocation34_spill] sm:$0xff] %v8673_v28  ;;  %v8683_v62 = vpop.f32.mrf.mxu3  ;;  %v10381_v50 = vunpack.i.l.bf16 %v7818_v51  ;;  %v2468_v51 = vadd.f32 %v8397_v33, %v7959_v25  ;;  %v10387_v33 = vpack.c.bf16 %v8353_v31, %v8342_v48 }
 0x237   : > { %10379 = vst [vmem:[#allocation35_spill] sm:$0xff] %v8679_v15  ;;  %v1831_v29 = vsel %vm1823_vm9, %v10380_v13, %v5631_v2  ;;  %v1908_v30 = vpack.c.bf16 %v5711_v54, %v5710_v5  ;;  %v8700_v28 = vpop.f32.mrf.mxu0 }
 0x238   : > { %v1830_v9 = vsel %vm1823_vm9, %v10381_v50, %v5630_v42  ;;  %v1864_v21 = vsel %vm1856_vm10, %v1831_v29, %v5711_v54  ;;  %v10384_v29 = vunpack.i.l.bf16 %v8326_v46  ;;  %v10391_v50 = vunpack.i.l.bf16 %v8147_v7 }
 0x239   : > { %v1863_v8 = vsel %vm1856_vm10, %v1830_v9, %v5710_v5  ;;  %v10385_v9 = vunpack.i.h.bf16 %v8326_v46 }
 0x23a   : > { %2540 = vmatmul.bf16.gmra.mxu2 %v10382_v4  ;;  %v1907_v15 = vpack.c.bf16 %v1864_v21, %v1863_v8 }
 0x23b   : > { %v1913_v8 = vpack.c.bf16 %v10385_v9, %v10384_v29  ;;  %v8744_v9 = vpop.f32.mrf.mxu1 }
 0x23e   : > { %v8702_v63 = vpop.f32.mrf.mxu3 }
 0x23f   : > { %4925 = vmatmul.msk.bf16.gmra.mxu0 %vm2253_vm11, %v1908_v30  ;;  %v8709_v19 = vpop.f32.mrf.mxu0  ;;  %v10386_v30 = vld [vmem:[#allocation16_spill] sm:$0xff] }
 0x240   : > { %2599 = vmatmul.bf16.gmra.mxu3 %v1907_v15  ;;  %v5511_v54 = vunpack.i.h.bf16 %v10386_v30  ;;  %v5510_v25 = vunpack.i.l.bf16 %v10386_v30  ;;  %v10388_v15 = vld [vmem:[#allocation10_spill] sm:$0xff] }
 0x241   : > { %v10389_v44 = vunpack.i.l.bf16 %v10388_v15  ;;  %v10390_v42 = vunpack.i.h.bf16 %v10388_v15  ;;  %v8756_v15 = vpop.f32.mrf.mxu2 }
 0x243   : > { %v1780_v41 = vsel %vm1757_vm7, %v10389_v44, %v5510_v25  ;;  %v1781_v46 = vsel %vm1757_vm7, %v10390_v42, %v5511_v54  ;;  %v8760_v44 = vpop.f32.mrf.mxu1  ;;  %v10398_v42 = vunpack.i.h.bf16 %v8515_v18 }
 0x244   : > { %v1813_v4 = vsel %vm1790_vm8, %v1780_v41, %v10391_v50 }
 0x246   : > { %v2556_v13 = vpop.f32.mrf.mxu3 }
 0x247   : > { %v8707_v2 = vadd.f32 %v2556_v13, %v2468_v51  ;;  %v8724_v21 = vpop.f32.mrf.mxu0  ;;  %v10392_v51 = vunpack.i.h.bf16 %v8147_v7  ;;  %v10393_v13 = vunpack.i.l.bf16 %v8483_v59  ;;  %v10396_v7 = vpack.c.bf16 %v8508_v57, %v8502_v16 }
 0x249   : > { %v1814_v48 = vsel %vm1790_vm8, %v1781_v46, %v10392_v51  ;;  %v8768_v50 = vpop.f32.mrf.mxu2 }
 0x24a   : > { %2545 = vmatmul.bf16.gmra.mxu2 %v10383_v0  ;;  %v1946_v31 = vpack.c.bf16 %v1814_v48, %v1813_v4  ;;  %v10394_v0 = vunpack.i.h.bf16 %v8483_v59  ;;  %v10399_v4 = vld [vmem:[#allocation24_spill] sm:$0xff] }
 0x24b   : > { %v2478_v51 = vadd.f32 %v8591_v49, %v10399_v4  ;;  %v8775_v48 = vpop.f32.mrf.mxu1 }
 0x24c   : > { %v1918_v29 = vpack.c.bf16 %v10394_v0, %v10393_v13  ;;  %v10400_v13 = vpack.c.bf16 %v8539_v23, %v8531_v12  ;;  %v10403_v12 = vunpack.i.h.bf16 %v8375_v61 }
 0x24e   : > { %v8732_v5 = vpop.f32.mrf.mxu3 }
 0x24f   : > { %4926 = vmatmul.msk.bf16.gmra.mxu0 %vm2253_vm11, %v1913_v8  ;;  %v10395_v8 = vld [vmem:[#allocation25_spill] sm:$0xff]  ;;  %v8748_v54 = vpop.f32.mrf.mxu0 }
 0x250   : > { %2604 = vmatmul.bf16.gmra.mxu3 %v10387_v33  ;;  %v2473_v30 = vadd.f32 %v8494_v3, %v10395_v8  ;;  %v10397_v3 = vunpack.i.l.bf16 %v8515_v18 }
 0x251   : > { %v8782_v18 = vpop.f32.mrf.mxu2 }
 0x252   : > { %v1923_v46 = vpack.c.bf16 %v10398_v42, %v10397_v3 }
 0x253   : > { %v8788_v49 = vpop.f32.mrf.mxu1 }
 0x257   : > { %v8762_v41 = vpop.f32.mrf.mxu0 }
 0x25a   : > { %2550 = vmatmul.bf16.gmra.mxu2 %v1946_v31 }
 0x25d   : > { %v2561_v25 = vpop.f32.mrf.mxu3 }
 0x25e   : > { %v8750_v33 = vadd.f32 %v2561_v25, %v2473_v30  ;;  %v10402_v30 = vunpack.i.l.bf16 %v8375_v61  ;;  %v2483_v25 = vadd.f32 %v8683_v62, %v8291_v37  ;;  %v5039_v61 = vld [vmem:[%s10076_s2 + $0x40] sm:$0xff]  ;;  %v10404_v37 = vpack.c.bf16 %v8389_v17, %v8384_v32  ;;  %v8829_v62 = vpop.f32.mrf.mxu1 }
 0x25f   : > { %4927 = vmatmul.msk.bf16.gmra.mxu0 %vm2253_vm11, %v1918_v29  ;;  %v8777_v31 = vpop.f32.mrf.mxu0  ;;  %v10401_v29 = vmov 0.0   ;;  %4538 = vmatpush.bf16.msrb.mxu2 %v5039_v61  ;;  %v5038_v61 = vld [vmem:[%s10076_s2 + $0x38] sm:$0xff] }
 0x260   : > { %2609 = vmatmul.bf16.gmra.mxu3 %v10396_v7  ;;  %2791 = vst.msk [vmem:[#allocation3 + $0x18] sm:$0xff] %vm2786_vm12, %v10401_v29  ;;  %v1928_v23 = vpack.c.bf16 %v10403_v12, %v10402_v30  ;;  %v8804_v7 = vpop.f32.mrf.mxu2  ;;  %4442 = vmatpush.bf16.msrb.mxu1 %v5038_v61 }
 0x261   : > { %2792 = vst.msk [vmem:[#allocation3 + $0x20] sm:$0xff] %vm2786_vm12, %v10401_v29 }
 0x262   : > { %2787 = vst.msk [vmem:[#allocation3] sm:$0xff] %vm2786_vm12, %v10401_v29 }
 0x263   : > { %2788 = vst.msk [vmem:[#allocation3 + $0x8] sm:$0xff] %vm2786_vm12, %v10401_v29 }
 0x264   : > { %2794 = vst.msk [vmem:[#allocation3 + $0x30] sm:$0xff] %vm2786_vm12, %v10401_v29 }
 0x265   : > { %v8758_v59 = vpop.f32.mrf.mxu3  ;;  %2795 = vst.msk [vmem:[#allocation3 + $0x38] sm:$0xff] %vm2786_vm12, %v10401_v29 }
 0x266   : > { %2797 = vst.msk [vmem:[#allocation3 + $0x48] sm:$0xff] %vm2786_vm12, %v10401_v29 }
 0x267   : > { %v8790_v8 = vpop.f32.mrf.mxu0  ;;  %2798 = vst.msk [vmem:[#allocation3 + $0x50] sm:$0xff] %vm2786_vm12, %v10401_v29 }
 0x268   : > { %2800 = vst.msk [vmem:[#allocation3 + $0x60] sm:$0xff] %vm2786_vm12, %v10401_v29 }
 0x269   : > { %2801 = vst.msk [vmem:[#allocation3 + $0x68] sm:$0xff] %vm2786_vm12, %v10401_v29 }
 0x26a   : > { %2803 = vst.msk [vmem:[#allocation3 + $0x78] sm:$0xff] %vm2786_vm12, %v10401_v29 }
 0x26b   : > { %2804 = vst.msk [vmem:[#allocation3 + $0x80] sm:$0xff] %vm2786_vm12, %v10401_v29 }
 0x26c   : > { %2806 = vst.msk [vmem:[#allocation3 + $0x90] sm:$0xff] %vm2786_vm12, %v10401_v29 }
 0x26d   : > { %v2566_v16 = vpop.f32.mrf.mxu3  ;;  %2807 = vst.msk [vmem:[#allocation3 + $0x98] sm:$0xff] %vm2786_vm12, %v10401_v29 }
 0x26e   : > { %v8772_v57 = vadd.f32 %v2566_v16, %v2478_v51  ;;  %v8843_v16 = vpop.f32.mrf.mxu2  ;;  %2809 = vst.msk [vmem:[#allocation3 + $0xa8] sm:$0xff] %vm2786_vm12, %v10401_v29 }
 0x26f   : > { %4928 = vmatmul.msk.bf16.gmra.mxu0 %vm2253_vm11, %v1923_v46  ;;  %v10405_v46 = vld [vmem:[#allocation29_spill] sm:$0xff]  ;;  %v8833_v51 = vpop.f32.mrf.mxu0  ;;  %2810 = vst.msk [vmem:[#allocation3 + $0xb0] sm:$0xff] %vm2786_vm12, %v10401_v29 }
 0x270   : > { %2614 = vmatmul.bf16.gmra.mxu3 %v10400_v13  ;;  %v2485_v4 = vadd.f32 %v8702_v63, %v10405_v46  ;;  %2812 = vst.msk [vmem:[#allocation3 + $0xc0] sm:$0xff] %vm2786_vm12, %v10401_v29  ;;  %v10406_v63 = vunpack.i.l.bf16 %v8523_v45  ;;  %v10407_v13 = vunpack.i.h.bf16 %v8523_v45  ;;  %v10408_v45 = vld [vmem:[#allocation11_spill] sm:$0xff] }
 0x271   : > { %2813 = vst.msk [vmem:[#allocation3 + $0xc8] sm:$0xff] %vm2786_vm12, %v10401_v29 }
 0x272   : > { %v1933_v30 = vpack.c.bf16 %v10407_v13, %v10406_v63  ;;  %2815 = vst.msk [vmem:[#allocation3 + $0xd8] sm:$0xff] %vm2786_vm12, %v10401_v29 }
 0x273   : > { %2816 = vst.msk [vmem:[#allocation3 + $0xe0] sm:$0xff] %vm2786_vm12, %v10401_v29 }
 0x274   : > { %2818 = vst.msk [vmem:[#allocation3 + $0xf0] sm:$0xff] %vm2786_vm12, %v10401_v29 }
 0x275   : > { %v8784_v0 = vpop.f32.mrf.mxu3  ;;  %2819 = vst.msk [vmem:[#allocation3 + $0xf8] sm:$0xff] %vm2786_vm12, %v10401_v29 }
 0x276   : > { %2821 = vst.msk [vmem:[#allocation3 + $0x108] sm:$0xff] %vm2786_vm12, %v10401_v29 }
 0x277   : > { %2822 = vst.msk [vmem:[#allocation3 + $0x110] sm:$0xff] %vm2786_vm12, %v10401_v29 }
 0x278   : > { %2824 = vst.msk [vmem:[#allocation3 + $0x120] sm:$0xff] %vm2786_vm12, %v10401_v29 }
 0x279   : > { %2825 = vst.msk [vmem:[#allocation3 + $0x128] sm:$0xff] %vm2786_vm12, %v10401_v29 }
 0x27a   : > { %2827 = vst.msk [vmem:[#allocation3 + $0x138] sm:$0xff] %vm2786_vm12, %v10401_v29 }
 0x27b   : > { %2828 = vst.msk [vmem:[#allocation3 + $0x140] sm:$0xff] %vm2786_vm12, %v10401_v29 }
 0x27c   : > { %2830 = vst.msk [vmem:[#allocation3 + $0x150] sm:$0xff] %vm2786_vm12, %v10401_v29 }
 0x27d   : > { %v2571_v3 = vpop.f32.mrf.mxu3  ;;  %2831 = vst.msk [vmem:[#allocation3 + $0x158] sm:$0xff] %vm2786_vm12, %v10401_v29 }
 0x27e   : > { %v8811_v42 = vadd.f32 %v2571_v3, %v2483_v25  ;;  %v2408_v25 = vadd.f32 %v8744_v9, %v10408_v45  ;;  %v10409_v3 = vpack.c.bf16 %v8561_v6, %v8549_v43  ;;  %2833 = vst.msk [vmem:[#allocation3 + $0x168] sm:$0xff] %vm2786_vm12, %v10401_v29  ;;  %v10411_v45 = vunpack.i.l.bf16 %v8565_v35 }
 0x27f   : > { %4929 = vmatmul.msk.bf16.gmra.mxu0 %vm2253_vm11, %v1928_v23  ;;  %v8863_v23 = vpop.f32.mrf.mxu1  ;;  %2834 = vst.msk [vmem:[#allocation3 + $0x170] sm:$0xff] %vm2786_vm12, %v10401_v29 }
 0x280   : > { %2619 = vmatmul.bf16.gmra.mxu3 %v10404_v37  ;;  %v8880_v37 = vpop.f32.mrf.mxu2  ;;  %v2497_v46 = vadd.f32 %v8756_v15, %v2408_v25  ;;  %v10410_v15 = vld [vmem:[#allocation17_spill] sm:$0xff]  ;;  %2836 = vst.msk [vmem:[#allocation3 + $0x180] sm:$0xff] %vm2786_vm12, %v10401_v29 }
 0x281   : > { %2837 = vst.msk [vmem:[#allocation3 + $0x188] sm:$0xff] %vm2786_vm12, %v10401_v29 }
 0x282   : > { %2839 = vst.msk [vmem:[#allocation3 + $0x198] sm:$0xff] %vm2786_vm12, %v10401_v29 }
 0x283   : > { %2840 = vst.msk [vmem:[#allocation3 + $0x1a0] sm:$0xff] %vm2786_vm12, %v10401_v29 }
 0x284   : > { %2793 = vst.msk [vmem:[#allocation3 + $0x28] sm:$0x3] %vm2789_vm13, %v10401_v29 }
 0x285   : > { %v2573_v32 = vpop.f32.mrf.mxu3  ;;  %2790 = vst.msk [vmem:[#allocation3 + $0x10] sm:$0x3] %vm2789_vm13, %v10401_v29 }
 0x286   : > { %v8839_v17 = vadd.f32 %v2573_v32, %v2485_v4  ;;  %v2410_v32 = vadd.f32 %v8760_v44, %v10410_v15  ;;  %v10412_v44 = vunpack.i.h.bf16 %v8565_v35  ;;  %2796 = vst.msk [vmem:[#allocation3 + $0x40] sm:$0x3] %vm2789_vm13, %v10401_v29 }
 0x287   : > { %v8899_v63 = vpop.f32.mrf.mxu1  ;;  %2799 = vst.msk [vmem:[#allocation3 + $0x58] sm:$0x3] %vm2789_vm13, %v10401_v29 }
 0x288   : > { %v1938_v25 = vpack.c.bf16 %v10412_v44, %v10411_v45  ;;  %2802 = vst.msk [vmem:[#allocation3 + $0x70] sm:$0x3] %vm2789_vm13, %v10401_v29 }
 0x289   : > { %2805 = vst.msk [vmem:[#allocation3 + $0x88] sm:$0x3] %vm2789_vm13, %v10401_v29 }
 0x28a   : > { %2808 = vst.msk [vmem:[#allocation3 + $0xa0] sm:$0x3] %vm2789_vm13, %v10401_v29 }
 0x28b   : > { %2811 = vst.msk [vmem:[#allocation3 + $0xb8] sm:$0x3] %vm2789_vm13, %v10401_v29 }
 0x28c   : > { %v2674_v12 = vpop.f32.mrf.mxu0  ;;  %v2940_v45 = vld [vmem:[#allocation3 + $0xa] sm:$0xff]  ;;  %2814 = vst.msk [vmem:[#allocation3 + $0xd0] sm:$0x3] %vm2789_vm13, %v10401_v29 }
 0x28d   : > { %2817 = vst.msk [vmem:[#allocation3 + $0xe8] sm:$0x3] %vm2789_vm13, %v10401_v29 }
 0x28e   : > { %2820 = vst.msk [vmem:[#allocation3 + $0x100] sm:$0x3] %vm2789_vm13, %v10401_v29 }
 0x28f   : > { %4930 = vmatmul.msk.bf16.gmra.mxu0 %vm2253_vm11, %v1933_v30  ;;  %v2499_v30 = vadd.f32 %v8768_v50, %v2410_v32  ;;  %2823 = vst.msk [vmem:[#allocation3 + $0x118] sm:$0x3] %vm2789_vm13, %v10401_v29 }
 0x290   : > { %2624 = vmatmul.bf16.gmra.mxu3 %v10409_v3  ;;  %v8914_v3 = vpop.f32.mrf.mxu2  ;;  %2826 = vst.msk [vmem:[#allocation3 + $0x130] sm:$0x3] %vm2789_vm13, %v10401_v29 }
 0x291   : > { %2829 = vst.msk [vmem:[#allocation3 + $0x148] sm:$0x3] %vm2789_vm13, %v10401_v29 }
 0x292   : > { %2832 = vst.msk [vmem:[#allocation3 + $0x160] sm:$0x3] %vm2789_vm13, %v10401_v29 }
 0x293   : > { %v2585_v43 = vpop.f32.mrf.mxu3  ;;  %2835 = vst.msk [vmem:[#allocation3 + $0x178] sm:$0x3] %vm2789_vm13, %v10401_v29 }
 0x294   : > { %v2586_v6 = vadd.f32 %v2585_v43, %v2497_v46  ;;  %v2676_v9 = vpop.f32.mrf.mxu0  ;;  %2838 = vst.msk [vmem:[#allocation3 + $0x190] sm:$0x3] %vm2789_vm13, %v10401_v29 }
 0x295   : > { %2841 = vst.msk [vmem:[#allocation3 + $0x1a8] sm:$0x3] %vm2789_vm13, %v10401_v29 }
 0x296   : > { %v2675_v4 = vadd.f32 %v2674_v12, %v2586_v6  ;;  %v5037_v12 = vld [vmem:[%s10076_s2 + $0x30] sm:$0xff]  ;;  %v10413_v6 = vpack.c.bf16 %v8597_v34, %v8589_v22 }
 0x297   : > { %4443 = vmatpush.bf16.msrb.mxu1 %v5037_v12  ;;  %v2907_v22 = vld [vmem:[#allocation3 + $0x1] sm:$0xff] }
 0x298   : > { %v2754_v13 = vmax.f32 %v2675_v4, 0.0  ;;  %v10414_v4 = vld [vmem:[#allocation20_spill] sm:$0xff] }
 0x299   : > { %v2413_v15 = vadd.f32 %v8775_v48, %v10414_v4  ;;  %v2939_v34 = vld [vmem:[#allocation3 + $0x2] sm:$0xff]  ;;  %v8944_v48 = vpop.f32.mrf.mxu2 }
 0x29a   : > { %2843 = vst.msk [vmem:[#allocation3 + $0x19] sm:$0xff] %vm2786_vm12, %v2754_v13 }
 0x29b   : > { %v2587_v61 = vpop.f32.mrf.mxu3  ;;  %v2502_v32 = vadd.f32 %v8782_v18, %v2413_v15  ;;  %v2908_v18 = vld [vmem:[#allocation3 + $0x9] sm:$0xff] }
 0x29c   : > { %v2588_v50 = vadd.f32 %v2587_v61, %v2499_v30  ;;  %v2679_v46 = vpop.f32.mrf.mxu0  ;;  %v5772_v44 = vpack.i.bf16 %v2908_v18, %v2907_v22  ;;  %v10415_v61 = vld [vmem:[#allocation15_spill] sm:$0xff] }
 0x29e   : > { %v2677_v43 = vadd.f32 %v2676_v9, %v2588_v50  ;;  %v8936_v9 = vpop.f32.mrf.mxu1  ;;  %v2415_v50 = vadd.f32 %v8788_v49, %v10415_v61  ;;  %5773 = vrot.lane.b32.xlu2 %v5772_v44, %s6452_s17 }
 0x29f   : > { %4931 = vmatmul.msk.bf16.gmra.mxu0 %vm2253_vm11, %v1938_v25  ;;  %v5777_v25 = vpack.i.bf16 %v2940_v45, %v2939_v34 }
 0x2a0   : > { %v2755_v35 = vmax.f32 %v2677_v43, 0.0  ;;  %2629 = vmatmul.bf16.gmra.mxu3 %v10413_v6  ;;  %v2504_v4 = vadd.f32 %v8804_v7, %v2415_v50  ;;  %v10418_v50 = vld [vmem:[#allocation21_spill] sm:$0xff] }
 0x2a1   : > { %5778 = vrot.lane.b32.xlu0 %v5777_v25, %s6453_s19  ;;  %v3003_v18 = vld [vmem:[#allocation3 + $0x19] sm:$0xff]  ;;  %v8978_v25 = vpop.f32.mrf.mxu2 }
 0x2a2   : > { %2844 = vst.msk [vmem:[#allocation3 + $0x21] sm:$0xff] %vm2786_vm12, %v2755_v35 }
 0x2a3   : > { %v2590_v13 = vpop.f32.mrf.mxu3 }
 0x2a4   : > { %v2681_v30 = vpop.f32.mrf.mxu0  ;;  %v2591_v12 = vadd.f32 %v2590_v13, %v2502_v32  ;;  %v10416_v32 = vunpack.i.l.bf16 %v8413_v39  ;;  %v10417_v13 = vunpack.i.h.bf16 %v8413_v39 }
 0x2a6   : > { %v2680_v43 = vadd.f32 %v2679_v46, %v2591_v12  ;;  %v1943_v46 = vpack.c.bf16 %v10417_v13, %v10416_v32  ;;  %v8969_v34 = vpop.f32.mrf.mxu1 }
 0x2a8   : > { %v2756_v45 = vmax.f32 %v2680_v43, 0.0 }
 0x2a9   : > { %v2941_v35 = vld [vmem:[#allocation3 + $0x1a] sm:$0xff]  ;;  %v2942_v6 = vld [vmem:[#allocation3 + $0x22] sm:$0xff] }
 0x2aa   : > { %v3004_v49 = vld [vmem:[#allocation3 + $0x21] sm:$0xff]  ;;  %v5787_v15 = vpack.i.bf16 %v2942_v6, %v2941_v35  ;;  %v2418_v35 = vadd.f32 %v8829_v62, %v10418_v50  ;;  %v10419_v6 = vpack.c.bf16 %v8440_v26, %v8425_v52  ;;  %2845 = vst.msk [vmem:[#allocation3 + $0x31] sm:$0xff] %vm2786_vm12, %v2756_v45  ;;  %v5036_v52 = vld [vmem:[%s10076_s2 + $0x28] sm:$0xff] }
 0x2ab   : > { %v2592_v22 = vpop.f32.mrf.mxu3  ;;  %v5797_v39 = vpack.i.bf16 %v3004_v49, %v3003_v18  ;;  %v8982_v61 = vld [vmem:[#allocation3 + $0x20] sm:$0xff]  ;;  %4444 = vmatpush.bf16.msrb.mxu1 %v5036_v52  ;;  %v9009_v18 = vpop.f32.mrf.mxu2 }
 0x2ac   : > { %v2593_v7 = vadd.f32 %v2592_v22, %v2504_v4  ;;  %v2684_v12 = vpop.f32.mrf.mxu0  ;;  %5788 = vrot.lane.b32.xlu1 %v5787_v15, %s6453_s19  ;;  %v2507_v4 = vadd.f32 %v8843_v16, %v2418_v35  ;;  %v10420_v16 = vld [vmem:[#allocation14_spill] sm:$0xff] }
 0x2ad   : > { %5798 = vrot.lane.b32.xlu2 %v5797_v39, %s6454_s7  ;;  %5783 = vrot.lane.b32.xlu0 %v5797_v39, %s6452_s17 }
 0x2ae   : > { %v2682_v44 = vadd.f32 %v2681_v30, %v2593_v7  ;;  %v8995_v30 = vld [vmem:[#allocation3 + $0x18] sm:$0xff]  ;;  %v9005_v32 = vpop.f32.mrf.mxu1 }
 0x2af   : > { %4932 = vmatmul.msk.bf16.gmra.mxu0 %vm2253_vm11, %v1943_v46  ;;  %v5792_v29 = vpack.i.bf16 %v8982_v61, %v8995_v30  ;;  %v2420_v46 = vadd.f32 %v8863_v23, %v10420_v16  ;;  %v10422_v23 = vunpack.i.h.bf16 %v8572_v10 }
 0x2b0   : > { %v2757_v43 = vmax.f32 %v2682_v44, 0.0  ;;  %2634 = vmatmul.bf16.gmra.mxu3 %v10419_v6  ;;  %v10421_v6 = vunpack.i.l.bf16 %v8572_v10 }
 0x2b1   : > { %v2911_v7 = vld [vmem:[#allocation3 + $0x31] sm:$0xff]  ;;  %v2509_v50 = vadd.f32 %v8880_v37, %v2420_v46  ;;  %v10424_v46 = vpack.c.bf16 %v8611_v20, %v8605_v40 }
 0x2b2   : > { %2846 = vst.msk [vmem:[#allocation3 + $0x39] sm:$0xff] %vm2786_vm12, %v2757_v43  ;;  %v10425_v20 = vld [vmem:[#allocation26_spill] sm:$0xff] }
 0x2b3   : > { %v2595_v26 = vpop.f32.mrf.mxu3 }
 0x2b4   : > { %v2596_v62 = vadd.f32 %v2595_v26, %v2507_v4  ;;  %v2686_v49 = vpop.f32.mrf.mxu0  ;;  %5793 = vrot.lane.b32.xlu1 %v5792_v29, %s6455_s27  ;;  %v1948_v4 = vpack.c.bf16 %v10422_v23, %v10421_v6 }
 0x2b5   : > { %5803 = vrot.lane.b32.xlu0 %v5787_v15, %s6456_s26 }
 0x2b6   : > { %v2685_v13 = vadd.f32 %v2684_v12, %v2596_v62  ;;  %v10423_v62 = vld [vmem:[#allocation23_spill] sm:$0xff]  ;;  %v9026_v16 = vpop.f32.mrf.mxu1 }
 0x2b8   : > { %v2758_v22 = vmax.f32 %v2685_v13, 0.0  ;;  %v2423_v13 = vadd.f32 %v8899_v63, %v10423_v62 }
 0x2b9   : > { %v3132_v45 = vld [vmem:[#allocation3 + $0x32] sm:$0xff]  ;;  %v3133_v39 = vld [vmem:[#allocation3 + $0x3a] sm:$0xff] }
 0x2ba   : > { %v2912_v44 = vld [vmem:[#allocation3 + $0x39] sm:$0xff]  ;;  %2847 = vst.msk [vmem:[#allocation3 + $0x49] sm:$0xff] %vm2786_vm12, %v2758_v22  ;;  %v4291_v35 = vpack.c.bf16 %v3133_v39, %v3132_v45  ;;  %v5812_v43 = vpack.i.bf16 %v3133_v39, %v3132_v45  ;;  %v9032_v22 = vld [vmem:[#allocation3 + $0x30] sm:$0xff]  ;;  %v9038_v45 = vpop.f32.mrf.mxu2 }
 0x2bb   : > { %v5807_v12 = vpack.i.bf16 %v2912_v44, %v2911_v7  ;;  %v2597_v29 = vpop.f32.mrf.mxu3  ;;  %v9021_v15 = vld [vmem:[#allocation3 + $0x38] sm:$0xff] }
 0x2bc   : > { %v2598_v52 = vadd.f32 %v2597_v29, %v2509_v50  ;;  %v2689_v26 = vpop.f32.mrf.mxu0  ;;  %4974 = vmatmul.msk.bf16.vlgmr.msrb.gmra.mxu2 %vm2786_vm12, %v4291_v35  ;;  %5813 = vrot.lane.b32.xlu2 %v5812_v43, %s6453_s19  ;;  %v5817_v7 = vpack.i.bf16 %v9021_v15, %v9032_v22  ;;  %v2425_v50 = vadd.f32 %v8936_v9, %v10425_v20  ;;  %v10427_v9 = vunpack.i.h.bf16 %v8617_v36 }
 0x2bd   : > { %5808 = vrot.lane.b32.xlu1 %v5807_v12, %s6452_s17  ;;  %5833 = vrot.lane.b32.xlu0 %v5807_v12, %s6454_s7 }
 0x2be   : > { %v2687_v37 = vadd.f32 %v2686_v49, %v2598_v52  ;;  %v2512_v49 = vadd.f32 %v8914_v3, %v2423_v13  ;;  %v9044_v23 = vpop.f32.mrf.mxu1 }
 0x2bf   : > { %4933 = vmatmul.msk.bf16.gmra.mxu0 %vm2253_vm11, %v1948_v4  ;;  %v2514_v4 = vadd.f32 %v8944_v48, %v2425_v50 }
 0x2c0   : > { %v2759_v10 = vmax.f32 %v2687_v37, 0.0  ;;  %2639 = vmatmul.bf16.gmra.mxu3 %v10424_v46  ;;  %v5035_v37 = vld [vmem:[%s10076_s2 + $0x20] sm:$0xff] }
 0x2c1   : > { %4445 = vmatpush.bf16.msrb.mxu1 %v5035_v37  ;;  %v2913_v20 = vld [vmem:[#allocation3 + $0x49] sm:$0xff] }
 0x2c2   : > { %2848 = vst.msk [vmem:[#allocation3 + $0x51] sm:$0xff] %vm2786_vm12, %v2759_v10  ;;  %v9059_v48 = vpop.f32.mrf.mxu2  ;;  %v9074_v50 = vld [vmem:[#allocation3 + $0x48] sm:$0xff] }
 0x2c3   : > { %v2600_v63 = vpop.f32.mrf.mxu3 }
 0x2c4   : > { %v2601_v39 = vadd.f32 %v2600_v63, %v2512_v49  ;;  %v2691_v44 = vpop.f32.mrf.mxu0  ;;  %5818 = vrot.lane.b32.xlu2 %v5817_v7, %s6455_s27 }
 0x2c5   : > { %5823 = vrot.lane.b32.xlu1 %v5817_v7, %s6457_s28 }
 0x2c6   : > { %v2690_v40 = vadd.f32 %v2689_v26, %v2601_v39  ;;  %v10426_v26 = vunpack.i.l.bf16 %v8617_v36  ;;  %v10428_v36 = vld [vmem:[#allocation27_spill] sm:$0xff] }
 0x2c7   : > { %v2428_v63 = vadd.f32 %v8969_v34, %v10428_v36  ;;  %v9078_v34 = vpop.f32.mrf.mxu1 }
 0x2c8   : > { %v2760_v3 = vmax.f32 %v2690_v40, 0.0  ;;  %v1953_v62 = vpack.c.bf16 %v10427_v9, %v10426_v26  ;;  %v10429_v40 = vpack.c.bf16 %v8641_v14, %v8633_v56 }
 0x2c9   : > { %v3134_v35 = vld [vmem:[#allocation3 + $0x4a] sm:$0xff]  ;;  %v3135_v6 = vld [vmem:[#allocation3 + $0x52] sm:$0xff] }
 0x2ca   : > { %2849 = vst.msk [vmem:[#allocation3 + $0x61] sm:$0xff] %vm2786_vm12, %v2760_v3  ;;  %v4293_v29 = vpack.c.bf16 %v3135_v6, %v3134_v35  ;;  %v9048_v52 = vpack.i.bf16 %v3135_v6, %v3134_v35  ;;  %v2914_v7 = vld [vmem:[#allocation3 + $0x51] sm:$0xff]  ;;  %v9083_v14 = vpop.f32.mrf.mxu2 }
 0x2cb   : > { %v2602_v13 = vpop.f32.mrf.mxu3 }
 0x2cc   : > { %v2603_v10 = vadd.f32 %v2602_v13, %v2514_v4  ;;  %v2694_v46 = vpop.f32.mrf.mxu0  ;;  %4975 = vmatmul.msk.bf16.gmra.mxu2 %vm2786_vm12, %v4293_v29  ;;  %5828 = vrot.lane.b32.xlu2 %v5807_v12, %s6458_s23  ;;  %v9070_v12 = vld [vmem:[#allocation3 + $0x50] sm:$0xff] }
 0x2cd   : > { %5838 = vrot.lane.b32.xlu1 %v5812_v43, %s6456_s26  ;;  %5848 = vrot.lane.b32.xlu0 %v9048_v52, %s6453_s19  ;;  %v2517_v43 = vadd.f32 %v8978_v25, %v2428_v63  ;;  %v5852_v35 = vpack.i.bf16 %v9070_v12, %v9074_v50  ;;  %v10430_v25 = vld [vmem:[#allocation28_spill] sm:$0xff] }
 0x2ce   : > { %v2692_v49 = vadd.f32 %v2691_v44, %v2603_v10  ;;  %v5842_v44 = vpack.i.bf16 %v2914_v7, %v2913_v20  ;;  %v2430_v29 = vadd.f32 %v9005_v32, %v10430_v25  ;;  %v10432_v7 = vunpack.i.h.bf16 %v8462_v38 }
 0x2cf   : > { %4934 = vmatmul.msk.bf16.gmra.mxu0 %vm2253_vm11, %v1953_v62  ;;  %v2439_v32 = vpop.f32.mrf.mxu1 }
 0x2d0   : > { %v2761_v39 = vmax.f32 %v2692_v49, 0.0  ;;  %2644 = vmatmul.bf16.gmra.mxu3 %v10429_v40  ;;  %v2519_v62 = vadd.f32 %v9009_v18, %v2430_v29  ;;  %v10431_v49 = vunpack.i.l.bf16 %v8462_v38  ;;  %v10433_v40 = vld [vmem:[#allocation30_spill] sm:$0xff] }
 0x2d1   : > { %v2433_v38 = vadd.f32 %v9026_v16, %v10433_v40  ;;  %v2915_v25 = vld [vmem:[#allocation3 + $0x61] sm:$0xff] }
 0x2d2   : > { %2850 = vst.msk [vmem:[#allocation3 + $0x69] sm:$0xff] %vm2786_vm12, %v2761_v39 }
 0x2d3   : > { %v2605_v3 = vpop.f32.mrf.mxu3 }
 0x2d4   : > { %v2606_v6 = vadd.f32 %v2605_v3, %v2517_v43  ;;  %v2696_v4 = vpop.f32.mrf.mxu0  ;;  %5843 = vrot.lane.b32.xlu2 %v5842_v44, %s6452_s17  ;;  %v10434_v43 = vpack.c.bf16 %v8488_v55, %v8481_v11  ;;  %v10435_v55 = vld [vmem:[#allocation31_spill] sm:$0xff] }
 0x2d5   : > { %5868 = vrot.lane.b32.xlu1 %v5842_v44, %s6454_s7  ;;  %5853 = vrot.lane.b32.xlu0 %v5852_v35, %s6455_s27 }
 0x2d6   : > { %v2695_v56 = vadd.f32 %v2694_v46, %v2606_v6  ;;  %v1958_v46 = vpack.c.bf16 %v10432_v7, %v10431_v49 }
 0x2d8   : > { %v2762_v37 = vmax.f32 %v2695_v56, 0.0  ;;  %v2522_v56 = vadd.f32 %v9038_v45, %v2433_v38  ;;  %v2435_v45 = vadd.f32 %v9044_v23, %v10435_v55 }
 0x2d9   : > { %v3136_v26 = vld [vmem:[#allocation3 + $0x62] sm:$0xff]  ;;  %v3137_v9 = vld [vmem:[#allocation3 + $0x6a] sm:$0xff] }
 0x2da   : > { %2851 = vst.msk [vmem:[#allocation3 + $0x79] sm:$0xff] %vm2786_vm12, %v2762_v37  ;;  %v4295_v13 = vpack.c.bf16 %v3137_v9, %v3136_v26  ;;  %v9089_v10 = vpack.i.bf16 %v3137_v9, %v3136_v26  ;;  %v2978_v3 = vld [vmem:[#allocation3 + $0x68] sm:$0xff] }
 0x2db   : > { %v2607_v36 = vpop.f32.mrf.mxu3  ;;  %v2916_v6 = vld [vmem:[#allocation3 + $0x69] sm:$0xff] }
 0x2dc   : > { %v2608_v63 = vadd.f32 %v2607_v36, %v2519_v62  ;;  %v2699_v39 = vpop.f32.mrf.mxu0  ;;  %4976 = vmatmul.msk.bf16.gmra.mxu2 %vm2786_vm12, %v4295_v13  ;;  %5858 = vrot.lane.b32.xlu2 %v5852_v35, %s6457_s28  ;;  %v2528_v35 = vpop.f32.mrf.mxu2  ;;  %v5877_v37 = vpack.i.bf16 %v2916_v6, %v2915_v25 }
 0x2dd   : > { %5883 = vrot.lane.b32.xlu1 %v9089_v10, %s6453_s19  ;;  %5863 = vrot.lane.b32.xlu0 %v5842_v44, %s6458_s23  ;;  %v2977_v44 = vld [vmem:[#allocation3 + $0x60] sm:$0xff]  ;;  %v2442_v62 = vpop.f32.mrf.mxu1 }
 0x2de   : > { %v2697_v18 = vadd.f32 %v2696_v4, %v2608_v63  ;;  %v5034_v4 = vld [vmem:[%s10076_s2 + $0x18] sm:$0xff]  ;;  %v5887_v16 = vpack.i.bf16 %v2978_v3, %v2977_v44  ;;  %v10437_v63 = vunpack.i.h.bf16 %v8625_v24 }
 0x2df   : > { %4935 = vmatmul.msk.bf16.gmra.mxu0 %vm2253_vm11, %v1958_v46  ;;  %4446 = vmatpush.bf16.msrb.mxu1 %v5034_v4  ;;  %v2524_v46 = vadd.f32 %v9059_v48, %v2435_v45  ;;  %v2438_v48 = vadd.f32 %v9078_v34, %v8492_v60  ;;  %v2440_v34 = vadd.f32 %v2439_v32, %v8552_v27 }
 0x2e0   : > { %v2763_v20 = vmax.f32 %v2697_v18, 0.0  ;;  %2649 = vmatmul.bf16.gmra.mxu3 %v10434_v43  ;;  %v10438_v43 = vpack.c.bf16 %v8659_v1, %v8650_v47 }
 0x2e1   : > { %v2917_v25 = vld [vmem:[#allocation3 + $0x79] sm:$0xff]  ;;  %v2529_v55 = vadd.f32 %v2528_v35, %v2440_v34 }
 0x2e2   : > { %2852 = vst.msk [vmem:[#allocation3 + $0x81] sm:$0xff] %vm2786_vm12, %v2763_v20 }
 0x2e3   : > { %v2610_v29 = vpop.f32.mrf.mxu3 }
 0x2e4   : > { %v2611_v26 = vadd.f32 %v2610_v29, %v2522_v56  ;;  %v2701_v9 = vpop.f32.mrf.mxu0  ;;  %5873 = vrot.lane.b32.xlu2 %v9048_v52, %s6456_s26  ;;  %v10436_v52 = vunpack.i.l.bf16 %v8625_v24  ;;  %v2531_v40 = vpop.f32.mrf.mxu2  ;;  %v2527_v56 = vadd.f32 %v9083_v14, %v2438_v48 }
 0x2e5   : > { %5888 = vrot.lane.b32.xlu1 %v5887_v16, %s6455_s27  ;;  %5878 = vrot.lane.b32.xlu0 %v5877_v37, %s6452_s17  ;;  %v2444_v6 = vpop.f32.mrf.mxu1 }
 0x2e6   : > { %v2700_v11 = vadd.f32 %v2699_v39, %v2611_v26  ;;  %v1963_v18 = vpack.c.bf16 %v10437_v63, %v10436_v52 }
 0x2e8   : > { %v2764_v13 = vmax.f32 %v2700_v11, 0.0  ;;  %v2979_v11 = vld [vmem:[#allocation3 + $0x78] sm:$0xff] }
 0x2e9   : > { %v3138_v49 = vld [vmem:[#allocation3 + $0x7a] sm:$0xff]  ;;  %v3139_v7 = vld [vmem:[#allocation3 + $0x82] sm:$0xff] }
 0x2ea   : > { %2853 = vst.msk [vmem:[#allocation3 + $0x91] sm:$0xff] %vm2786_vm12, %v2764_v13  ;;  %v4297_v36 = vpack.c.bf16 %v3139_v7, %v3138_v49  ;;  %v2918_v3 = vld [vmem:[#allocation3 + $0x81] sm:$0xff]  ;;  %v5917_v44 = vpack.i.bf16 %v3139_v7, %v3138_v49  ;;  %v10439_v7 = vunpack.i.l.bf16 %v8663_v58 }
 0x2eb   : > { %v2612_v38 = vpop.f32.mrf.mxu3  ;;  %v5912_v29 = vpack.i.bf16 %v2918_v3, %v2917_v25  ;;  %v2980_v1 = vld [vmem:[#allocation3 + $0x80] sm:$0xff] }
 0x2ec   : > { %v2613_v39 = vadd.f32 %v2612_v38, %v2524_v46  ;;  %v2704_v20 = vpop.f32.mrf.mxu0  ;;  %4977 = vmatmul.msk.bf16.gmra.mxu2 %vm2786_vm12, %v4297_v36  ;;  %5903 = vrot.lane.b32.xlu2 %v5877_v37, %s6454_s7  ;;  %v2533_v60 = vpop.f32.mrf.mxu2  ;;  %v5922_v13 = vpack.i.bf16 %v2980_v1, %v2979_v11  ;;  %v5033_v49 = vld [vmem:[%s10076_s2 + $0x10] sm:$0xff]  ;;  %v10441_v38 = vld [vmem:[#allocation35_spill] sm:$0xff] }
 0x2ed   : > { %5898 = vrot.lane.b32.xlu1 %v5877_v37, %s6458_s23  ;;  %5893 = vrot.lane.b32.xlu0 %v5887_v16, %s6457_s28  ;;  %v2447_v27 = vpop.f32.mrf.mxu1 }
 0x2ee   : > { %v2702_v23 = vadd.f32 %v2701_v9, %v2613_v39  ;;  %4447 = vmatpush.bf16.msrb.mxu1 %v5033_v49  ;;  %v10442_v39 = vld [vmem:[#allocation34_spill] sm:$0xff]  ;;  %v2448_v49 = vadd.f32 %v2447_v27, %v8700_v28 }
 0x2ef   : > { %4936 = vmatmul.msk.bf16.gmra.mxu0 %vm2253_vm11, %v1963_v18 }
 0x2f0   : > { %v2765_v24 = vmax.f32 %v2702_v23, 0.0  ;;  %2654 = vmatmul.bf16.gmra.mxu3 %v10438_v43 }
 0x2f2   : > { %2854 = vst.msk [vmem:[#allocation3 + $0x99] sm:$0xff] %vm2786_vm12, %v2765_v24 }
 0x2f3   : > { %v2615_v4 = vpop.f32.mrf.mxu3 }
 0x2f4   : > { %v2616_v16 = vadd.f32 %v2615_v4, %v2527_v56  ;;  %v2706_v37 = vpop.f32.mrf.mxu0  ;;  %5918 = vrot.lane.b32.xlu2 %v5917_v44, %s6453_s19  ;;  %v2536_v63 = vpop.f32.mrf.mxu2 }
 0x2f5   : > { %5913 = vrot.lane.b32.xlu1 %v5912_v29, %s6452_s17  ;;  %5908 = vrot.lane.b32.xlu0 %v9089_v10, %s6456_s26  ;;  %v10440_v10 = vunpack.i.h.bf16 %v8663_v58  ;;  %v2443_v58 = vadd.f32 %v2442_v62, %v8615_v53  ;;  %v2449_v53 = vpop.f32.mrf.mxu1 }
 0x2f6   : > { %v2705_v47 = vadd.f32 %v2704_v20, %v2616_v16  ;;  %v10443_v20 = vpack.c.bf16 %v10441_v38, %v10442_v39 }
 0x2f7   : > { %v1968_v46 = vpack.c.bf16 %v10440_v10, %v10439_v7  ;;  %v2532_v23 = vadd.f32 %v2531_v40, %v2443_v58  ;;  %v10444_v40 = vld [vmem:[#allocation33_spill] sm:$0xff] }
 0x2f8   : > { %v2766_v14 = vmax.f32 %v2705_v47, 0.0  ;;  %v9160_v43 = vpop.permute.xlu2 %5773  ;;  %v2445_v4 = vadd.f32 %v2444_v6, %v10444_v40 }
 0x2f9   : > { %v3140_v26 = vld [vmem:[#allocation3 + $0x92] sm:$0xff]  ;;  %v3141_v9 = vld [vmem:[#allocation3 + $0x9a] sm:$0xff] }
 0x2fa   : > { %2855 = vst.msk [vmem:[#allocation3 + $0xa9] sm:$0xff] %vm2786_vm12, %v2766_v14  ;;  %v4299_v45 = vpack.c.bf16 %v3141_v9, %v3140_v26  ;;  %v9158_v24 = vpack.i.bf16 %v3141_v9, %v3140_v26  ;;  %v2920_v25 = vld [vmem:[#allocation3 + $0x99] sm:$0xff]  ;;  %v2919_v14 = vld [vmem:[#allocation3 + $0x91] sm:$0xff]  ;;  %v2534_v26 = vadd.f32 %v2533_v60, %v2445_v4 }
 0x2fb   : > { %v2617_v36 = vpop.f32.mrf.mxu3  ;;  %v5947_v9 = vpack.i.bf16 %v2920_v25, %v2919_v14  ;;  %v5031_v4 = vld [vmem:[%s10076_s2] sm:$0xff] }
 0x2fc   : > { %v2618_v32 = vadd.f32 %v2617_v36, %v2529_v55  ;;  %4978 = vmatmul.msk.bf16.gmra.mxu2 %vm2786_vm12, %v4299_v45  ;;  %5923 = vrot.lane.b32.xlu2 %v5922_v13, %s6455_s27  ;;  %v2709_v35 = vpop.f32.mrf.mxu0  ;;  %v2538_v47 = vpop.f32.mrf.mxu2  ;;  %v5032_v36 = vld [vmem:[%s10076_s2 + $0x8] sm:$0xff] }
 0x2fd   : > { %5928 = vrot.lane.b32.xlu1 %v5922_v13, %s6457_s28  ;;  %5938 = vrot.lane.b32.xlu0 %v5912_v29, %s6454_s7  ;;  %v2452_v7 = vpop.f32.mrf.mxu1 }
 0x2fe   : > { %v2707_v52 = vadd.f32 %v2706_v37, %v2618_v32  ;;  %v2982_v37 = vld [vmem:[#allocation3 + $0x98] sm:$0xff]  ;;  %4448 = vmatpush.bf16.msrb.mxu1 %v5032_v36 }
 0x2ff   : > { %4937 = vmatmul.msk.bf16.gmra.mxu0 %vm2253_vm11, %v1968_v46  ;;  %v2537_v46 = vadd.f32 %v2536_v63, %v2448_v49  ;;  %v2450_v63 = vadd.f32 %v2449_v53, %v8709_v19 }
 0x300   : > { %v2767_v18 = vmax.f32 %v2707_v52, 0.0  ;;  %2659 = vmatmul.bf16.gmra.mxu3 %v10443_v20 }
 0x301   : > { %v2983_v25 = vld [vmem:[#allocation3 + $0xa8] sm:$0xff] }
 0x302   : > { %2856 = vst.msk [vmem:[#allocation3 + $0xb1] sm:$0xff] %vm2786_vm12, %v2767_v18  ;;  %v2921_v40 = vld [vmem:[#allocation3 + $0xa9] sm:$0xff]  ;;  %4449 = vmatpush.bf16.msrb.mxu1 %v5031_v4 }
 0x303   : > { %v2620_v48 = vpop.f32.mrf.mxu3 }
 0x304   : > { %v2621_v3 = vadd.f32 %v2620_v48, %v2532_v23  ;;  %5933 = vrot.lane.b32.xlu2 %v5912_v29, %s6458_s23  ;;  %v2711_v56 = vpop.f32.mrf.mxu0  ;;  %v2541_v32 = vpop.f32.mrf.mxu2 }
 0x305   : > { %5943 = vrot.lane.b32.xlu1 %v5917_v44, %s6456_s26  ;;  %5953 = vrot.lane.b32.xlu0 %v9158_v24, %s6453_s19  ;;  %v2981_v44 = vld [vmem:[#allocation3 + $0x90] sm:$0xff] }
 0x306   : > { %v2710_v62 = vadd.f32 %v2709_v35, %v2621_v3  ;;  %v5957_v55 = vpack.i.bf16 %v2982_v37, %v2981_v44  ;;  %v2454_v3 = vpop.f32.mrf.mxu1 }
 0x307   : > { %v9172_v13 = vpop.permute.xlu2 %5798 }
 0x308   : > { %v2768_v16 = vmax.f32 %v2710_v62, 0.0 }
 0x309   : > { %v3142_v1 = vld [vmem:[#allocation3 + $0xaa] sm:$0xff]  ;;  %v3143_v34 = vld [vmem:[#allocation3 + $0xb2] sm:$0xff] }
 0x30a   : > { %2857 = vst.msk [vmem:[#allocation3 + $0xc1] sm:$0xff] %vm2786_vm12, %v2768_v16  ;;  %v4301_v29 = vpack.c.bf16 %v3143_v34, %v3142_v1  ;;  %v9179_v52 = vpack.i.bf16 %v3143_v34, %v3142_v1  ;;  %v2984_v39 = vld [vmem:[#allocation3 + $0xb0] sm:$0xff] }
 0x30b   : > { %v2622_v11 = vpop.f32.mrf.mxu3  ;;  %v2922_v20 = vld [vmem:[#allocation3 + $0xb1] sm:$0xff]  ;;  %v5992_v19 = vpack.i.bf16 %v2984_v39, %v2983_v25  ;;  %v5776_v39 = vunpack.i.h.bf16 %v9160_v43 }
 0x30c   : > { %v2623_v45 = vadd.f32 %v2622_v11, %v2534_v26  ;;  %4979 = vmatmul.msk.bf16.gmra.mxu2 %vm2786_vm12, %v4301_v29  ;;  %5948 = vrot.lane.b32.xlu2 %v5947_v9, %s6452_s17  ;;  %v2714_v6 = vpop.f32.mrf.mxu0  ;;  %v5982_v53 = vpack.i.bf16 %v2922_v20, %v2921_v40  ;;  %v2543_v34 = vpop.f32.mrf.mxu2 }
 0x30d   : > { %5973 = vrot.lane.b32.xlu1 %v5947_v9, %s6454_s7  ;;  %5958 = vrot.lane.b32.xlu0 %v5957_v55, %s6455_s27 }
 0x30e   : > { %v2712_v60 = vadd.f32 %v2711_v56, %v2623_v45  ;;  %v2539_v56 = vadd.f32 %v2538_v47, %v2450_v63 }
 0x310   : > { %v2769_v10 = vmax.f32 %v2712_v60, 0.0  ;;  %v2457_v60 = vpop.f32.mrf.mxu1 }
 0x312   : > { %2858 = vst.msk [vmem:[#allocation3 + $0xc9] sm:$0xff] %vm2786_vm12, %v2769_v10 }
 0x313   : > { %v2625_v35 = vpop.f32.mrf.mxu3  ;;  %v9192_v16 = vpop.permute.xlu0 %5778 }
 0x314   : > { %v2626_v58 = vadd.f32 %v2625_v35, %v2537_v46  ;;  %5963 = vrot.lane.b32.xlu2 %v5957_v55, %s6457_s28  ;;  %v2716_v18 = vpop.f32.mrf.mxu0  ;;  %v2546_v46 = vpop.f32.mrf.mxu2  ;;  %v5780_v4 = vunpack.i.l.bf16 %v9192_v16 }
 0x315   : > { %5988 = vrot.lane.b32.xlu1 %v9179_v52, %s6453_s19  ;;  %5968 = vrot.lane.b32.xlu0 %v5947_v9, %s6458_s23  ;;  %v2453_v9 = vadd.f32 %v2452_v7, %v8724_v21  ;;  %v2455_v7 = vadd.f32 %v2454_v3, %v8748_v54  ;;  %v5775_v54 = vunpack.i.l.bf16 %v9160_v43  ;;  %v5781_v43 = vunpack.i.h.bf16 %v9192_v16 }
 0x316   : > { %v2715_v28 = vadd.f32 %v2714_v6, %v2626_v58  ;;  %v9185_v27 = vpop.permute.xlu2 %5813 }
 0x317   : > { %v2542_v11 = vadd.f32 %v2541_v32, %v2453_v9 }
 0x318   : > { %v2770_v38 = vmax.f32 %v2715_v28, 0.0  ;;  %v2459_v9 = vpop.f32.mrf.mxu1 }
 0x319   : > { %v3144_v23 = vld [vmem:[#allocation3 + $0xc2] sm:$0xff]  ;;  %v3145_v48 = vld [vmem:[#allocation3 + $0xca] sm:$0xff] }
 0x31a   : > { %2859 = vst.msk [vmem:[#allocation3 + $0xd9] sm:$0xff] %vm2786_vm12, %v2770_v38  ;;  %v4303_v62 = vpack.c.bf16 %v3145_v48, %v3144_v23  ;;  %v2924_v32 = vld [vmem:[#allocation3 + $0xc9] sm:$0xff]  ;;  %v9220_v63 = vpack.i.bf16 %v3145_v48, %v3144_v23  ;;  %v2923_v38 = vld [vmem:[#allocation3 + $0xc1] sm:$0xff]  ;;  %v2458_v23 = vadd.f32 %v2457_v60, %v8762_v41 }
 0x31b   : > { %v2627_v37 = vpop.f32.mrf.mxu3  ;;  %v9224_v3 = vpack.i.bf16 %v2924_v32, %v2923_v38 }
 0x31c   : > { %v2628_v1 = vadd.f32 %v2627_v37, %v2539_v56  ;;  %4980 = vmatmul.msk.bf16.gmra.mxu2 %vm2786_vm12, %v4303_v62  ;;  %5978 = vrot.lane.b32.xlu2 %v9158_v24, %s6456_s26  ;;  %v2719_v47 = vpop.f32.mrf.mxu0  ;;  %v2875_v56 = vld [vmem:[#allocation3] sm:$0xff]  ;;  %v2876_v62 = vld [vmem:[#allocation3 + $0x8] sm:$0xff] }
 0x31d   : > { %5993 = vrot.lane.b32.xlu1 %v5992_v19, %s6455_s27  ;;  %5983 = vrot.lane.b32.xlu0 %v5982_v53, %s6452_s17 }
 0x31e   : > { %v2717_v14 = vadd.f32 %v2716_v18, %v2628_v1  ;;  %v9199_v26 = vpop.permute.xlu2 %5818  ;;  %v9201_v29 = vpop.permute.xlu1 %5788  ;;  %v2544_v18 = vadd.f32 %v2543_v34, %v2455_v7  ;;  %v4060_v1 = vsel %vm2786_vm12, %v2875_v56, %v5775_v54  ;;  %v5801_v7 = vunpack.i.h.bf16 %v9172_v13 }
 0x31f   : > { %v9205_v55 = vpop.permute.xlu0 %5783  ;;  %v4093_v16 = vsel %vm4092_vm14, %v4060_v1, %v5780_v4  ;;  %v2460_v54 = vadd.f32 %v2459_v9, %v8777_v31 }
 0x320   : > { %v2771_v44 = vmax.f32 %v2717_v14, 0.0  ;;  %v2986_v14 = vld [vmem:[#allocation3 + $0xc8] sm:$0xff] }
 0x322   : > { %2860 = vst.msk [vmem:[#allocation3 + $0xe1] sm:$0xff] %vm2786_vm12, %v2771_v44 }
 0x323   : > { %v2630_v24 = vpop.f32.mrf.mxu3 }
 0x324   : > { %v2631_v45 = vadd.f32 %v2630_v24, %v2542_v11  ;;  %6008 = vrot.lane.b32.xlu2 %v5982_v53, %s6454_s7  ;;  %v2721_v6 = vpop.f32.mrf.mxu0  ;;  %v2985_v11 = vld [vmem:[#allocation3 + $0xc0] sm:$0xff]  ;;  %v2548_v24 = vpop.f32.mrf.mxu2 }
 0x325   : > { %6003 = vrot.lane.b32.xlu1 %v5982_v53, %s6458_s23  ;;  %5998 = vrot.lane.b32.xlu0 %v5992_v19, %s6457_s28  ;;  %v4061_v53 = vsel %vm2786_vm12, %v2876_v62, %v5776_v39 }
 0x326   : > { %v2720_v49 = vadd.f32 %v2719_v47, %v2631_v45  ;;  %v9210_v10 = vpop.permute.xlu2 %5828  ;;  %v5794_v21 = vpop.permute.xlu1 %5793  ;;  %v4094_v45 = vsel %vm4092_vm14, %v4061_v53, %v5781_v43 }
 0x327   : > { %v5804_v48 = vpop.permute.xlu0 %5803  ;;  %v5796_v41 = vunpack.i.h.bf16 %v5794_v21  ;;  %v5795_v47 = vunpack.i.l.bf16 %v5794_v21  ;;  %v5831_v4 = vunpack.i.h.bf16 %v9210_v10 }
 0x328   : > { %v2772_v36 = vmax.f32 %v2720_v49, 0.0 }
 0x329   : > { %v9213_v35 = vld [vmem:[#allocation3 + $0xda] sm:$0xff]  ;;  %v9215_v58 = vld [vmem:[#allocation3 + $0xe2] sm:$0xff]  ;;  %v4127_v60 = vsel %vm4125_vm15, %v4094_v45, %v5796_v41  ;;  %v4126_v49 = vsel %vm4125_vm15, %v4093_v16, %v5795_v47  ;;  %v2549_v41 = vadd.f32 %v2548_v24, %v2460_v54 }
 0x32a   : > { %2861 = vst.msk [vmem:[#allocation3 + $0xf1] sm:$0xff] %vm2786_vm12, %v2772_v36  ;;  %v4305_v28 = vpack.c.bf16 %v9215_v58, %v9213_v35 }
 0x32b   : > { %v2632_v20 = vpop.f32.mrf.mxu3 }
 0x32c   : > { %v2633_v25 = vadd.f32 %v2632_v20, %v2544_v18  ;;  %4981 = vmatmul.msk.bf16.gmra.mxu2 %vm2786_vm12, %v4305_v28  ;;  %6023 = vrot.lane.b32.xlu2 %v9220_v63, %s6453_s19  ;;  %v2724_v40 = vpop.f32.mrf.mxu0  ;;  %v4160_v28 = vsel %vm4158_vm0, %v4127_v60, %v5801_v7  ;;  %v5805_v20 = vunpack.i.l.bf16 %v5804_v48  ;;  %v2551_v45 = vpop.f32.mrf.mxu2 }
 0x32d   : > { %6018 = vrot.lane.b32.xlu1 %v9224_v3, %s6452_s17  ;;  %6013 = vrot.lane.b32.xlu0 %v9179_v52, %s6456_s26  ;;  %v2547_v52 = vadd.f32 %v2546_v46, %v2458_v23  ;;  %v5800_v46 = vunpack.i.l.bf16 %v9172_v13  ;;  %v5806_v13 = vunpack.i.h.bf16 %v5804_v48  ;;  %v2462_v48 = vpop.f32.mrf.mxu1 }
 0x32e   : > { %v2722_v37 = vadd.f32 %v2721_v6, %v2633_v25  ;;  %v9236_v19 = vpop.permute.xlu2 %5843  ;;  %v6027_v6 = vpack.i.bf16 %v2986_v14, %v2985_v11  ;;  %v2463_v7 = vadd.f32 %v2462_v48, %v8790_v8  ;;  %v5791_v8 = vunpack.i.h.bf16 %v9201_v29 }
 0x32f   : > { %v9240_v34 = vpop.permute.xlu1 %5808  ;;  %v4159_v18 = vsel %vm4158_vm0, %v4126_v49, %v5800_v46  ;;  %v9258_v56 = vpop.permute.xlu0 %5833  ;;  %v2988_v46 = vld [vmem:[#allocation3 + $0xe0] sm:$0xff] }
 0x330   : > { %v2773_v44 = vmax.f32 %v2722_v37, 0.0  ;;  %v5830_v37 = vunpack.i.l.bf16 %v9210_v10  ;;  %v4192_v53 = vsel %vm4191_vm1, %v4159_v18, %v5805_v20  ;;  %v2552_v18 = vadd.f32 %v2551_v45, %v2463_v7 }
 0x332   : > { %2862 = vst.msk [vmem:[#allocation3 + $0xf9] sm:$0xff] %vm2786_vm12, %v2773_v44  ;;  %v9275_v44 = vpack.i.bf16 %v9215_v58, %v9213_v35 }
 0x333   : > { %v2635_v21 = vpop.f32.mrf.mxu3 }
 0x334   : > { %v2636_v36 = vadd.f32 %v2635_v21, %v2547_v52  ;;  %6028 = vrot.lane.b32.xlu2 %v6027_v6, %s6455_s27  ;;  %v2726_v32 = vpop.f32.mrf.mxu0  ;;  %v2926_v21 = vld [vmem:[#allocation3 + $0xe1] sm:$0xff] }
 0x335   : > { %6033 = vrot.lane.b32.xlu1 %v6027_v6, %s6457_s28  ;;  %6043 = vrot.lane.b32.xlu0 %v9224_v3, %s6454_s7  ;;  %v2464_v20 = vpop.f32.mrf.mxu1 }
 0x336   : > { %v2725_v38 = vadd.f32 %v2724_v40, %v2636_v36  ;;  %v9255_v39 = vpop.permute.xlu2 %5858  ;;  %v4193_v40 = vsel %vm4191_vm1, %v4160_v28, %v5806_v13  ;;  %v2925_v36 = vld [vmem:[#allocation3 + $0xd9] sm:$0xff] }
 0x337   : > { %v5824_v62 = vpop.permute.xlu1 %5823  ;;  %v6052_v28 = vpack.i.bf16 %v2926_v21, %v2925_v36  ;;  %v5861_v36 = vunpack.i.h.bf16 %v9255_v39 }
 0x338   : > { %v2774_v25 = vmax.f32 %v2725_v38, 0.0  ;;  %v5826_v23 = vunpack.i.h.bf16 %v5824_v62  ;;  %v5825_v43 = vunpack.i.l.bf16 %v5824_v62  ;;  %v5785_v38 = vunpack.i.l.bf16 %v9205_v55 }
 0x339   : > { %v9264_v1 = vld [vmem:[#allocation3 + $0xf2] sm:$0xff]  ;;  %v9266_v31 = vld [vmem:[#allocation3 + $0xfa] sm:$0xff] }
 0x33a   : > { %2863 = vst.msk [vmem:[#allocation3 + $0x109] sm:$0xff] %vm2786_vm12, %v2774_v25  ;;  %v4225_v47 = vsel %vm4224_vm2, %v4192_v53, %v5825_v43  ;;  %v4226_v14 = vsel %vm4224_vm2, %v4193_v40, %v5826_v23  ;;  %v4307_v9 = vpack.c.bf16 %v9266_v31, %v9264_v1  ;;  %v2553_v23 = vpop.f32.mrf.mxu2  ;;  %v5790_v43 = vunpack.i.l.bf16 %v9201_v29 }
 0x33b   : > { %v2637_v10 = vpop.f32.mrf.mxu3  ;;  %v4258_v52 = vsel %vm4257_vm3, %v4225_v47, %v5830_v37  ;;  %v4259_v11 = vsel %vm4257_vm3, %v4226_v14, %v5831_v4  ;;  %v2465_v40 = vadd.f32 %v2464_v20, %v8833_v51  ;;  %v4062_v53 = vsel %vm2786_vm12, %v8995_v30, %v5785_v38  ;;  %v2990_v20 = vld [vmem:[#allocation3 + $0xf8] sm:$0xff] }
 0x33c   : > { %v2638_v24 = vadd.f32 %v2637_v10, %v2549_v41  ;;  %4982 = vmatmul.msk.bf16.gmra.mxu2 %vm2786_vm12, %v4307_v9  ;;  %6038 = vrot.lane.b32.xlu2 %v9224_v3, %s6458_s23  ;;  %v4290_v16 = vpack.c.bf16 %v4259_v11, %v4258_v52  ;;  %v2729_v6 = vpop.f32.mrf.mxu0  ;;  %v5821_v9 = vunpack.i.h.bf16 %v9199_v26  ;;  %v4095_v51 = vsel %vm4092_vm14, %v4062_v53, %v5790_v43 }
 0x33d   : > { %6048 = vrot.lane.b32.xlu1 %v9220_v63, %s6456_s26  ;;  %6058 = vrot.lane.b32.xlu0 %v9275_v44, %s6453_s19  ;;  %v5786_v63 = vunpack.i.h.bf16 %v9205_v55  ;;  %v2554_v14 = vadd.f32 %v2553_v23, %v2465_v40  ;;  %v5835_v30 = vunpack.i.l.bf16 %v9258_v56  ;;  %v5860_v38 = vunpack.i.l.bf16 %v9255_v39  ;;  %v2927_v23 = vld [vmem:[#allocation3 + $0xf1] sm:$0xff] }
 0x33e   : > { %v2727_v35 = vadd.f32 %v2726_v32, %v2638_v24  ;;  %4450 = vmatmul.bf16.vlgmr.msrb.gmra.mxu1 %v4290_v16  ;;  %v9286_v58 = vpop.permute.xlu2 %5873  ;;  %v2987_v32 = vld [vmem:[#allocation3 + $0xd8] sm:$0xff]  ;;  %v5820_v24 = vunpack.i.l.bf16 %v9199_v26 }
 0x33f   : > { %v9288_v60 = vpop.permute.xlu1 %5838  ;;  %v9290_v49 = vpop.permute.xlu0 %5848  ;;  %v6062_v13 = vpack.i.bf16 %v2988_v46, %v2987_v32  ;;  %v4063_v4 = vsel %vm2786_vm12, %v8982_v61, %v5786_v63  ;;  %v5836_v61 = vunpack.i.h.bf16 %v9258_v56 }
 0x340   : > { %v2775_v3 = vmax.f32 %v2727_v35, 0.0  ;;  %v4096_v29 = vsel %vm4092_vm14, %v4063_v4, %v5791_v8  ;;  %v5841_v11 = vunpack.i.h.bf16 %v9288_v60  ;;  %v5840_v16 = vunpack.i.l.bf16 %v9288_v60 }
 0x341   : > { %v9329_v35 = vpack.i.bf16 %v9266_v31, %v9264_v1  ;;  %v4129_v21 = vsel %vm4125_vm15, %v4096_v29, %v5821_v9 }
 0x342   : > { %2864 = vst.msk [vmem:[#allocation3 + $0x111] sm:$0xff] %vm2786_vm12, %v2775_v3  ;;  %v4128_v3 = vsel %vm4125_vm15, %v4095_v51, %v5820_v24  ;;  %v4162_v46 = vsel %vm4158_vm0, %v4129_v21, %v5836_v61 }
 0x343   : > { %v2640_v54 = vpop.f32.mrf.mxu3  ;;  %v4161_v26 = vsel %vm4158_vm0, %v4128_v3, %v5835_v30  ;;  %v4195_v1 = vsel %vm4191_vm1, %v4162_v46, %v5841_v11  ;;  %v10445_v11 = vld [vmem:[#allocation19_spill] sm:$0xff]  ;;  %v5815_v3 = vunpack.i.l.bf16 %v9185_v27 }
 0x344   : > { %v2641_v62 = vadd.f32 %v2640_v54, %v2552_v18  ;;  %6053 = vrot.lane.b32.xlu2 %v6052_v28, %s6452_s17  ;;  %v2731_v25 = vpop.f32.mrf.mxu0  ;;  %v4194_v18 = vsel %vm4191_vm1, %v4161_v26, %v5840_v16  ;;  %v4228_v8 = vsel %vm4224_vm2, %v4195_v1, %v5861_v36 }
 0x345   : > { %6078 = vrot.lane.b32.xlu1 %v6052_v28, %s6454_s7  ;;  %6063 = vrot.lane.b32.xlu0 %v6062_v13, %s6455_s27  ;;  %v4227_v43 = vsel %vm4224_vm2, %v4194_v18, %v5860_v38 }
 0x346   : > { %v2730_v55 = vadd.f32 %v2729_v6, %v2641_v62  ;;  %v9303_v37 = vpop.permute.xlu2 %5903 }
 0x347   : > { %v9308_v48 = vpop.permute.xlu1 %5868  ;;  %v9310_v41 = vpop.permute.xlu0 %5853 }
 0x348   : > { %v2776_v47 = vmax.f32 %v2730_v55, 0.0  ;;  %v5811_v55 = vunpack.i.h.bf16 %v9240_v34  ;;  %v5871_v1 = vunpack.i.h.bf16 %v9308_v48 }
 0x349   : > { %v9315_v10 = vld [vmem:[#allocation3 + $0x10a] sm:$0xff]  ;;  %v9317_v52 = vld [vmem:[#allocation3 + $0x112] sm:$0xff] }
 0x34a   : > { %2865 = vst.msk [vmem:[#allocation3 + $0x121] sm:$0xff] %vm2786_vm12, %v2776_v47  ;;  %v4309_v45 = vpack.c.bf16 %v9317_v52, %v9315_v10 }
 0x34b   : > { %v2642_v6 = vpop.f32.mrf.mxu3 }
 0x34c   : > { %v2643_v7 = vadd.f32 %v2642_v6, %v2554_v14  ;;  %4983 = vmatmul.msk.bf16.gmra.mxu2 %vm2786_vm12, %v4309_v45  ;;  %6068 = vrot.lane.b32.xlu2 %v6062_v13, %s6457_s28  ;;  %v2734_v56 = vpop.f32.mrf.mxu0  ;;  %v5810_v14 = vunpack.i.l.bf16 %v9240_v34  ;;  %v10446_v45 = vld [vmem:[#allocation32_spill] sm:$0xff]  ;;  %v4065_v34 = vsel %vm2786_vm12, %v9021_v15, %v5811_v55  ;;  %v5816_v6 = vunpack.i.h.bf16 %v9185_v27 }
 0x34d   : > { %6093 = vrot.lane.b32.xlu1 %v9329_v35, %s6453_s19  ;;  %6073 = vrot.lane.b32.xlu0 %v6052_v28, %s6458_s23  ;;  %v2928_v28 = vld [vmem:[#allocation3 + $0xf9] sm:$0xff]  ;;  %v2470_v24 = vadd.f32 %v10446_v45, %v10445_v11 }
 0x34e   : > { %v2732_v31 = vadd.f32 %v2731_v25, %v2643_v7  ;;  %v9341_v60 = vpop.permute.xlu2 %5918  ;;  %v2989_v25 = vld [vmem:[#allocation3 + $0xf0] sm:$0xff]  ;;  %v6087_v39 = vpack.i.bf16 %v2928_v28, %v2927_v23  ;;  %v4064_v21 = vsel %vm2786_vm12, %v9032_v22, %v5810_v14  ;;  %v5855_v7 = vunpack.i.l.bf16 %v9310_v41 }
 0x34f   : > { %v9345_v63 = vpop.permute.xlu1 %5883  ;;  %v5864_v32 = vpop.permute.xlu0 %5863  ;;  %v6097_v53 = vpack.i.bf16 %v2990_v20, %v2989_v25  ;;  %v2559_v15 = vadd.f32 %v8732_v5, %v2470_v24  ;;  %v4097_v36 = vsel %vm4092_vm14, %v4064_v21, %v5815_v3  ;;  %v5876_v20 = vunpack.i.h.bf16 %v9286_v58  ;;  %v10447_v3 = vld [vmem:[#allocation22_spill] sm:$0xff] }
 0x350   : > { %v2777_v54 = vmax.f32 %v2732_v31, 0.0  ;;  %v5866_v13 = vunpack.i.h.bf16 %v5864_v32  ;;  %v5865_v62 = vunpack.i.l.bf16 %v5864_v32  ;;  %v4098_v31 = vsel %vm4092_vm14, %v4065_v34, %v5816_v6 }
 0x351   : > { %v4130_v32 = vsel %vm4125_vm15, %v4097_v36, %v5855_v7  ;;  %v5875_v28 = vunpack.i.l.bf16 %v9286_v58  ;;  %v9406_v58 = vpack.i.bf16 %v9317_v52, %v9315_v10  ;;  %v5845_v52 = vunpack.i.l.bf16 %v9236_v19 }
 0x352   : > { %2866 = vst.msk [vmem:[#allocation3 + $0x129] sm:$0xff] %vm2786_vm12, %v2777_v54  ;;  %v4261_v4 = vsel %vm4257_vm3, %v4228_v8, %v5866_v13  ;;  %v4260_v47 = vsel %vm4257_vm3, %v4227_v43, %v5865_v62  ;;  %v5850_v21 = vunpack.i.l.bf16 %v9290_v49 }
 0x353   : > { %v2645_v40 = vpop.f32.mrf.mxu3  ;;  %v4292_v29 = vpack.c.bf16 %v4261_v4, %v4260_v47 }
 0x354   : > { %v2646_v9 = vadd.f32 %v2645_v40, %v8707_v2  ;;  %6083 = vrot.lane.b32.xlu2 %v9275_v44, %s6456_s26  ;;  %v2736_v61 = vpop.f32.mrf.mxu0  ;;  %v5856_v2 = vunpack.i.h.bf16 %v9310_v41  ;;  %v5870_v41 = vunpack.i.l.bf16 %v9308_v48  ;;  %v2930_v40 = vld [vmem:[#allocation3 + $0x111] sm:$0xff] }
 0x355   : > { %6098 = vrot.lane.b32.xlu1 %v6097_v53, %s6455_s27  ;;  %6088 = vrot.lane.b32.xlu0 %v6087_v39, %s6452_s17 }
 0x356   : > { %4455 = vmatmul.bf16.gmra.mxu1 %v4292_v29  ;;  %v2735_v51 = vadd.f32 %v2734_v56, %v2646_v9  ;;  %v9360_v30 = vpop.permute.xlu2 %5923  ;;  %v4131_v27 = vsel %vm4125_vm15, %v4098_v31, %v5856_v2  ;;  %v4163_v62 = vsel %vm4158_vm0, %v4130_v32, %v5870_v41  ;;  %v2929_v9 = vld [vmem:[#allocation3 + $0x109] sm:$0xff]  ;;  %v5851_v31 = vunpack.i.h.bf16 %v9290_v49 }
 0x357   : > { %v9367_v16 = vpop.permute.xlu1 %5888  ;;  %v9369_v44 = vpop.permute.xlu0 %5878  ;;  %v4164_v54 = vsel %vm4158_vm0, %v4131_v27, %v5871_v1  ;;  %v4196_v47 = vsel %vm4191_vm1, %v4163_v62, %v5875_v28  ;;  %v9431_v41 = vld [vmem:[#allocation3 + $0x110] sm:$0xff]  ;;  %v4066_v32 = vsel %vm2786_vm12, %v9074_v50, %v5845_v52  ;;  %v9444_v49 = vld [vmem:[#allocation3 + $0x108] sm:$0xff] }
 0x358   : > { %v2778_v56 = vmax.f32 %v2735_v51, 0.0  ;;  %v9409_v51 = vpack.i.bf16 %v2930_v40, %v2929_v9  ;;  %v5891_v36 = vunpack.i.h.bf16 %v9367_v16 }
 0x359   : > { %v9376_v46 = vld [vmem:[#allocation3 + $0x122] sm:$0xff]  ;;  %v9378_v26 = vld [vmem:[#allocation3 + $0x12a] sm:$0xff] }
 0x35a   : > { %2867 = vst.msk [vmem:[#allocation3 + $0x139] sm:$0xff] %vm2786_vm12, %v2778_v56  ;;  %v4311_v22 = vpack.c.bf16 %v9378_v26, %v9376_v46  ;;  %v9478_v52 = vpack.i.bf16 %v9378_v26, %v9376_v46 }
 0x35b   : > { %v2647_v18 = vpop.f32.mrf.mxu3 }
 0x35c   : > { %v2648_v38 = vadd.f32 %v2647_v18, %v2559_v15  ;;  %6113 = vrot.lane.b32.xlu2 %v6087_v39, %s6454_s7  ;;  %4984 = vmatmul.msk.bf16.gmra.mxu2 %vm2786_vm12, %v4311_v22  ;;  %v2739_v5 = vpop.f32.mrf.mxu0  ;;  %v10448_v15 = vld [vmem:[#allocation13_spill] sm:$0xff] }
 0x35d   : > { %6108 = vrot.lane.b32.xlu1 %v6087_v39, %s6458_s23  ;;  %6103 = vrot.lane.b32.xlu0 %v6097_v53, %s6457_s28  ;;  %v4197_v53 = vsel %vm4191_vm1, %v4164_v54, %v5876_v20  ;;  %v2475_v1 = vadd.f32 %v10448_v15, %v10447_v3  ;;  %v4099_v54 = vsel %vm4092_vm14, %v4066_v32, %v5850_v21  ;;  %v3120_v32 = vld [vmem:[#allocation3 + $0x121] sm:$0xff] }
 0x35e   : > { %v2737_v48 = vadd.f32 %v2736_v61, %v2648_v38  ;;  %v9395_v13 = vpop.permute.xlu2 %5933  ;;  %v9441_v38 = vpop.f32.mrf.mxu2 }
 0x35f   : > { %v5899_v8 = vpop.permute.xlu1 %5898  ;;  %v5894_v25 = vpop.permute.xlu0 %5893  ;;  %v2564_v18 = vadd.f32 %v8758_v59, %v2475_v1  ;;  %v6132_v59 = vpack.i.bf16 %v9431_v41, %v9444_v49 }
 0x360   : > { %v2779_v23 = vmax.f32 %v2737_v48, 0.0  ;;  %v5901_v43 = vunpack.i.h.bf16 %v5899_v8  ;;  %v5900_v4 = vunpack.i.l.bf16 %v5899_v8  ;;  %v5896_v55 = vunpack.i.h.bf16 %v5894_v25 }
 0x361   : > { %v5895_v39 = vunpack.i.l.bf16 %v5894_v25  ;;  %v5905_v8 = vunpack.i.l.bf16 %v9303_v37 }
 0x362   : > { %2868 = vst.msk [vmem:[#allocation3 + $0x141] sm:$0xff] %vm2786_vm12, %v2779_v23  ;;  %v4230_v14 = vsel %vm4224_vm2, %v4197_v53, %v5896_v55 }
 0x363   : > { %v4229_v29 = vsel %vm4224_vm2, %v4196_v47, %v5895_v39  ;;  %v2650_v61 = vpop.f32.mrf.mxu3  ;;  %v4263_v11 = vsel %vm4257_vm3, %v4230_v14, %v5901_v43  ;;  %v5906_v43 = vunpack.i.h.bf16 %v9303_v37 }
 0x364   : > { %v2651_v45 = vadd.f32 %v2650_v61, %v8750_v33  ;;  %6128 = vrot.lane.b32.xlu2 %v9406_v58, %s6453_s19  ;;  %v4262_v24 = vsel %vm4257_vm3, %v4229_v29, %v5900_v4  ;;  %v2741_v34 = vpop.f32.mrf.mxu0  ;;  %v5846_v33 = vunpack.i.h.bf16 %v9236_v19  ;;  %v5936_v61 = vunpack.i.h.bf16 %v9395_v13 }
 0x365   : > { %6123 = vrot.lane.b32.xlu1 %v9409_v51, %s6452_s17  ;;  %6118 = vrot.lane.b32.xlu0 %v9329_v35, %s6456_s26  ;;  %v4294_v10 = vpack.c.bf16 %v4263_v11, %v4262_v24  ;;  %v5890_v35 = vunpack.i.l.bf16 %v9367_v16  ;;  %v5935_v11 = vunpack.i.l.bf16 %v9395_v13 }
 0x366   : > { %v2740_v2 = vadd.f32 %v2739_v5, %v2651_v45  ;;  %v9421_v6 = vpop.permute.xlu2 %5948  ;;  %v4067_v16 = vsel %vm2786_vm12, %v9070_v12, %v5846_v33  ;;  %v9482_v13 = vpop.f32.mrf.mxu2 }
 0x367   : > { %4460 = vmatmul.bf16.gmra.mxu1 %v4294_v10  ;;  %v9425_v7 = vpop.permute.xlu1 %5913  ;;  %v5909_v56 = vpop.permute.xlu0 %5908  ;;  %v4100_v50 = vsel %vm4092_vm14, %v4067_v16, %v5851_v31  ;;  %v4132_v20 = vsel %vm4125_vm15, %v4099_v54, %v5890_v35  ;;  %v3121_v31 = vld [vmem:[#allocation3 + $0x129] sm:$0xff]  ;;  %v10450_v35 = vld [vmem:[#allocation12_spill] sm:$0xff]  ;;  %v5881_v16 = vunpack.i.h.bf16 %v9369_v44 }
 0x368   : > { %v2780_v22 = vmax.f32 %v2740_v2, 0.0  ;;  %v4133_v12 = vsel %vm4125_vm15, %v4100_v50, %v5891_v36  ;;  %v5911_v25 = vunpack.i.h.bf16 %v5909_v56  ;;  %v5910_v23 = vunpack.i.l.bf16 %v5909_v56  ;;  %v9497_v36 = vld [vmem:[#allocation3 + $0x128] sm:$0xff] }
 0x369   : > { %v9434_v27 = vld [vmem:[#allocation3 + $0x13a] sm:$0xff]  ;;  %v9436_v19 = vld [vmem:[#allocation3 + $0x142] sm:$0xff]  ;;  %v4165_v40 = vsel %vm4158_vm0, %v4132_v20, %v5905_v8  ;;  %v4166_v47 = vsel %vm4158_vm0, %v4133_v12, %v5906_v43  ;;  %v5880_v50 = vunpack.i.l.bf16 %v9369_v44 }
 0x36a   : > { %2869 = vst.msk [vmem:[#allocation3 + $0x151] sm:$0xff] %vm2786_vm12, %v2780_v22  ;;  %v4313_v5 = vpack.c.bf16 %v9436_v19, %v9434_v27  ;;  %v4198_v45 = vsel %vm4191_vm1, %v4165_v40, %v5910_v23  ;;  %v4199_v37 = vsel %vm4191_vm1, %v4166_v47, %v5911_v25  ;;  %v6332_v8 = vld [vmem:[#allocation3 + $0x68] sm:$0xff]  ;;  %v5886_v23 = vunpack.i.h.bf16 %v9345_v63  ;;  %v6333_v43 = vld [vmem:[#allocation3 + $0x60] sm:$0xff] }
 0x36b   : > { %v2652_v48 = vpop.f32.mrf.mxu3  ;;  %v4069_v12 = vsel %vm2786_vm12, %v6332_v8, %v5881_v16  ;;  %v5885_v47 = vunpack.i.l.bf16 %v9345_v63  ;;  %v5916_v16 = vunpack.i.h.bf16 %v9425_v7 }
 0x36c   : > { %v2653_v28 = vadd.f32 %v2652_v48, %v2564_v18  ;;  %6138 = vrot.lane.b32.xlu2 %v9409_v51, %s6458_s23  ;;  %4985 = vmatmul.msk.bf16.gmra.mxu2 %vm2786_vm12, %v4313_v5  ;;  %v2744_v62 = vpop.f32.mrf.mxu0  ;;  %v6172_v48 = vpack.i.bf16 %v3121_v31, %v3120_v32 }
 0x36d   : > { %6133 = vrot.lane.b32.xlu1 %v6132_v59, %s6457_s28  ;;  %6143 = vrot.lane.b32.xlu0 %v6132_v59, %s6455_s27  ;;  %v9508_v59 = vld [vmem:[#allocation3 + $0x120] sm:$0xff] }
 0x36e   : > { %v2742_v4 = vadd.f32 %v2741_v34, %v2653_v28  ;;  %v9463_v55 = vpop.permute.xlu2 %5963  ;;  %v6167_v28 = vpack.i.bf16 %v9497_v36, %v9508_v59 }
 0x36f   : > { %v5929_v39 = vpop.permute.xlu1 %5928  ;;  %v9466_v53 = vpop.permute.xlu0 %5938 }
 0x370   : > { %v2781_v14 = vmax.f32 %v2742_v4, 0.0  ;;  %v5931_v9 = vunpack.i.h.bf16 %v5929_v39  ;;  %v5930_v29 = vunpack.i.l.bf16 %v5929_v39  ;;  %v4068_v4 = vsel %vm2786_vm12, %v6333_v43, %v5880_v50 }
 0x372   : > { %2870 = vst.msk [vmem:[#allocation3 + $0x159] sm:$0xff] %vm2786_vm12, %v2781_v14  ;;  %v4231_v24 = vsel %vm4224_vm2, %v4198_v45, %v5930_v29  ;;  %v4232_v34 = vsel %vm4224_vm2, %v4199_v37, %v5931_v9  ;;  %v4102_v9 = vsel %vm4092_vm14, %v4069_v12, %v5886_v23  ;;  %v5941_v29 = vunpack.i.h.bf16 %v9466_v53  ;;  %v2933_v12 = vld [vmem:[#allocation3 + $0x139] sm:$0xff] }
 0x373   : > { %v2655_v10 = vpop.f32.mrf.mxu3  ;;  %v4264_v2 = vsel %vm4257_vm3, %v4231_v24, %v5935_v11  ;;  %v4265_v33 = vsel %vm4257_vm3, %v4232_v34, %v5936_v61  ;;  %v5926_v11 = vunpack.i.h.bf16 %v9360_v30  ;;  %v4101_v45 = vsel %vm4092_vm14, %v4068_v4, %v5885_v47 }
 0x374   : > { %v2656_v21 = vadd.f32 %v2655_v10, %v8772_v57  ;;  %6153 = vrot.lane.b32.xlu2 %v9406_v58, %s6456_s26  ;;  %v4296_v56 = vpack.c.bf16 %v4265_v33, %v4264_v2  ;;  %v2746_v3 = vpop.f32.mrf.mxu0  ;;  %v10449_v57 = vld [vmem:[#allocation18_spill] sm:$0xff]  ;;  %v5940_v37 = vunpack.i.l.bf16 %v9466_v53  ;;  %v5925_v34 = vunpack.i.l.bf16 %v9360_v30 }
 0x375   : > { %6148 = vrot.lane.b32.xlu1 %v9409_v51, %s6454_s7  ;;  %6163 = vrot.lane.b32.xlu0 %v9478_v52, %s6453_s19  ;;  %v2480_v22 = vadd.f32 %v10450_v35, %v10449_v57  ;;  %v4135_v63 = vsel %vm4125_vm15, %v4102_v9, %v5926_v11  ;;  %v9552_v35 = vld [vmem:[#allocation3 + $0x140] sm:$0xff]  ;;  %v5915_v23 = vunpack.i.l.bf16 %v9425_v7  ;;  %v6197_v47 = vpack.i.bf16 %v9436_v19, %v9434_v27  ;;  %v6335_v19 = vld [vmem:[#allocation3 + $0x78] sm:$0xff] }
 0x376   : > { %v2745_v46 = vadd.f32 %v2744_v62, %v2656_v21  ;;  %v9491_v26 = vpop.permute.xlu2 %5978  ;;  %v4134_v21 = vsel %vm4125_vm15, %v4101_v45, %v5925_v34  ;;  %v6334_v45 = vld [vmem:[#allocation3 + $0x80] sm:$0xff] }
 0x377   : > { %4465 = vmatmul.bf16.gmra.mxu1 %v4296_v56  ;;  %v5944_v15 = vpop.permute.xlu1 %5943  ;;  %v9493_v1 = vpop.permute.xlu0 %5953  ;;  %v2569_v5 = vadd.f32 %v8784_v0, %v2480_v22  ;;  %v4168_v56 = vsel %vm4158_vm0, %v4135_v63, %v5941_v29  ;;  %v4167_v53 = vsel %vm4158_vm0, %v4134_v21, %v5940_v37  ;;  %v4071_v27 = vsel %vm2786_vm12, %v6334_v45, %v5916_v16 }
 0x378   : > { %v2782_v58 = vmax.f32 %v2745_v46, 0.0  ;;  %v9517_v0 = vpop.f32.mrf.mxu2  ;;  %v5946_v24 = vunpack.i.h.bf16 %v5944_v15  ;;  %v5945_v10 = vunpack.i.l.bf16 %v5944_v15  ;;  %v4070_v37 = vsel %vm2786_vm12, %v6335_v19, %v5915_v23 }
 0x379   : > { %v9499_v18 = vld [vmem:[#allocation3 + $0x152] sm:$0xff]  ;;  %v9501_v51 = vld [vmem:[#allocation3 + $0x15a] sm:$0xff]  ;;  %v5920_v63 = vunpack.i.l.bf16 %v9341_v60 }
 0x37a   : > { %2871 = vst.msk [vmem:[#allocation3 + $0x169] sm:$0xff] %vm2786_vm12, %v2782_v58  ;;  %v4315_v54 = vpack.c.bf16 %v9501_v51, %v9499_v18  ;;  %v4201_v30 = vsel %vm4191_vm1, %v4168_v56, %v5946_v24  ;;  %v4200_v15 = vsel %vm4191_vm1, %v4167_v53, %v5945_v10 }
 0x37b   : > { %v2657_v20 = vpop.f32.mrf.mxu3 }
 0x37c   : > { %v2658_v62 = vadd.f32 %v2657_v20, %v2569_v5  ;;  %4986 = vmatmul.msk.bf16.gmra.mxu2 %vm2786_vm12, %v4315_v54  ;;  %6158 = vrot.lane.b32.xlu2 %v6172_v48, %s6452_s17  ;;  %v2749_v61 = vpop.f32.mrf.mxu0  ;;  %v2934_v5 = vld [vmem:[#allocation3 + $0x141] sm:$0xff] }
 0x37d   : > { %6173 = vrot.lane.b32.xlu1 %v6172_v48, %s6458_s23  ;;  %6168 = vrot.lane.b32.xlu0 %v6167_v28, %s6457_s28 }
 0x37e   : > { %v2747_v25 = vadd.f32 %v2746_v3, %v2658_v62  ;;  %v9520_v44 = vpop.permute.xlu2 %6008 }
 0x37f   : > { %v9524_v40 = vpop.permute.xlu1 %5973  ;;  %v9526_v39 = vpop.permute.xlu0 %5958 }
 0x380   : > { %v2783_v14 = vmax.f32 %v2747_v25, 0.0  ;;  %v9554_v22 = vpop.f32.mrf.mxu2  ;;  %v5960_v24 = vunpack.i.l.bf16 %v9526_v39  ;;  %v5976_v56 = vunpack.i.h.bf16 %v9524_v40  ;;  %v5975_v53 = vunpack.i.l.bf16 %v9524_v40 }
 0x382   : > { %2872 = vst.msk [vmem:[#allocation3 + $0x171] sm:$0xff] %vm2786_vm12, %v2783_v14  ;;  %v6192_v14 = vpack.i.bf16 %v2934_v5, %v2933_v12 }
 0x383   : > { %v2660_v2 = vpop.f32.mrf.mxu3 }
 0x384   : > { %v2661_v33 = vadd.f32 %v2660_v2, %v8811_v42  ;;  %6178 = vrot.lane.b32.xlu2 %v6167_v28, %s6455_s27  ;;  %v5966_v42 = vunpack.i.h.bf16 %v9463_v55  ;;  %v9563_v28 = vld [vmem:[#allocation3 + $0x138] sm:$0xff]  ;;  %v2751_v9 = vpop.f32.mrf.mxu0  ;;  %v5921_v2 = vunpack.i.h.bf16 %v9341_v60 }
 0x385   : > { %6188 = vrot.lane.b32.xlu1 %v9478_v52, %s6456_s26  ;;  %6183 = vrot.lane.b32.xlu0 %v6172_v48, %s6454_s7  ;;  %v5965_v52 = vunpack.i.l.bf16 %v9463_v55  ;;  %v6202_v25 = vpack.i.bf16 %v9552_v35, %v9563_v28 }
 0x386   : > { %v2750_v46 = vadd.f32 %v2749_v61, %v2661_v33  ;;  %v9546_v3 = vpop.permute.xlu2 %6023  ;;  %v4234_v48 = vsel %vm4224_vm2, %v4201_v30, %v5966_v42  ;;  %v4103_v30 = vsel %vm4092_vm14, %v4070_v37, %v5920_v63 }
 0x387   : > { %v9550_v31 = vpop.permute.xlu1 %5988  ;;  %v5969_v57 = vpop.permute.xlu0 %5968  ;;  %v4233_v62 = vsel %vm4224_vm2, %v4200_v15, %v5965_v52  ;;  %v4136_v42 = vsel %vm4125_vm15, %v4103_v30, %v5960_v24  ;;  %v5980_v52 = vunpack.i.l.bf16 %v9491_v26  ;;  %v5955_v24 = vunpack.i.l.bf16 %v9493_v1  ;;  %v6337_v30 = vld [vmem:[#allocation3 + $0x90] sm:$0xff] }
 0x388   : > { %v2784_v58 = vmax.f32 %v2750_v46, 0.0  ;;  %v5971_v32 = vunpack.i.h.bf16 %v5969_v57  ;;  %v5970_v54 = vunpack.i.l.bf16 %v5969_v57  ;;  %v9593_v21 = vpop.f32.mrf.mxu2  ;;  %v4104_v46 = vsel %vm4092_vm14, %v4071_v27, %v5921_v2  ;;  %v9639_v2 = vld [vmem:[#allocation3 + $0x158] sm:$0xff] }
 0x389   : > { %v9559_v50 = vld [vmem:[#allocation3 + $0x16a] sm:$0xff]  ;;  %v9561_v20 = vld [vmem:[#allocation3 + $0x172] sm:$0xff]  ;;  %v4169_v40 = vsel %vm4158_vm0, %v4136_v42, %v5975_v53  ;;  %v5981_v57 = vunpack.i.h.bf16 %v9491_v26 }
 0x38a   : > { %2873 = vst.msk [vmem:[#allocation3 + $0x181] sm:$0xff] %vm2786_vm12, %v2784_v58  ;;  %v4267_v55 = vsel %vm4257_vm3, %v4234_v48, %v5971_v32  ;;  %v4317_v8 = vpack.c.bf16 %v9561_v20, %v9559_v50  ;;  %v4266_v4 = vsel %vm4257_vm3, %v4233_v62, %v5970_v54  ;;  %v2936_v62 = vld [vmem:[#allocation3 + $0x159] sm:$0xff] }
 0x38b   : > { %v2662_v43 = vpop.f32.mrf.mxu3  ;;  %v4298_v61 = vpack.c.bf16 %v4267_v55, %v4266_v4  ;;  %v4202_v55 = vsel %vm4191_vm1, %v4169_v40, %v5980_v52  ;;  %v2935_v4 = vld [vmem:[#allocation3 + $0x151] sm:$0xff]  ;;  %v6010_v52 = vunpack.i.l.bf16 %v9520_v44 }
 0x38c   : > { %v2663_v29 = vadd.f32 %v2662_v43, %v8839_v17  ;;  %4987 = vmatmul.msk.bf16.gmra.mxu2 %vm2786_vm12, %v4317_v8  ;;  %6203 = vrot.lane.b32.xlu2 %v6202_v25, %s6457_s28  ;;  %v5961_v17 = vunpack.i.h.bf16 %v9526_v39 }
 0x38d   : > { %6198 = vrot.lane.b32.xlu1 %v6197_v47, %s6453_s19  ;;  %6193 = vrot.lane.b32.xlu0 %v6192_v14, %s6452_s17 }
 0x38e   : > { %4470 = vmatmul.bf16.gmra.mxu1 %v4298_v61  ;;  %v2752_v7 = vadd.f32 %v2751_v9, %v2663_v29  ;;  %v9581_v11 = vpop.permute.xlu2 %6028  ;;  %v4137_v39 = vsel %vm4125_vm15, %v4104_v46, %v5961_v17  ;;  %v6227_v9 = vpack.i.bf16 %v2936_v62, %v2935_v4  ;;  %v5956_v17 = vunpack.i.h.bf16 %v9493_v1 }
 0x38f   : > { %v9587_v34 = vpop.permute.xlu1 %5993  ;;  %v9589_v10 = vpop.permute.xlu0 %5983  ;;  %v4170_v60 = vsel %vm4158_vm0, %v4137_v39, %v5976_v56  ;;  %v6336_v56 = vld [vmem:[#allocation3 + $0x98] sm:$0xff]  ;;  %v6267_v4 = vpack.i.bf16 %v9561_v20, %v9559_v50  ;;  %v3126_v50 = vld [vmem:[#allocation3 + $0x169] sm:$0xff] }
 0x390   : > { %v2785_v33 = vmax.f32 %v2752_v7, 0.0  ;;  %v4203_v8 = vsel %vm4191_vm1, %v4170_v60, %v5981_v57  ;;  %v9625_v7 = vpop.f32.mrf.mxu2  ;;  %v5996_v63 = vunpack.i.h.bf16 %v9587_v34  ;;  %v6011_v57 = vunpack.i.h.bf16 %v9520_v44 }
 0x391   : > { %v5986_v20 = vunpack.i.h.bf16 %v9589_v10 }
 0x392   : > { %2874 = vst.msk [vmem:[#allocation3 + $0x189] sm:$0xff] %vm2786_vm12, %v2785_v33  ;;  %v9643_v33 = vld [vmem:[#allocation3 + $0x150] sm:$0xff] }
 0x393   : > { %v6237_v46 = vpack.i.bf16 %v9639_v2, %v9643_v33 }
 0x394   : > { %6218 = vrot.lane.b32.xlu2 %v6192_v14, %s6454_s7 }
 0x395   : > { %6213 = vrot.lane.b32.xlu1 %v6202_v25, %s6455_s27  ;;  %6208 = vrot.lane.b32.xlu0 %v6192_v14, %s6458_s23  ;;  %v6232_v14 = vpack.i.bf16 %v9501_v51, %v9499_v18  ;;  %v5951_v18 = vunpack.i.h.bf16 %v9421_v6  ;;  %v5950_v51 = vunpack.i.l.bf16 %v9421_v6 }
 0x396   : > { %v9607_v15 = vpop.permute.xlu2 %6038 }
 0x397   : > { %v6004_v58 = vpop.permute.xlu1 %6003  ;;  %v5999_v32 = vpop.permute.xlu0 %5998  ;;  %v4073_v53 = vsel %vm2786_vm12, %v6336_v56, %v5951_v18  ;;  %v4072_v6 = vsel %vm2786_vm12, %v6337_v30, %v5950_v51  ;;  %v2890_v56 = vld [vmem:[#allocation3 + $0xb0] sm:$0xff] }
 0x398   : > { %v6006_v5 = vunpack.i.h.bf16 %v6004_v58  ;;  %v6005_v16 = vunpack.i.l.bf16 %v6004_v58  ;;  %v6001_v54 = vunpack.i.h.bf16 %v5999_v32  ;;  %v6000_v48 = vunpack.i.l.bf16 %v5999_v32 }
 0x399   : > { %v9613_v12 = vld [vmem:[#allocation3 + $0x182] sm:$0xff]  ;;  %v9615_v25 = vld [vmem:[#allocation3 + $0x18a] sm:$0xff]  ;;  %v4106_v39 = vsel %vm4092_vm14, %v4073_v53, %v5956_v17  ;;  %v4105_v1 = vsel %vm4092_vm14, %v4072_v6, %v5955_v24  ;;  %v5985_v24 = vunpack.i.l.bf16 %v9589_v10  ;;  %v4075_v53 = vsel %vm2786_vm12, %v2890_v56, %v5986_v20 }
 0x39a   : > { %v4235_v23 = vsel %vm4224_vm2, %v4202_v55, %v6000_v48  ;;  %v4236_v43 = vsel %vm4224_vm2, %v4203_v8, %v6001_v54  ;;  %v4319_v26 = vpack.c.bf16 %v9615_v25, %v9613_v12  ;;  %v6041_v55 = vunpack.i.h.bf16 %v9607_v15  ;;  %v9679_v17 = vld [vmem:[#allocation3 + $0x170] sm:$0xff] }
 0x39b   : > { %v4268_v29 = vsel %vm4257_vm3, %v4235_v23, %v6005_v16  ;;  %v4269_v61 = vsel %vm4257_vm3, %v4236_v43, %v6006_v5  ;;  %v6040_v8 = vunpack.i.l.bf16 %v9607_v15  ;;  %v5991_v10 = vunpack.i.h.bf16 %v9550_v31  ;;  %v3129_v20 = vld [vmem:[#allocation3 + $0x189] sm:$0xff] }
 0x39c   : > { %4988 = vmatmul.msk.bf16.gmra.mxu2 %vm2786_vm12, %v4319_v26  ;;  %6233 = vrot.lane.b32.xlu2 %v6232_v14, %s6453_s19  ;;  %v4300_v45 = vpack.c.bf16 %v4269_v61, %v4268_v29 }
 0x39d   : > { %6228 = vrot.lane.b32.xlu1 %v6227_v9, %s6452_s17  ;;  %6223 = vrot.lane.b32.xlu0 %v6197_v47, %s6456_s26  ;;  %v5995_v47 = vunpack.i.l.bf16 %v9587_v34  ;;  %v4139_v34 = vsel %vm4125_vm15, %v4106_v39, %v5996_v63  ;;  %v9683_v63 = vld [vmem:[#allocation3 + $0x168] sm:$0xff] }
 0x39e   : > { %4475 = vmatmul.bf16.gmra.mxu1 %v4300_v45  ;;  %v9631_v27 = vpop.permute.xlu2 %6053  ;;  %v4172_v54 = vsel %vm4158_vm0, %v4139_v34, %v6011_v57  ;;  %v6031_v57 = vunpack.i.h.bf16 %v9581_v11 }
 0x39f   : > { %v9635_v19 = vpop.permute.xlu1 %6018  ;;  %v6014_v37 = vpop.permute.xlu0 %6013  ;;  %v4138_v42 = vsel %vm4125_vm15, %v4105_v1, %v5995_v47  ;;  %v2889_v47 = vld [vmem:[#allocation3 + $0xa8] sm:$0xff] }
 0x3a0   : > { %v6016_v60 = vunpack.i.h.bf16 %v6014_v37  ;;  %v6015_v40 = vunpack.i.l.bf16 %v6014_v37  ;;  %v4171_v16 = vsel %vm4158_vm0, %v4138_v42, %v6010_v52  ;;  %v3127_v37 = vld [vmem:[#allocation3 + $0x171] sm:$0xff]  ;;  %v4074_v30 = vsel %vm2786_vm12, %v2889_v47, %v5985_v24 }
 0x3a1   : > { %v4108_v42 = vsel %vm4092_vm14, %v4075_v53, %v5991_v10  ;;  %v6030_v52 = vunpack.i.l.bf16 %v9581_v11  ;;  %v6020_v47 = vunpack.i.l.bf16 %v9635_v19 }
 0x3a2   : > { %v4204_v23 = vsel %vm4191_vm1, %v4171_v16, %v6015_v40  ;;  %v4205_v43 = vsel %vm4191_vm1, %v4172_v54, %v6016_v60 }
 0x3a4   : > { %6243 = vrot.lane.b32.xlu2 %v6227_v9, %s6458_s23 }
 0x3a5   : > { %6238 = vrot.lane.b32.xlu1 %v6237_v46, %s6457_s28  ;;  %6248 = vrot.lane.b32.xlu0 %v6237_v46, %s6455_s27  ;;  %v5990_v46 = vunpack.i.l.bf16 %v9550_v31  ;;  %v4141_v31 = vsel %vm4125_vm15, %v4108_v42, %v6031_v57 }
 0x3a6   : > { %v9658_v58 = vpop.permute.xlu2 %6068 }
 0x3a7   : > { %v6034_v32 = vpop.permute.xlu1 %6033  ;;  %v6044_v5 = vpop.permute.xlu0 %6043  ;;  %v4107_v34 = vsel %vm4092_vm14, %v4074_v30, %v5990_v46  ;;  %v3128_v30 = vld [vmem:[#allocation3 + $0x181] sm:$0xff] }
 0x3a8   : > { %v6036_v48 = vunpack.i.h.bf16 %v6034_v32  ;;  %v6035_v62 = vunpack.i.l.bf16 %v6034_v32  ;;  %v6046_v60 = vunpack.i.h.bf16 %v6044_v5  ;;  %v6045_v40 = vunpack.i.l.bf16 %v6044_v5 }
 0x3a9   : > { %v6302_v46 = vpack.i.bf16 %v3129_v20, %v3128_v30 }
 0x3aa   : > { %v4237_v44 = vsel %vm4224_vm2, %v4204_v23, %v6035_v62  ;;  %v4238_v26 = vsel %vm4224_vm2, %v4205_v43, %v6036_v48  ;;  %v4140_v48 = vsel %vm4125_vm15, %v4107_v34, %v6030_v52  ;;  %v4174_v5 = vsel %vm4158_vm0, %v4141_v31, %v6046_v60  ;;  %v3098_v60 = vld [vmem:[#allocation3 + $0x198] sm:$0xff]  ;;  %v6339_v52 = vld [vmem:[#allocation3 + $0xc0] sm:$0xff] }
 0x3ab   : > { %v4270_v29 = vsel %vm4257_vm3, %v4237_v44, %v6040_v8  ;;  %v4271_v61 = vsel %vm4257_vm3, %v4238_v26, %v6041_v55  ;;  %v4173_v55 = vsel %vm4158_vm0, %v4140_v48, %v6045_v40  ;;  %v6071_v44 = vunpack.i.h.bf16 %v9658_v58  ;;  %v3099_v40 = vld [vmem:[#allocation3 + $0x1a0] sm:$0xff] }
 0x3ac   : > { %6258 = vrot.lane.b32.xlu2 %v6232_v14, %s6456_s26  ;;  %v4302_v45 = vpack.c.bf16 %v4271_v61, %v4270_v29  ;;  %v6277_v14 = vpack.i.bf16 %v3127_v37, %v3126_v50  ;;  %v3002_v61 = vld [vmem:[#allocation3 + $0x188] sm:$0xff]  ;;  %v3001_v50 = vld [vmem:[#allocation3 + $0x180] sm:$0xff]  ;;  %v6026_v31 = vunpack.i.h.bf16 %v9546_v3 }
 0x3ad   : > { %6253 = vrot.lane.b32.xlu1 %v6227_v9, %s6454_s7  ;;  %6268 = vrot.lane.b32.xlu0 %v6267_v4, %s6453_s19  ;;  %v6272_v9 = vpack.i.bf16 %v9679_v17, %v9683_v63 }
 0x3ae   : > { %4480 = vmatmul.bf16.gmra.mxu1 %v4302_v45  ;;  %v9675_v15 = vpop.permute.xlu2 %6083 }
 0x3af   : > { %v6049_v18 = vpop.permute.xlu1 %6048  ;;  %v9677_v51 = vpop.permute.xlu0 %6058 }
 0x3b0   : > { %v6051_v32 = vunpack.i.h.bf16 %v6049_v18  ;;  %v6050_v16 = vunpack.i.l.bf16 %v6049_v18 }
 0x3b2   : > { %v4206_v11 = vsel %vm4191_vm1, %v4173_v55, %v6050_v16  ;;  %v4207_v8 = vsel %vm4191_vm1, %v4174_v5, %v6051_v32  ;;  %v6322_v55 = vpack.i.bf16 %v3099_v40, %v3098_v60  ;;  %v6056_v40 = vunpack.i.h.bf16 %v9631_v27 }
 0x3b3   : > { %v4240_v37 = vsel %vm4224_vm2, %v4207_v8, %v6071_v44 }
 0x3b4   : > { %6263 = vrot.lane.b32.xlu2 %v6277_v14, %s6452_s17  ;;  %s9722_s17 = scalar_lea.vmem [#allocation7], %s4780_s30  ;;  %s5040_s30 = sshll.u32 %s6502_s16, 8 }
 0x3b5   : > { %6278 = vrot.lane.b32.xlu1 %v6277_v14, %s6458_s23  ;;  %6273 = vrot.lane.b32.xlu0 %v6272_v9, %s6457_s28 }
 0x3b6   : > { %v9692_v6 = vpop.permute.xlu2 %6113 }
 0x3b7   : > { %v9696_v39 = vpop.permute.xlu1 %6078  ;;  %v9698_v1 = vpop.permute.xlu0 %6063 }
 0x3b8   : > { %v6066_v32 = vunpack.i.h.bf16 %v9698_v1  ;;  %v6065_v16 = vunpack.i.l.bf16 %v9698_v1  ;;  %v6081_v5 = vunpack.i.h.bf16 %v9696_v39 }
 0x3bb   : > { %v4451_v54 = vpop.f32.mrf.mxu1 }
 0x3bc   : > { %v4541_v62 = vadd.f32 %v9441_v38, %v4451_v54  ;;  %6283 = vrot.lane.b32.xlu2 %v6272_v9, %s6455_s27  ;;  %v6070_v38 = vunpack.i.l.bf16 %v9658_v58  ;;  %v6021_v9 = vunpack.i.h.bf16 %v9635_v19  ;;  %v6338_v19 = vld [vmem:[#allocation3 + $0xc8] sm:$0xff] }
 0x3bd   : > { %6293 = vrot.lane.b32.xlu1 %v6267_v4, %s6456_s26  ;;  %6288 = vrot.lane.b32.xlu0 %v6277_v14, %s6454_s7  ;;  %v6307_v14 = vpack.i.bf16 %v3002_v61, %v3001_v50 }
 0x3be   : > { %v4620_v23 = vmax.f32 %v4541_v62, 0.0  ;;  %v9714_v43 = vpop.permute.xlu2 %6128  ;;  %v4239_v18 = vsel %vm4224_vm2, %v4206_v11, %v6070_v38  ;;  %v4077_v57 = vsel %vm2786_vm12, %v6338_v19, %v6021_v9  ;;  %v6025_v62 = vunpack.i.l.bf16 %v9546_v3  ;;  %v3130_v3 = vld [vmem:[#allocation3 + $0x199] sm:$0xff] }
 0x3bf   : > { %v9718_v26 = vpop.permute.xlu1 %6093  ;;  %v6074_v29 = vpop.permute.xlu0 %6073  ;;  %v6080_v11 = vunpack.i.l.bf16 %v9696_v39  ;;  %v6317_v38 = vpack.i.bf16 %v9615_v25, %v9613_v12  ;;  %v6055_v19 = vunpack.i.l.bf16 %v9631_v27 }
 0x3c0   : > { %4652 = vst.msk [vmem:[%s9722_s17] sm:$0xff] %vm4092_vm14, %v4620_v23  ;;  %v6076_v4 = vunpack.i.h.bf16 %v6074_v29  ;;  %v6075_v45 = vunpack.i.l.bf16 %v6074_v29  ;;  %v4110_v23 = vsel %vm4092_vm14, %v4077_v57, %v6026_v31  ;;  %v3131_v29 = vld [vmem:[#allocation3 + $0x1a1] sm:$0xff]  ;;  %v9787_v31 = vpop.f32.mrf.mxu2 }
 0x3c1   : > { %v4143_v1 = vsel %vm4125_vm15, %v4110_v23, %v6066_v32  ;;  %v6327_v25 = vpack.i.bf16 %v3131_v29, %v3130_v3  ;;  %v6060_v32 = vunpack.i.l.bf16 %v9677_v51  ;;  %v6116_v3 = vunpack.i.h.bf16 %v9692_v6 }
 0x3c2   : > { %v4272_v58 = vsel %vm4257_vm3, %v4239_v18, %v6075_v45  ;;  %v4273_v24 = vsel %vm4257_vm3, %v4240_v37, %v6076_v4  ;;  %v4176_v61 = vsel %vm4158_vm0, %v4143_v1, %v6081_v5  ;;  %v6086_v45 = vunpack.i.h.bf16 %v9675_v15  ;;  %v6341_v5 = vld [vmem:[#allocation3 + $0xd8] sm:$0xff] }
 0x3c3   : > { %v4453_v56 = vpop.f32.mrf.mxu1  ;;  %v4304_v53 = vpack.c.bf16 %v4273_v24, %v4272_v58  ;;  %v6085_v18 = vunpack.i.l.bf16 %v9675_v15  ;;  %v4078_v27 = vsel %vm2786_vm12, %v6341_v5, %v6055_v19  ;;  %v6115_v29 = vunpack.i.l.bf16 %v9692_v6  ;;  %v2895_v19 = vld [vmem:[#allocation3 + $0xf0] sm:$0xff] }
 0x3c4   : > { %v4543_v10 = vadd.f32 %v9482_v13, %v4453_v56  ;;  %6298 = vrot.lane.b32.xlu2 %v6307_v14, %s6457_s28  ;;  %v4076_v13 = vsel %vm2786_vm12, %v6339_v52, %v6020_v47  ;;  %v4209_v9 = vsel %vm4191_vm1, %v4176_v61, %v6086_v45 }
 0x3c5   : > { %4485 = vmatmul.bf16.gmra.mxu1 %v4304_v53  ;;  %6308 = vrot.lane.b32.xlu1 %v6307_v14, %s6455_s27  ;;  %v4109_v8 = vsel %vm4092_vm14, %v4076_v13, %v6025_v62  ;;  %v6061_v13 = vunpack.i.h.bf16 %v9677_v51  ;;  %v6340_v62 = vld [vmem:[#allocation3 + $0xe0] sm:$0xff]  ;;  %v4111_v51 = vsel %vm4092_vm14, %v4078_v27, %v6060_v32  ;;  %s4696_s27 = scalar_lea.hbm %s10077_s3, %s5040_s30 }
 0x3c6   : > { %v4621_v42 = vmax.f32 %v4543_v10, 0.0  ;;  %6303 = vrot.lane.b32.xlu0 %v6302_v46, %s6458_s23  ;;  %v9736_v34 = vpop.permute.xlu2 %6138  ;;  %v4142_v44 = vsel %vm4125_vm15, %v4109_v8, %v6065_v16 }
 0x3c7   : > { %v9742_v54 = vpop.permute.xlu1 %6098  ;;  %v9744_v48 = vpop.permute.xlu0 %6088  ;;  %v4175_v39 = vsel %vm4158_vm0, %v4142_v44, %v6080_v11 }
 0x3c8   : > { %4653 = vst.msk [vmem:[%s9722_s17 + $0x8] sm:$0xff] %vm4092_vm14, %v4621_v42  ;;  %v4208_v14 = vsel %vm4191_vm1, %v4175_v39, %v6085_v18  ;;  %v6100_v16 = vunpack.i.l.bf16 %v9742_v54 }
 0x3ca   : > { %v4144_v1 = vsel %vm4125_vm15, %v4111_v51, %v6100_v16 }
 0x3cb   : > { %v4177_v18 = vsel %vm4158_vm0, %v4144_v1, %v6115_v29 }
 0x3cc   : > { %6313 = vrot.lane.b32.xlu2 %v6302_v46, %s6454_s7 }
 0x3cd   : > { %6323 = vrot.lane.b32.xlu1 %v6322_v55, %s6457_s28  ;;  %v4079_v55 = vsel %vm2786_vm12, %v6340_v62, %v6056_v40  ;;  %v6096_v62 = vunpack.i.h.bf16 %v9718_v26  ;;  %s4699_s28 = sshll.u32 %s4696_s27, 4  ;;  %s4700_s28 = int_to_ptr.hbm [resolvable:$true] %s4699_s28 }
 0x3ce   : > { %6318 = vrot.lane.b32.xlu0 %v6317_v38, %s6456_s26  ;;  %v9763_v4 = vpop.permute.xlu2 %6153  ;;  %v4112_v8 = vsel %vm4092_vm14, %v4079_v55, %v6061_v13  ;;  %s4697_s26 = sshll.u32 %s9722_s17, 4  ;;  %s6386_s16 = sshra.s32 %s4700_s28, 4  ;;  %s4698_s26 = int_to_ptr.vmem [resolvable:$true] %s4697_s26  ;;  %s6387_s16 = int_to_ptr.hbm [resolvable:$true] %s6386_s16 }
 0x3cf   : > { %v6109_v37 = vpop.permute.xlu1 %6108  ;;  %v6104_v12 = vpop.permute.xlu0 %6103  ;;  %p6393_p0 = scmp.lt.s32.totalorder %s6387_s16, %s10077_s3 }
 0x3d0   : > { %v6111_v50 = vunpack.i.h.bf16 %v6109_v37  ;;  %v6110_v20 = vunpack.i.l.bf16 %v6109_v37  ;;  %v6106_v58 = vunpack.i.h.bf16 %v6104_v12  ;;  %v6105_v24 = vunpack.i.l.bf16 %v6104_v12 }
 0x3d2   : > { %v4241_v47 = vsel %vm4224_vm2, %v4208_v14, %v6105_v24  ;;  %v4242_v56 = vsel %vm4224_vm2, %v4209_v9, %v6106_v58 }
 0x3d3   : > { %v4456_v53 = vpop.f32.mrf.mxu1  ;;  %v4274_v30 = vsel %vm4257_vm3, %v4241_v47, %v6110_v20  ;;  %v4275_v15 = vsel %vm4257_vm3, %v4242_v56, %v6111_v50  ;;  %v6141_v50 = vunpack.i.h.bf16 %v9736_v34  ;;  %v6140_v20 = vunpack.i.l.bf16 %v9736_v34  ;;  %v4557_v56 = vpop.f32.mrf.mxu2 }
 0x3d4   : > { %v4546_v10 = vadd.f32 %v9517_v0, %v4456_v53  ;;  %v4306_v46 = vpack.c.bf16 %v4275_v15, %v4274_v30  ;;  %6328 = vrot.lane.b32.xlu2 %v6327_v25, %s6458_s23  ;;  %v6101_v0 = vunpack.i.h.bf16 %v9742_v54  ;;  %v6091_v15 = vunpack.i.h.bf16 %v9744_v48  ;;  %s6388_s23 = scalar_lea.hbm %s6387_s16, 256 }
 0x3d5   : > { %v6090_v34 = vunpack.i.l.bf16 %v9744_v48  ;;  %v6095_v48 = vunpack.i.l.bf16 %v9718_v26  ;;  %p6389_p6 = scmp.ne.s32.totalorder %s6387_s16, %s6388_s23  ;;  %p6394_p2 = scmp.lt.s32.totalorder %s6392_s9, %s6388_s23 }
 0x3d6   : > { %v4622_v42 = vmax.f32 %v4546_v10, 0.0  ;;  %4490 = vmatmul.bf16.gmra.mxu1 %v4306_v46  ;;  %v9775_v60 = vpop.permute.xlu2 %6158  ;;  %v4145_v54 = vsel %vm4125_vm15, %v4112_v8, %v6101_v0 }
 0x3d7   : > { %v9779_v57 = vpop.permute.xlu1 %6123  ;;  %v6119_v52 = vpop.permute.xlu0 %6118  ;;  %v4178_v37 = vsel %vm4158_vm0, %v4145_v54, %v6116_v3  ;;  %v4080_v32 = vsel %vm2786_vm12, %v2895_v19, %v6090_v34  ;;  %v6155_v3 = vunpack.i.l.bf16 %v9763_v4  ;;  %p6390_p12 = pnand %p6389_p6, %p6530_p10  ;;  %p6395_p3 = por %p6394_p2, %p6393_p0 }
 0x3d8   : > { %4654 = vst.msk [vmem:[%s9722_s17 + $0x10] sm:$0xff] %vm4092_vm14, %v4622_v42  ;;  %v6121_v44 = vunpack.i.h.bf16 %v6119_v52  ;;  %v6120_v38 = vunpack.i.l.bf16 %v6119_v52  ;;  %v2896_v52 = vld [vmem:[#allocation3 + $0xf8] sm:$0xff]  ;;  %v4113_v27 = vsel %vm4092_vm14, %v4080_v32, %v6095_v48  ;;  %v6126_v34 = vunpack.i.h.bf16 %v9779_v57 }
 0x3d9   : > { %v4081_v13 = vsel %vm2786_vm12, %v2896_v52, %v6091_v15  ;;  %p6391_p13 = pneg %p6390_p12 }
 0x3da   : > { %v4210_v58 = vsel %vm4191_vm1, %v4177_v18, %v6120_v38  ;;  %v4211_v6 = vsel %vm4191_vm1, %v4178_v37, %v6121_v44  ;;  %v6156_v38 = vunpack.i.h.bf16 %v9763_v4 }
 0x3db   : > { %v4458_v11 = vpop.f32.mrf.mxu1  ;;  %v9830_v54 = vpop.f32.mrf.mxu2  ;;  %p6396_p4 = pnand %p6395_p3, %p6391_p13 }
 0x3dc   : > { %v4548_v23 = vadd.f32 %v9554_v22, %v4458_v11  ;;  %v4114_v11 = vsel %vm4092_vm14, %v4081_v13, %v6096_v62 }
 0x3de   : > { %v4623_v61 = vmax.f32 %v4548_v23, 0.0  ;;  %v9802_v25 = vpop.permute.xlu2 %6178 }
 0x3df   : > { %v6134_v39 = vpop.permute.xlu1 %6133  ;;  %v6144_v45 = vpop.permute.xlu0 %6143  ;;  %v6181_v13 = vunpack.i.h.bf16 %v9802_v25  ;;  %v6180_v32 = vunpack.i.l.bf16 %v9802_v25 }
 0x3e0   : > { %4655 = vst.msk [vmem:[%s9722_s17 + $0x18] sm:$0xff] %vm4092_vm14, %v4623_v61  ;;  %v6136_v22 = vunpack.i.h.bf16 %v6134_v39  ;;  %v6135_v12 = vunpack.i.l.bf16 %v6134_v39  ;;  %v6146_v0 = vunpack.i.h.bf16 %v6144_v45  ;;  %v6145_v16 = vunpack.i.l.bf16 %v6144_v45 }
 0x3e2   : > { %v4243_v24 = vsel %vm4224_vm2, %v4210_v58, %v6135_v12  ;;  %v4244_v14 = vsel %vm4224_vm2, %v4211_v6, %v6136_v22  ;;  %v4146_v51 = vsel %vm4125_vm15, %v4113_v27, %v6145_v16  ;;  %v4147_v23 = vsel %vm4125_vm15, %v4114_v11, %v6146_v0 }
 0x3e3   : > { %v4276_v9 = vsel %vm4257_vm3, %v4243_v24, %v6140_v20  ;;  %v4277_v47 = vsel %vm4257_vm3, %v4244_v14, %v6141_v50  ;;  %v9847_v15 = vpop.f32.mrf.mxu2  ;;  %v6130_v16 = vunpack.i.l.bf16 %v9714_v43 }
 0x3e4   : > { %v4461_v53 = vpop.f32.mrf.mxu1  ;;  %v4308_v30 = vpack.c.bf16 %v4277_v47, %v4276_v9 }
 0x3e5   : > { %v4551_v10 = vadd.f32 %v9593_v21, %v4461_v53 }
 0x3e6   : > { %4495 = vmatmul.bf16.gmra.mxu1 %v4308_v30  ;;  %v9823_v5 = vpop.permute.xlu2 %6203 }
 0x3e7   : > { %v4624_v46 = vmax.f32 %v4551_v10, 0.0  ;;  %v6149_v42 = vpop.permute.xlu1 %6148  ;;  %v9815_v40 = vpop.permute.xlu0 %6163  ;;  %v6125_v10 = vunpack.i.l.bf16 %v9779_v57 }
 0x3e8   : > { %v6151_v21 = vunpack.i.h.bf16 %v6149_v42  ;;  %v6150_v55 = vunpack.i.l.bf16 %v6149_v42  ;;  %v6131_v42 = vunpack.i.h.bf16 %v9714_v43 }
 0x3e9   : > { %4656 = vst.msk [vmem:[%s9722_s17 + $0x20] sm:$0xff] %vm4092_vm14, %v4624_v46  ;;  %v4082_v52 = vsel %vm2786_vm12, %v9444_v49, %v6125_v10 }
 0x3ea   : > { %v4179_v26 = vsel %vm4158_vm0, %v4146_v51, %v6150_v55  ;;  %v4180_v44 = vsel %vm4158_vm0, %v4147_v23, %v6151_v21 }
 0x3eb   : > { %v4213_v12 = vsel %vm4191_vm1, %v4180_v44, %v6156_v38  ;;  %v9871_v49 = vpop.f32.mrf.mxu2  ;;  %v6205_v44 = vunpack.i.l.bf16 %v9823_v5 }
 0x3ec   : > { %v4463_v8 = vpop.f32.mrf.mxu1 }
 0x3ed   : > { %v4553_v1 = vadd.f32 %v9625_v7, %v4463_v8  ;;  %v4212_v7 = vsel %vm4191_vm1, %v4179_v26, %v6155_v3  ;;  %v6206_v26 = vunpack.i.h.bf16 %v9823_v5 }
 0x3ee   : > { %v9844_v6 = vpop.permute.xlu2 %6218 }
 0x3ef   : > { %v4625_v29 = vmax.f32 %v4553_v1, 0.0  ;;  %v6174_v61 = vpop.permute.xlu1 %6173  ;;  %v6169_v39 = vpop.permute.xlu0 %6168 }
 0x3f0   : > { %v6176_v45 = vunpack.i.h.bf16 %v6174_v61  ;;  %v6175_v18 = vunpack.i.l.bf16 %v6174_v61  ;;  %v6171_v37 = vunpack.i.h.bf16 %v6169_v39  ;;  %v6170_v22 = vunpack.i.l.bf16 %v6169_v39 }
 0x3f1   : > { %4657 = vst.msk [vmem:[%s9722_s17 + $0x28] sm:$0xff] %vm4092_vm14, %v4625_v29 }
 0x3f2   : > { %v4246_v50 = vsel %vm4224_vm2, %v4213_v12, %v6171_v37  ;;  %v4245_v20 = vsel %vm4224_vm2, %v4212_v7, %v6170_v22 }
 0x3f3   : > { %v4278_v4 = vsel %vm4257_vm3, %v4245_v20, %v6175_v18  ;;  %v4279_v58 = vsel %vm4257_vm3, %v4246_v50, %v6176_v45  ;;  %v9885_v50 = vpop.f32.mrf.mxu2 }
 0x3f4   : > { %v4466_v24 = vpop.f32.mrf.mxu1  ;;  %v4310_v14 = vpack.c.bf16 %v4279_v58, %v4278_v4  ;;  %v6161_v4 = vunpack.i.h.bf16 %v9775_v60  ;;  %v6160_v58 = vunpack.i.l.bf16 %v9775_v60 }
 0x3f5   : > { %v4556_v9 = vadd.f32 %v9787_v31, %v4466_v24  ;;  %v4083_v31 = vsel %vm2786_vm12, %v9431_v41, %v6126_v34  ;;  %v4115_v41 = vsel %vm4092_vm14, %v4082_v52, %v6130_v16 }
 0x3f6   : > { %4500 = vmatmul.bf16.gmra.mxu1 %v4310_v14  ;;  %v9860_v0 = vpop.permute.xlu2 %6233  ;;  %v4116_v55 = vsel %vm4092_vm14, %v4083_v31, %v6131_v42  ;;  %v4148_v27 = vsel %vm4125_vm15, %v4115_v41, %v6180_v32  ;;  %v4085_v10 = vsel %vm2786_vm12, %v9497_v36, %v6161_v4  ;;  %v6220_v36 = vunpack.i.l.bf16 %v9844_v6 }
 0x3f7   : > { %v4626_v47 = vmax.f32 %v4556_v9, 0.0  ;;  %v6189_v53 = vpop.permute.xlu1 %6188  ;;  %v6184_v30 = vpop.permute.xlu0 %6183  ;;  %v4149_v25 = vsel %vm4125_vm15, %v4116_v55, %v6181_v13  ;;  %v6166_v9 = vunpack.i.h.bf16 %v9815_v40 }
 0x3f8   : > { %v6186_v57 = vunpack.i.h.bf16 %v6184_v30  ;;  %v6185_v62 = vunpack.i.l.bf16 %v6184_v30  ;;  %v6191_v43 = vunpack.i.h.bf16 %v6189_v53  ;;  %v6190_v11 = vunpack.i.l.bf16 %v6189_v53 }
 0x3f9   : > { %4658 = vst.msk [vmem:[%s9722_s17 + $0x30] sm:$0xff] %vm4092_vm14, %v4626_v47  ;;  %v6165_v47 = vunpack.i.l.bf16 %v9815_v40  ;;  %v4118_v42 = vsel %vm4092_vm14, %v4085_v10, %v6166_v9 }
 0x3fa   : > { %v4181_v8 = vsel %vm4158_vm0, %v4148_v27, %v6185_v62  ;;  %v4182_v51 = vsel %vm4158_vm0, %v4149_v25, %v6186_v57 }
 0x3fb   : > { %v4214_v23 = vsel %vm4191_vm1, %v4181_v8, %v6190_v11  ;;  %v4215_v1 = vsel %vm4191_vm1, %v4182_v51, %v6191_v43  ;;  %v9907_v32 = vpop.f32.mrf.mxu2 }
 0x3fc   : > { %v4468_v46 = vpop.f32.mrf.mxu1  ;;  %v4247_v45 = vsel %vm4224_vm2, %v4214_v23, %v6205_v44  ;;  %v4248_v18 = vsel %vm4224_vm2, %v4215_v1, %v6206_v26 }
 0x3fd   : > { %v4558_v19 = vadd.f32 %v4557_v56, %v4468_v46 }
 0x3fe   : > { %v6244_v29 = vpop.permute.xlu2 %6243 }
 0x3ff   : > { %v4627_v48 = vmax.f32 %v4558_v19, 0.0  ;;  %v9863_v21 = vpop.permute.xlu1 %6198  ;;  %v9865_v56 = vpop.permute.xlu0 %6193  ;;  %v6246_v25 = vunpack.i.h.bf16 %v6244_v29  ;;  %v6245_v27 = vunpack.i.l.bf16 %v6244_v29 }
 0x400   : > { %v6195_v29 = vunpack.i.l.bf16 %v9865_v56 }
 0x401   : > { %4659 = vst.msk [vmem:[%s9722_s17 + $0x38] sm:$0xff] %vm4092_vm14, %v4627_v48 }
 0x406   : > { %v9896_v34 = vpop.permute.xlu2 %6258 }
 0x407   : > { %v6214_v38 = vpop.permute.xlu1 %6213  ;;  %v6209_v3 = vpop.permute.xlu0 %6208 }
 0x408   : > { %v6211_v61 = vunpack.i.h.bf16 %v6209_v3  ;;  %v6210_v39 = vunpack.i.l.bf16 %v6209_v3  ;;  %v6216_v53 = vunpack.i.h.bf16 %v6214_v38  ;;  %v6215_v30 = vunpack.i.l.bf16 %v6214_v38 }
 0x409   : > { %v6196_v3 = vunpack.i.h.bf16 %v9865_v56 }
 0x40a   : > { %v4280_v37 = vsel %vm4257_vm3, %v4247_v45, %v6210_v39  ;;  %v4281_v22 = vsel %vm4257_vm3, %v4248_v18, %v6211_v61  ;;  %v4151_v31 = vsel %vm4125_vm15, %v4118_v42, %v6216_v53  ;;  %v6201_v18 = vunpack.i.h.bf16 %v9863_v21 }
 0x40b   : > { %v4471_v7 = vpop.f32.mrf.mxu1  ;;  %v4312_v12 = vpack.c.bf16 %v4281_v22, %v4280_v37  ;;  %v6200_v37 = vunpack.i.l.bf16 %v9863_v21  ;;  %v9932_v22 = vpop.f32.mrf.mxu2  ;;  %v6260_v42 = vunpack.i.l.bf16 %v9896_v34 }
 0x40c   : > { %v4561_v5 = vadd.f32 %v9830_v54, %v4471_v7  ;;  %v4084_v54 = vsel %vm2786_vm12, %v9508_v59, %v6160_v58  ;;  %v6221_v59 = vunpack.i.h.bf16 %v9844_v6  ;;  %v4086_v7 = vsel %vm2786_vm12, %v9563_v28, %v6195_v29  ;;  %v3162_v58 = vld [vmem:[#allocation3 + $0x19a] sm:$0xff] }
 0x40d   : > { %4505 = vmatmul.bf16.gmra.mxu1 %v4312_v12  ;;  %v4117_v46 = vsel %vm4092_vm14, %v4084_v54, %v6165_v47  ;;  %v4119_v21 = vsel %vm4092_vm14, %v4086_v7, %v6200_v37 }
 0x40e   : > { %v4628_v20 = vmax.f32 %v4561_v5, 0.0  ;;  %v4150_v19 = vsel %vm4125_vm15, %v4117_v46, %v6215_v30  ;;  %v4184_v41 = vsel %vm4158_vm0, %v4151_v31, %v6221_v59  ;;  %v9921_v26 = vpop.permute.xlu2 %6263  ;;  %v6261_v46 = vunpack.i.h.bf16 %v9896_v34 }
 0x40f   : > { %v9890_v24 = vpop.permute.xlu1 %6228  ;;  %v6224_v14 = vpop.permute.xlu0 %6223  ;;  %v4183_v48 = vsel %vm4158_vm0, %v4150_v19, %v6220_v36 }
 0x410   : > { %4660 = vst.msk [vmem:[%s9722_s17 + $0x40] sm:$0xff] %vm4092_vm14, %v4628_v20  ;;  %v6226_v52 = vunpack.i.h.bf16 %v6224_v14  ;;  %v6225_v13 = vunpack.i.l.bf16 %v6224_v14  ;;  %v3163_v14 = vld [vmem:[#allocation3 + $0x1a2] sm:$0xff]  ;;  %v6231_v34 = vunpack.i.h.bf16 %v9890_v24 }
 0x411   : > { %v4321_v53 = vpack.c.bf16 %v3163_v14, %v3162_v58 }
 0x412   : > { %v4216_v43 = vsel %vm4191_vm1, %v4183_v48, %v6225_v13  ;;  %v4217_v11 = vsel %vm4191_vm1, %v4184_v41, %v6226_v52  ;;  %v6230_v48 = vunpack.i.l.bf16 %v9890_v24 }
 0x413   : > { %v4473_v60 = vpop.f32.mrf.mxu1  ;;  %4989 = vmatmul.msk.bf16.gmra.mxu2 %vm2786_vm12, %v4321_v53 }
 0x414   : > { %v4563_v40 = vadd.f32 %v9847_v15, %v4473_v60 }
 0x416   : > { %v4629_v16 = vmax.f32 %v4563_v40, 0.0  ;;  %v6284_v28 = vpop.permute.xlu2 %6283 }
 0x417   : > { %v6239_v57 = vpop.permute.xlu1 %6238  ;;  %v6249_v62 = vpop.permute.xlu0 %6248 }
 0x418   : > { %4661 = vst.msk [vmem:[%s9722_s17 + $0x48] sm:$0xff] %vm4092_vm14, %v4629_v16  ;;  %v6241_v15 = vunpack.i.h.bf16 %v6239_v57  ;;  %v6240_v55 = vunpack.i.l.bf16 %v6239_v57  ;;  %v6251_v56 = vunpack.i.h.bf16 %v6249_v62  ;;  %v6250_v12 = vunpack.i.l.bf16 %v6249_v62  ;;  %v9954_v62 = vpop.f32.mrf.mxu2 }
 0x41a   : > { %v4249_v8 = vsel %vm4224_vm2, %v4216_v43, %v6240_v55  ;;  %v4250_v6 = vsel %vm4224_vm2, %v4217_v11, %v6241_v15  ;;  %v4089_v11 = vsel %vm2786_vm12, %v9639_v2, %v6231_v34 }
 0x41b   : > { %v4476_v51 = vpop.f32.mrf.mxu1  ;;  %v4282_v23 = vsel %vm4257_vm3, %v4249_v8, %v6245_v27  ;;  %v4283_v1 = vsel %vm4257_vm3, %v4250_v6, %v6246_v25  ;;  %v4088_v8 = vsel %vm2786_vm12, %v9643_v33, %v6230_v48  ;;  %v6286_v6 = vunpack.i.h.bf16 %v6284_v28 }
 0x41c   : > { %v4566_v44 = vadd.f32 %v9871_v49, %v4476_v51  ;;  %v4314_v38 = vpack.c.bf16 %v4283_v1, %v4282_v23  ;;  %v4087_v49 = vsel %vm2786_vm12, %v9552_v35, %v6196_v3  ;;  %v4152_v35 = vsel %vm4125_vm15, %v4119_v21, %v6250_v12 }
 0x41d   : > { %v4120_v9 = vsel %vm4092_vm14, %v4087_v49, %v6201_v18  ;;  %v6285_v51 = vunpack.i.l.bf16 %v6284_v28  ;;  %v6236_v1 = vunpack.i.h.bf16 %v9860_v0 }
 0x41e   : > { %v4630_v61 = vmax.f32 %v4566_v44, 0.0  ;;  %4510 = vmatmul.bf16.gmra.mxu1 %v4314_v38  ;;  %v4153_v30 = vsel %vm4125_vm15, %v4120_v9, %v6251_v56  ;;  %v6235_v44 = vunpack.i.l.bf16 %v9860_v0  ;;  %v6299_v38 = vpop.permute.xlu2 %6298  ;;  %v6266_v9 = vunpack.i.h.bf16 %v9921_v26 }
 0x41f   : > { %v6254_v39 = vpop.permute.xlu1 %6253  ;;  %v9926_v45 = vpop.permute.xlu0 %6268  ;;  %v4122_v2 = vsel %vm4092_vm14, %v4089_v11, %v6236_v1  ;;  %v6301_v58 = vunpack.i.h.bf16 %v6299_v38  ;;  %v6300_v14 = vunpack.i.l.bf16 %v6299_v38 }
 0x420   : > { %4662 = vst.msk [vmem:[%s9722_s17 + $0x50] sm:$0xff] %vm4092_vm14, %v4630_v61  ;;  %v6256_v5 = vunpack.i.h.bf16 %v6254_v39  ;;  %v6255_v20 = vunpack.i.l.bf16 %v6254_v39  ;;  %v4121_v29 = vsel %vm4092_vm14, %v4088_v8, %v6235_v44  ;;  %v4155_v61 = vsel %vm4125_vm15, %v4122_v2, %v6286_v6  ;;  %v4577_v56 = vpop.f32.mrf.mxu2 }
 0x421   : > { %v4154_v33 = vsel %vm4125_vm15, %v4121_v29, %v6285_v51 }
 0x422   : > { %v4185_v54 = vsel %vm4158_vm0, %v4152_v35, %v6255_v20  ;;  %v4186_v10 = vsel %vm4158_vm0, %v4153_v30, %v6256_v5  ;;  %v6270_v30 = vunpack.i.l.bf16 %v9926_v45 }
 0x423   : > { %v4478_v4 = vpop.f32.mrf.mxu1  ;;  %v4218_v59 = vsel %vm4191_vm1, %v4185_v54, %v6260_v42  ;;  %v4219_v36 = vsel %vm4191_vm1, %v4186_v10, %v6261_v46 }
 0x424   : > { %v4568_v47 = vadd.f32 %v9885_v50, %v4478_v4 }
 0x426   : > { %v4631_v60 = vmax.f32 %v4568_v47, 0.0  ;;  %v6265_v47 = vunpack.i.l.bf16 %v9921_v26  ;;  %v6314_v28 = vpop.permute.xlu2 %6313  ;;  %v4091_v26 = vsel %vm2786_vm12, %v9679_v17, %v6266_v9 }
 0x427   : > { %v6279_v40 = vpop.permute.xlu1 %6278  ;;  %v6274_v19 = vpop.permute.xlu0 %6273 }
 0x428   : > { %4663 = vst.msk [vmem:[%s9722_s17 + $0x58] sm:$0xff] %vm4092_vm14, %v4631_v60  ;;  %v6281_v50 = vunpack.i.h.bf16 %v6279_v40  ;;  %v6280_v31 = vunpack.i.l.bf16 %v6279_v40  ;;  %v6276_v52 = vunpack.i.h.bf16 %v6274_v19  ;;  %v6275_v13 = vunpack.i.l.bf16 %v6274_v19 }
 0x42a   : > { %v4251_v16 = vsel %vm4224_vm2, %v4218_v59, %v6275_v13  ;;  %v4252_v57 = vsel %vm4224_vm2, %v4219_v36, %v6276_v52  ;;  %v4580_v52 = vpop.f32.mrf.mxu2 }
 0x42b   : > { %v4481_v41 = vpop.f32.mrf.mxu1  ;;  %v4284_v15 = vsel %vm4257_vm3, %v4251_v16, %v6280_v31  ;;  %v4285_v55 = vsel %vm4257_vm3, %v4252_v57, %v6281_v50  ;;  %v4090_v50 = vsel %vm2786_vm12, %v9683_v63, %v6265_v47  ;;  %v6316_v16 = vunpack.i.h.bf16 %v6314_v28 }
 0x42c   : > { %v4571_v25 = vadd.f32 %v9907_v32, %v4481_v41  ;;  %v4316_v27 = vpack.c.bf16 %v4285_v55, %v4284_v15  ;;  %v6315_v57 = vunpack.i.l.bf16 %v6314_v28 }
 0x42e   : > { %v4632_v43 = vmax.f32 %v4571_v25, 0.0  ;;  %4515 = vmatmul.bf16.gmra.mxu1 %v4316_v27  ;;  %v6329_v25 = vpop.permute.xlu2 %6328 }
 0x42f   : > { %v6294_v24 = vpop.permute.xlu1 %6293  ;;  %v6289_v23 = vpop.permute.xlu0 %6288  ;;  %v6331_v6 = vunpack.i.h.bf16 %v6329_v25  ;;  %v6330_v51 = vunpack.i.l.bf16 %v6329_v25 }
 0x430   : > { %4664 = vst.msk [vmem:[%s9722_s17 + $0x60] sm:$0xff] %vm4092_vm14, %v4632_v43  ;;  %v6291_v32 = vunpack.i.h.bf16 %v6289_v23  ;;  %v6290_v3 = vunpack.i.l.bf16 %v6289_v23  ;;  %v6296_v39 = vunpack.i.h.bf16 %v6294_v24  ;;  %v6295_v18 = vunpack.i.l.bf16 %v6294_v24 }
 0x432   : > { %v4187_v49 = vsel %vm4158_vm0, %v4154_v33, %v6290_v3  ;;  %v4188_v0 = vsel %vm4158_vm0, %v4155_v61, %v6291_v32  ;;  %v4582_v44 = vpop.f32.mrf.mxu2 }
 0x433   : > { %v4483_v37 = vpop.f32.mrf.mxu1  ;;  %v4220_v5 = vsel %vm4191_vm1, %v4187_v49, %v6295_v18  ;;  %v4221_v20 = vsel %vm4191_vm1, %v4188_v0, %v6296_v39 }
 0x434   : > { %v4573_v7 = vadd.f32 %v9932_v22, %v4483_v37  ;;  %v6271_v22 = vunpack.i.h.bf16 %v9926_v45  ;;  %v4253_v54 = vsel %vm4224_vm2, %v4220_v5, %v6300_v14  ;;  %v4254_v10 = vsel %vm4224_vm2, %v4221_v20, %v6301_v58 }
 0x435   : > { %v4123_v45 = vsel %vm4092_vm14, %v4090_v50, %v6270_v30 }
 0x436   : > { %v4633_v12 = vmax.f32 %v4573_v7, 0.0  ;;  %v4124_v31 = vsel %vm4092_vm14, %v4091_v26, %v6271_v22 }
 0x437   : > { %v6309_v4 = vpop.permute.xlu1 %6308 }
 0x438   : > { %4665 = vst.msk [vmem:[%s9722_s17 + $0x68] sm:$0xff] %vm4092_vm14, %v4633_v12  ;;  %v6304_v21 = vpop.permute.xlu0 %6303  ;;  %v6311_v60 = vunpack.i.h.bf16 %v6309_v4  ;;  %v6310_v46 = vunpack.i.l.bf16 %v6309_v4 }
 0x439   : > { %v6306_v53 = vunpack.i.h.bf16 %v6304_v21  ;;  %v6305_v35 = vunpack.i.l.bf16 %v6304_v21 }
 0x43a   : > { %v4156_v13 = vsel %vm4125_vm15, %v4123_v45, %v6310_v46  ;;  %v4157_v59 = vsel %vm4125_vm15, %v4124_v31, %v6311_v60  ;;  %v4585_v33 = vpop.f32.mrf.mxu2 }
 0x43b   : > { %v4286_v42 = vsel %vm4257_vm3, %v4253_v54, %v6305_v35  ;;  %v4287_v40 = vsel %vm4257_vm3, %v4254_v10, %v6306_v53  ;;  %v4189_v41 = vsel %vm4158_vm0, %v4156_v13, %v6315_v57  ;;  %v4190_v63 = vsel %vm4158_vm0, %v4157_v59, %v6316_v16 }
 0x43c   : > { %v4318_v19 = vpack.c.bf16 %v4287_v40, %v4286_v42 }
 0x43e   : > { %4520 = vmatmul.bf16.gmra.mxu1 %v4318_v19 }
 0x43f   : > { %v6324_v36 = vpop.permute.xlu1 %6323 }
 0x440   : > { %v6319_v34 = vpop.permute.xlu0 %6318  ;;  %v6326_v15 = vunpack.i.h.bf16 %v6324_v36  ;;  %v6325_v55 = vunpack.i.l.bf16 %v6324_v36 }
 0x441   : > { %v6321_v48 = vunpack.i.h.bf16 %v6319_v34  ;;  %v6320_v17 = vunpack.i.l.bf16 %v6319_v34 }
 0x442   : > { %v4486_v27 = vpop.f32.mrf.mxu1  ;;  %v4587_v0 = vpop.f32.mrf.mxu2 }
 0x443   : > { %v4222_v43 = vsel %vm4191_vm1, %v4189_v41, %v6320_v17  ;;  %v4223_v11 = vsel %vm4191_vm1, %v4190_v63, %v6321_v48  ;;  %v4576_v8 = vadd.f32 %v9954_v62, %v4486_v27 }
 0x444   : > { %v4255_v23 = vsel %vm4224_vm2, %v4222_v43, %v6325_v55  ;;  %v4256_v1 = vsel %vm4224_vm2, %v4223_v11, %v6326_v15 }
 0x445   : > { %v4634_v24 = vmax.f32 %v4576_v8, 0.0  ;;  %v4288_v38 = vsel %vm4257_vm3, %v4255_v23, %v6330_v51  ;;  %v4289_v32 = vsel %vm4257_vm3, %v4256_v1, %v6331_v6 }
 0x446   : > { %v4320_v2 = vpack.c.bf16 %v4289_v32, %v4288_v38 }
 0x447   : > { %4666 = vst.msk [vmem:[%s9722_s17 + $0x70] sm:$0xff] %vm4092_vm14, %v4634_v24 }
 0x44a   : > { %v4488_v3 = vpop.f32.mrf.mxu1  ;;  %v4590_v20 = vpop.f32.mrf.mxu2 }
 0x44b   : > { %v4578_v29 = vadd.f32 %v4577_v56, %v4488_v3 }
 0x44d   : > { %v4635_v62 = vmax.f32 %v4578_v29, 0.0 }
 0x44e   : > { %4525 = vmatmul.bf16.gmra.mxu1 %v4320_v2 }
 0x44f   : > { %4667 = vst.msk [vmem:[%s9722_s17 + $0x78] sm:$0xff] %vm4092_vm14, %v4635_v62 }
 0x452   : > { %v4592_v21 = vpop.f32.mrf.mxu2 }
 0x453   : > { %v4491_v61 = vpop.f32.mrf.mxu1 }
 0x454   : > { %v4581_v39 = vadd.f32 %v4580_v52, %v4491_v61 }
 0x456   : > { %v4636_v18 = vmax.f32 %v4581_v39, 0.0 }
 0x458   : > { %4668 = vst.msk [vmem:[%s9722_s17 + $0x80] sm:$0xff] %vm4092_vm14, %v4636_v18 }
 0x45a   : > { %v4595_v35 = vpop.f32.mrf.mxu2 }
 0x45b   : > { %v4493_v37 = vpop.f32.mrf.mxu1 }
 0x45c   : > { %v4583_v49 = vadd.f32 %v4582_v44, %v4493_v37 }
 0x45e   : > { %v4637_v7 = vmax.f32 %v4583_v49, 0.0 }
 0x460   : > { %4669 = vst.msk [vmem:[%s9722_s17 + $0x88] sm:$0xff] %vm4092_vm14, %v4637_v7 }
 0x462   : > { %v4597_v54 = vpop.f32.mrf.mxu2 }
 0x463   : > { %v4496_v56 = vpop.f32.mrf.mxu1 }
 0x464   : > { %v4586_v12 = vadd.f32 %v4585_v33, %v4496_v56 }
 0x466   : > { %v4638_v5 = vmax.f32 %v4586_v12, 0.0 }
 0x468   : > { %4670 = vst.msk [vmem:[%s9722_s17 + $0x90] sm:$0xff] %vm4092_vm14, %v4638_v5 }
 0x46a   : > { %v4600_v42 = vpop.f32.mrf.mxu2 }
 0x46b   : > { %v4498_v4 = vpop.f32.mrf.mxu1 }
 0x46c   : > { %v4588_v58 = vadd.f32 %v4587_v0, %v4498_v4 }
 0x46e   : > { %v4639_v14 = vmax.f32 %v4588_v58, 0.0 }
 0x470   : > { %4671 = vst.msk [vmem:[%s9722_s17 + $0x98] sm:$0xff] %vm4092_vm14, %v4639_v14 }
 0x472   : > { %v4602_v50 = vpop.f32.mrf.mxu2 }
 0x473   : > { %v4501_v9 = vpop.f32.mrf.mxu1 }
 0x474   : > { %v4591_v47 = vadd.f32 %v4590_v20, %v4501_v9 }
 0x476   : > { %v4640_v53 = vmax.f32 %v4591_v47, 0.0 }
 0x478   : > { %4672 = vst.msk [vmem:[%s9722_s17 + $0xa0] sm:$0xff] %vm4092_vm14, %v4640_v53 }
 0x47a   : > { %v4605_v13 = vpop.f32.mrf.mxu2 }
 0x47b   : > { %v4503_v22 = vpop.f32.mrf.mxu1 }
 0x47c   : > { %v4593_v30 = vadd.f32 %v4592_v21, %v4503_v22 }
 0x47e   : > { %v4641_v28 = vmax.f32 %v4593_v30, 0.0 }
 0x480   : > { %4673 = vst.msk [vmem:[%s9722_s17 + $0xa8] sm:$0xff] %vm4092_vm14, %v4641_v28 }
 0x482   : > { %v4607_v48 = vpop.f32.mrf.mxu2 }
 0x48a   : > { %v4506_v10 = vpop.f32.mrf.mxu1  ;;  %v4610_v55 = vpop.f32.mrf.mxu2 }
 0x48b   : > { %v4596_v60 = vadd.f32 %v4595_v35, %v4506_v10 }
 0x48d   : > { %v4642_v46 = vmax.f32 %v4596_v60, 0.0 }
 0x48f   : > { %4674 = vst.msk [vmem:[%s9722_s17 + $0xb0] sm:$0xff] %vm4092_vm14, %v4642_v46 }
 0x492   : > { %v4508_v40 = vpop.f32.mrf.mxu1  ;;  %v4612_v11 = vpop.f32.mrf.mxu2 }
 0x493   : > { %v4598_v19 = vadd.f32 %v4597_v54, %v4508_v40 }
 0x495   : > { %v4643_v26 = vmax.f32 %v4598_v19, 0.0 }
 0x497   : > { %4675 = vst.msk [vmem:[%s9722_s17 + $0xb8] sm:$0xff] %vm4092_vm14, %v4643_v26 }
 0x49a   : > { %v4615_v24 = vpop.f32.mrf.mxu2 }
 0x49b   : > { %v4511_v45 = vpop.f32.mrf.mxu1 }
 0x49c   : > { %v4601_v31 = vadd.f32 %v4600_v42, %v4511_v45 }
 0x49e   : > { %v4644_v52 = vmax.f32 %v4601_v31, 0.0 }
 0x4a0   : > { %4676 = vst.msk [vmem:[%s9722_s17 + $0xc0] sm:$0xff] %vm4092_vm14, %v4644_v52 }
 0x4a2   : > { %v4617_v38 = vpop.f32.mrf.mxu2 }
 0x4a3   : > { %v4513_v59 = vpop.f32.mrf.mxu1 }
 0x4a4   : > { %v4603_v36 = vadd.f32 %v4602_v50, %v4513_v59 }
 0x4a6   : > { %v4645_v16 = vmax.f32 %v4603_v36, 0.0 }
 0x4a8   : > { %4677 = vst.msk [vmem:[%s9722_s17 + $0xc8] sm:$0xff] %vm4092_vm14, %v4645_v16 }
 0x4ab   : > { %v4516_v57 = vpop.f32.mrf.mxu1 }
 0x4ac   : > { %v4606_v34 = vadd.f32 %v4605_v13, %v4516_v57 }
 0x4ae   : > { %v4646_v17 = vmax.f32 %v4606_v34, 0.0 }
 0x4b0   : > { %4678 = vst.msk [vmem:[%s9722_s17 + $0xd0] sm:$0xff] %vm4092_vm14, %v4646_v17 }
 0x4b3   : > { %v4518_v41 = vpop.f32.mrf.mxu1 }
 0x4b4   : > { %v4608_v63 = vadd.f32 %v4607_v48, %v4518_v41 }
 0x4b6   : > { %v4647_v15 = vmax.f32 %v4608_v63, 0.0 }
 0x4b8   : > { %4679 = vst.msk [vmem:[%s9722_s17 + $0xd8] sm:$0xff] %vm4092_vm14, %v4647_v15 }
 0x4bb   : > { %v4521_v25 = vpop.f32.mrf.mxu1 }
 0x4bc   : > { %v4611_v27 = vadd.f32 %v4610_v55, %v4521_v25 }
 0x4be   : > { %v4648_v43 = vmax.f32 %v4611_v27, 0.0 }
 0x4c0   : > { %4680 = vst.msk [vmem:[%s9722_s17 + $0xe0] sm:$0xff] %vm4092_vm14, %v4648_v43 }
 0x4c3   : > { %v4523_v8 = vpop.f32.mrf.mxu1 }
 0x4c4   : > { %v4613_v6 = vadd.f32 %v4612_v11, %v4523_v8 }
 0x4c6   : > { %v4649_v51 = vmax.f32 %v4613_v6, 0.0 }
 0x4c8   : > { %4681 = vst.msk [vmem:[%s9722_s17 + $0xe8] sm:$0xff] %vm4092_vm14, %v4649_v51 }
 0x4cb   : > { %v4526_v23 = vpop.f32.mrf.mxu1 }
 0x4cc   : > { %v4616_v1 = vadd.f32 %v4615_v24, %v4526_v23 }
 0x4ce   : > { %v4650_v44 = vmax.f32 %v4616_v1, 0.0 }
 0x4d0   : > { %4682 = vst.msk [vmem:[%s9722_s17 + $0xf0] sm:$0xff] %vm4092_vm14, %v4650_v44 }
 0x4d3   : > { %v4528_v32 = vpop.f32.mrf.mxu1 }
 0x4d4   : > { %v4618_v3 = vadd.f32 %v4617_v38, %v4528_v32 }
 0x4d6   : > { %v4651_v29 = vmax.f32 %v4618_v3, 0.0 }
 0x4d8   : > { %4683 = vst.msk [vmem:[%s9722_s17 + $0xf8] sm:$0xff] %vm4092_vm14, %v4651_v29 }
 0x4d9   : > { %6399 = shalt.err (!%p6396_p4)
}
 0x4da   : > { %s6459_s29 = smov 128   ;;  %s6460_s20 = smov 8  }
 0x4db   : > { %5067 = dma.vmem_to_hbm [thread:$0]  (%p6530_p10), %s4698_s26, 4096, %s4700_s28, %s4685_s6, %s6459_s29, %s6459_s29, %s6460_s20  }
 0x4dc PF: > { %p5078_p5 = scmp.ge.s32.totalorder %s6438_s15, 2  ;;  %s4714_s22 = sand.u32 1, %s6426_s12  }
 0x4dd   : > { %s4715_s4 = scalar_lea.sflag [#allocation6], %s4714_s22 }
 0x4de   : > { %p5074_p7 = pnand %p5078_p5, %p6534_p11 }
 0x4e0   : > { %p5075_p8 = pneg %p5074_p7 }
 0x4e2   : > { %6421 = dma.done.wait (%p5075_p8), %s4715_s4, 4096  }
 0x4e3   : > { %6423 = vsyncadd (%p5075_p8), %s4715_s4, 4294963200  ;;  %p16_p9 = scmp.ge.s32.totalorder %s6506_s18, 6   ;;  %s10451_s12 = smov %s6430_s13 }
 0x4e4   : > { %s10452_s13 = smov %s6434_s14  ;;  %s10453_s14 = smov %s6518_s21 }
 0x4e5   : > { %s10454_s15 = smov %s6506_s18  ;;  %18 = sbr.rel (!%p16_p9) target bundleno = 5 (0x5), region = 81 }
 0x4ea   :  { %4721 = vsyncpa [#allocation5], 1 }
 0x4eb   :  { %4723 = vsyncpa [#allocation5 + $0x1], 1 }
 0x4ec   :  { %4724 = vsyncpa [#allocation6], 1 }
 0x4ed   :  { %4726 = vsyncpa [#allocation6 + $0x1], 1 }

</bundles_post_ra>
